<compile_context>
chip_gen: v7x
topology: tpu7x:2x2x1
jax: 0.10.0
libtpu: 0.0.40
codegen_flags: <defaults>
</compile_context>

<pallas_src>
import numpy as np
import jax
import jax.numpy as jnp
from jax import lax
from jax.experimental import pallas as pl
from jax.experimental.pallas import tpu as pltpu

# ---------------- module constants (from the PyTorch script) ----------------
F = 2
L = 16
N_min, N_max = 16, 2048
_b = np.exp((np.log(N_max) - np.log(N_min)) / (L - 1))
Nl = [int(np.floor(N_min * _b ** l)) for l in range(L)]
T = 2 ** 19
AABB_SCALE = 3
PI1, PI2, PI3 = 1, 2654435761, 805459861

# TODO(synk): the reference positional_encoding uses self.L=16 frequencies (99 dims),
# inconsistent with color_MLP's declared 16+27 input; we use 4 frequencies
# (3 + 2*4*3 = 27) so the color-MLP shapes actually match.
N_DIR_FREQ = 4

# Rows per grid step.  2048 keeps the demo batch (2500 -> 4096 padded rows) an even
# 2-step grid for v7x's two TensorCores; raise to 4096-8192 on v5e/v6e.
TILE_N = 2048


# ------------------------------ Pallas kernel -------------------------------
def ngp_kernel(featsT_ref, encT_ref, w1T_ref, wbigT_ref, ebigT_ref,
               cw2T_ref, cw3T_ref, bias_ref, out_ref):
    # Transposed layout: feature channels on sublanes, batch rows on lanes, so
    # every per-row scalar (sigma, inside flag, rgb channels) is lane-dense.
    featsT = featsT_ref[...]                                   # (32, TN) bf16
    encT = encT_ref[...]                                       # (32, TN) bf16
    insideT = encT[28:29, :].astype(jnp.float32) > 0.5         # (1, TN) bool

    b1 = bias_ref[:, 0:1]                                      # (64, 1) f32
    cb2 = bias_ref[:, 1:2]                                     # (64, 1) f32
    cb3 = bias_ref[0:8, 2:3]                                   # (8, 1)  f32

    # ---- density layer 1: 32 -> 64, ReLU (bf16 operands, f32 accumulate) ----
    h1 = jnp.dot(w1T_ref[...], featsT, preferred_element_type=jnp.float32) + b1
    h1 = jnp.maximum(h1, 0.0).astype(jnp.bfloat16)             # (64, TN)

    # ---- fused density-layer-2 + color-layer-1 ----
    # rows 0..63 = color pre-activation, row 64 = sigma_raw; cb1, b2@cw1h and
    # b2[0] ride the enc matmul via enc's constant-1 row 27 (inside flag row 28
    # has zero weights).
    z = jnp.dot(wbigT_ref[...], h1, preferred_element_type=jnp.float32)
    z = z + jnp.dot(ebigT_ref[...], encT, preferred_element_type=jnp.float32)   # (72, TN)
    a = jnp.maximum(z[0:64, :], 0.0).astype(jnp.bfloat16)      # (64, TN)
    sigma_raw = z[64:65, :]                                    # (1, TN) f32

    # ---- color layer 2: 64 -> 64, ReLU ----
    a2 = jnp.dot(cw2T_ref[...], a, preferred_element_type=jnp.float32) + cb2
    a2 = jnp.maximum(a2, 0.0).astype(jnp.bfloat16)             # (64, TN)

    # ---- color head: rows 0-2 = rgb logits, rows 3-7 are zero-padded ----
    rgbp = jnp.dot(cw3T_ref[...], a2, preferred_element_type=jnp.float32) + cb3  # (8, TN)

    # ---- lane-dense epilogue on the full (8, TN) slab ----
    # rows 0-2 -> sigmoid(rgb) AABB-masked, row 3 -> exp(sigma) AABB-masked.
    row = lax.broadcasted_iota(jnp.int32, rgbp.shape, 0)
    vals = jnp.where(row == 3, sigma_raw, rgbp)                # (8, TN)
    rgb_part = jnp.where(insideT, jax.nn.sigmoid(vals), 0.0)
    sig_part = jnp.exp(jnp.where(insideT, vals, -100000.0))
    out_ref[...] = jnp.where(row < 3, rgb_part, sig_part)


# ------------------- plain-JAX glue: hash gather + trilinear -----------------
_CORNER_OFFS = np.array([[0, 0, 0], [1, 0, 0], [0, 1, 0], [1, 1, 0],
                         [0, 0, 1], [1, 0, 1], [0, 1, 1], [1, 1, 1]], np.int32)


def hash_features(xn, tables):
    """xn: (N,3) f32 normalized positions; tables: (L, T, F).
    Returns (N, L*F) trilinearly-interpolated multi-resolution hash features
    (level-major / F-minor, matching torch features[:, i*F + f])."""
    nl = jnp.asarray(np.array(Nl, np.float32))                          # (L,)
    scaled = xn[:, None, :] * nl[None, :, None]                         # (N, L, 3)
    fl = jnp.floor(scaled)
    local = scaled - fl                                                 # (N, L, 3)
    verts = fl.astype(jnp.int32)[:, :, None, :] + jnp.asarray(_CORNER_OFFS)[None, None]
    v = verts.astype(jnp.uint32)                                        # (N, L, 8, 3)
    h = ((v[..., 0] * jnp.uint32(PI1)) ^ (v[..., 1] * jnp.uint32(PI2))
         ^ (v[..., 2] * jnp.uint32(PI3)))
    idx = (h % jnp.uint32(T)).astype(jnp.int32)                         # (N, L, 8)
    cf = jax.vmap(lambda tab, i: tab[i], in_axes=(0, 1), out_axes=1)(tables, idx)  # (N,L,8,F)

    xw = local[..., 0:1]
    yw = local[..., 1:2]
    zw = local[..., 2:3]                                                # (N, L, 1)
    c000, c100, c010, c110 = cf[:, :, 0], cf[:, :, 1], cf[:, :, 2], cf[:, :, 3]
    c001, c101, c011, c111 = cf[:, :, 4], cf[:, :, 5], cf[:, :, 6], cf[:, :, 7]
    c00 = c000 * (1 - xw) + c100 * xw
    c01 = c001 * (1 - xw) + c101 * xw
    c10 = c010 * (1 - xw) + c110 * xw
    c11 = c011 * (1 - xw) + c111 * xw
    c0 = c00 * (1 - yw) + c10 * yw
    c1 = c01 * (1 - yw) + c11 * yw
    feats = c0 * (1 - zw) + c1 * zw                                     # (N, L, F)
    return feats.reshape(xn.shape[0], L * F)


# --------------------------- weight packing (fusion) -------------------------
def _pack_kernel_weights(p):
    """Algebraically fuse density layer-2 into color layer-1 and lay all weights
    out for the transposed (features x batch) kernel, in bf16."""
    bf16 = jnp.bfloat16
    w1T = p["w1"].T.astype(bf16)                                 # (64, 32)

    cw1h = p["cw1"][:16]                                         # (16, 64)
    wdc = p["w2"] @ cw1h                                         # (64, 64)   w2 @ cw1h
    bdc = p["b2"] @ cw1h                                         # (64,)

    wbigT = jnp.zeros((72, 64), jnp.float32)
    wbigT = wbigT.at[0:64, :].set(wdc.T)
    wbigT = wbigT.at[64, :].set(p["w2"][:, 0])                   # sigma row
    wbigT = wbigT.astype(bf16)                                   # (72, 64)

    ebig = jnp.zeros((32, 72), jnp.float32)
    ebig = ebig.at[0:27, 0:64].set(p["cw1"][16:43])              # direction weights
    ebig = ebig.at[27, 0:64].set(p["cb1"] + bdc)                 # bias rides the 1-row
    ebig = ebig.at[27, 64].set(p["b2"][0])                       # sigma bias
    ebigT = ebig.T.astype(bf16)                                  # (72, 32)

    cw2T = p["cw2"].T.astype(bf16)                               # (64, 64)
    cw3T = jnp.zeros((8, 64), jnp.float32).at[0:3, :].set(p["cw3"].T).astype(bf16)

    bias = jnp.zeros((64, 8), jnp.float32)                       # f32 bias slab
    bias = bias.at[:, 0].set(p["b1"])
    bias = bias.at[:, 1].set(p["cb2"])
    bias = bias.at[0:3, 2].set(p["cb3"])
    return w1T, wbigT, ebigT, cw2T, cw3T, bias


# ------------------------------- wrapper -------------------------------------
def simplified_ngp_forward(params, x, d):
    n = x.shape[0]
    x = x.astype(jnp.float32)
    d = d.astype(jnp.float32)
    xn0 = x / AABB_SCALE
    inside = ((jnp.abs(xn0[:, 0]) < 0.5) & (jnp.abs(xn0[:, 1]) < 0.5)
              & (jnp.abs(xn0[:, 2]) < 0.5))
    xn = xn0 + 0.5

    n_pad = ((n + TILE_N - 1) // TILE_N) * TILE_N
    pad = n_pad - n
    xn_p = jnp.pad(xn, ((0, pad), (0, 0)))
    d_p = jnp.pad(d, ((0, pad), (0, 0)))
    inside_p = jnp.pad(inside, ((0, pad),))

    # TODO(synk): the data-dependent hash-table gather (16 tables of 2^19 x 2) stays
    # in plain JAX; a VMEM-resident Pallas gather is the next end-to-end win but is
    # generation-specific (fits 128 MiB VMEM on v5e/v6e, not v7x's 64 MiB).
    feats_p = hash_features(xn_p, params["tables"])                     # (n_pad, 32) f32
    featsT = feats_p.T.astype(jnp.bfloat16)                             # (32, n_pad)

    # Transposed 32-row encoding block:
    #   rows 0-2 d, 3-26 sin/cos(2^j d), 27 constant 1 (bias), 28 inside flag, 29-31 pad.
    dT = d_p.T                                                          # (3, n_pad)
    parts = [dT]
    for j in range(N_DIR_FREQ):
        parts.append(jnp.sin((2.0 ** j) * dT))
        parts.append(jnp.cos((2.0 ** j) * dT))
    parts.append(jnp.ones((1, n_pad), jnp.float32))
    parts.append(inside_p.astype(jnp.float32)[None, :])
    parts.append(jnp.zeros((3, n_pad), jnp.float32))
    encT = jnp.concatenate(parts, axis=0).astype(jnp.bfloat16)          # (32, n_pad)

    w1T, wbigT, ebigT, cw2T, cw3T, bias = _pack_kernel_weights(params)

    row_spec = pl.BlockSpec((32, TILE_N), lambda r: (0, r))

    def full_spec(a):
        nd = a.ndim
        return pl.BlockSpec(a.shape, lambda r, _nd=nd: (0,) * _nd)

    out = pl.pallas_call(
        ngp_kernel,
        out_shape=jax.ShapeDtypeStruct((8, n_pad), jnp.float32),
        grid_spec=pltpu.PrefetchScalarGridSpec(
            num_scalar_prefetch=0,
            grid=(n_pad // TILE_N,),
            in_specs=[row_spec, row_spec] + [full_spec(w) for w in
                                             (w1T, wbigT, ebigT, cw2T, cw3T, bias)],
            out_specs=pl.BlockSpec((8, TILE_N), lambda r: (0, r))),
        compiler_params=pltpu.CompilerParams(dimension_semantics=("parallel",)),
    )(featsT, encT, w1T, wbigT, ebigT, cw2T, cw3T, bias)

    rgb = out[0:3, :n].T                                                # (n, 3)
    sigma = out[3, :n]                                                  # (n,)
    return rgb, sigma


# ------------------------- deterministic parameter init ----------------------
def init_params(key):
    ks = jax.random.split(key, 6)
    tables = (jax.random.uniform(ks[0], (L, T, F), jnp.float32) * 2.0 - 1.0) * 1e-4

    def linear(k, fan_in, fan_out):
        k1, k2 = jax.random.split(k)
        bound = 1.0 / np.sqrt(fan_in)
        w = jax.random.uniform(k1, (fan_in, fan_out), jnp.float32, minval=-bound, maxval=bound)
        b = jax.random.uniform(k2, (fan_out,), jnp.float32, minval=-bound, maxval=bound)
        return w, b

    w1, b1 = linear(ks[1], F * L, 64)
    w2, b2 = linear(ks[2], 64, 16)
    cw1, cb1 = linear(ks[3], 16 + 27, 64)
    cw2, cb2 = linear(ks[4], 64, 64)
    cw3, cb3 = linear(ks[5], 64, 3)
    return dict(tables=tables, w1=w1, b1=b1, w2=w2, b2=b2,
                cw1=cw1, cb1=cb1, cw2=cw2, cb2=cb2, cw3=cw3, cb3=cb3)


# ------------------------------ pure-JAX reference ---------------------------
def reference_hash_features(xn, tables):
    """Straightforward per-level / per-corner translation of the PyTorch code."""
    feats = []
    for i, Nres in enumerate(Nl):
        scaled = xn * float(Nres)
        fl = jnp.floor(scaled)
        local = scaled - fl
        fli = fl.astype(jnp.int32)
        cv = []
        for (ox, oy, oz) in _CORNER_OFFS:
            vx = (fli[:, 0] + int(ox)).astype(jnp.uint32)
            vy = (fli[:, 1] + int(oy)).astype(jnp.uint32)
            vz = (fli[:, 2] + int(oz)).astype(jnp.uint32)
            hh = (vx * jnp.uint32(PI1)) ^ (vy * jnp.uint32(PI2)) ^ (vz * jnp.uint32(PI3))
            idx = (hh % jnp.uint32(T)).astype(jnp.int32)
            cv.append(tables[i][idx])                       # (N, F)
        c000, c100, c010, c110, c001, c101, c011, c111 = cv
        xw = local[:, 0:1]
        yw = local[:, 1:2]
        zw = local[:, 2:3]
        c00 = c000 * (1 - xw) + c100 * xw
        c01 = c001 * (1 - xw) + c101 * xw
        c10 = c010 * (1 - xw) + c110 * xw
        c11 = c011 * (1 - xw) + c111 * xw
        c0 = c00 * (1 - yw) + c10 * yw
        c1 = c01 * (1 - yw) + c11 * yw
        feats.append(c0 * (1 - zw) + c1 * zw)               # (N, F)
    return jnp.concatenate(feats, axis=1)                   # (N, L*F)


def reference_forward(params, x, d):
    x = x.astype(jnp.float32)
    d = d.astype(jnp.float32)
    xn0 = x / AABB_SCALE
    mask = ((jnp.abs(xn0[:, 0]) < 0.5) & (jnp.abs(xn0[:, 1]) < 0.5)
            & (jnp.abs(xn0[:, 2]) < 0.5))
    xn = xn0 + 0.5

    feats = reference_hash_features(xn, params["tables"])
    h1 = jnp.maximum(feats @ params["w1"] + params["b1"], 0.0)
    h = h1 @ params["w2"] + params["b2"]                              # (N, 16)

    enc = [d]
    for j in range(N_DIR_FREQ):
        enc.append(jnp.sin((2.0 ** j) * d))
        enc.append(jnp.cos((2.0 ** j) * d))
    denc = jnp.concatenate(enc, axis=1)                               # (N, 27)

    a = jnp.maximum(h @ params["cw1"][:16] + denc @ params["cw1"][16:]
                    + params["cb1"], 0.0)
    a = jnp.maximum(a @ params["cw2"] + params["cb2"], 0.0)
    rgb = jax.nn.sigmoid(a @ params["cw3"] + params["cb3"])
    rgb = jnp.where(mask[:, None], rgb, 0.0)
    sigma = jnp.exp(jnp.where(mask, h[:, 0], -100000.0))
    return rgb, sigma


# ----------------------------------- main ------------------------------------
if __name__ == "__main__":
    key = jax.random.PRNGKey(0)
    pkey, xkey, dkey = jax.random.split(key, 3)
    params = init_params(pkey)

    batch = 2500   # pads to 4096 rows -> an even 2-step grid (one step per v7x TC)
    x = jax.random.normal(xkey, (batch, 3), jnp.float32) * 1.2   # some inside, some outside AABB
    d_raw = jax.random.normal(dkey, (batch, 3), jnp.float32)
    d = d_raw / jnp.linalg.norm(d_raw, axis=1, keepdims=True)

    fwd = jax.jit(simplified_ngp_forward)
    rgb, sigma = fwd(params, x, d)
    (rgb, sigma) = jax.block_until_ready((rgb, sigma))

    assert rgb.shape == (batch, 3) and sigma.shape == (batch,)
    rgb_ref, sigma_ref = jax.jit(reference_forward)(params, x, d)
    np.testing.assert_allclose(np.asarray(rgb), np.asarray(rgb_ref), atol=1e-2, rtol=1e-2)
    np.testing.assert_allclose(np.asarray(sigma), np.asarray(sigma_ref), atol=1e-2, rtol=1e-2)

    print("KERNEL_OK")
</pallas_src>

<mosaic_0001>
module attributes {stable_mosaic.version = 11 : i64} {
  func.func private @main(%arg0: i32) attributes {dimension_semantics = [#tpu.dimension_semantics<core_parallel>], iteration_bounds = array<i64: 2>, tpu.core_type = #tpu.core_type<sc_scalar_subcore>, window_params = []} {
    return
  }
}

module attributes {stable_mosaic.version = 11 : i64} {
  func.func private @main(%arg0: i32) attributes {dimension_semantics = [#tpu.dimension_semantics<core_parallel>], iteration_bounds = array<i64: 2>, tpu.core_type = #tpu.core_type<sc_scalar_subcore>, window_params = []} {
    return
  }
}

module attributes {stable_mosaic.version = 11 : i64} {
  func.func @ngp_kernel(%arg0: i32, %arg1: memref<32x2048xbf16, #tpu.memory_space<vmem>>, %arg2: memref<32x2048xbf16, #tpu.memory_space<vmem>>, %arg3: memref<64x32xbf16, #tpu.memory_space<vmem>>, %arg4: memref<72x64xbf16, #tpu.memory_space<vmem>>, %arg5: memref<72x32xbf16, #tpu.memory_space<vmem>>, %arg6: memref<64x64xbf16, #tpu.memory_space<vmem>>, %arg7: memref<8x64xbf16, #tpu.memory_space<vmem>>, %arg8: memref<64x8xf32, #tpu.memory_space<vmem>>, %arg9: memref<8x2048xf32, #tpu.memory_space<vmem>>) attributes {dimension_semantics = [#tpu.dimension_semantics<parallel>], iteration_bounds = array<i64: 2>, scalar_prefetch = 0 : i64, scratch_operands = 0 : i64, tpu.core_type = #tpu.core_type<tc>, window_params = [{transform_indices = @transform_0, window_bounds = array<i64: 32, 2048>}, {transform_indices = @transform_1, window_bounds = array<i64: 32, 2048>}, {pipeline_mode = #tpu.pipeline_mode<synchronous>, transform_indices = @transform_2, window_bounds = array<i64: 64, 32>}, {pipeline_mode = #tpu.pipeline_mode<synchronous>, transform_indices = @transform_3, window_bounds = array<i64: 72, 64>}, {pipeline_mode = #tpu.pipeline_mode<synchronous>, transform_indices = @transform_4, window_bounds = array<i64: 72, 32>}, {pipeline_mode = #tpu.pipeline_mode<synchronous>, transform_indices = @transform_5, window_bounds = array<i64: 64, 64>}, {pipeline_mode = #tpu.pipeline_mode<synchronous>, transform_indices = @transform_6, window_bounds = array<i64: 8, 64>}, {pipeline_mode = #tpu.pipeline_mode<synchronous>, transform_indices = @transform_7, window_bounds = array<i64: 64, 8>}, {transform_indices = @transform_8, window_bounds = array<i64: 8, 2048>}]} {
    %c0 = arith.constant 0 : index
    %c0_0 = arith.constant 0 : index
    %0 = vector.load %arg1[%c0, %c0_0] : memref<32x2048xbf16, #tpu.memory_space<vmem>>, vector<32x2048xbf16>
    %c0_1 = arith.constant 0 : index
    %c0_2 = arith.constant 0 : index
    %1 = vector.load %arg2[%c0_1, %c0_2] : memref<32x2048xbf16, #tpu.memory_space<vmem>>, vector<32x2048xbf16>
    %2 = vector.extract_strided_slice %1 {offsets = [28, 0], sizes = [1, 2048], strides = [1, 1]} : vector<32x2048xbf16> to vector<1x2048xbf16>
    %3 = arith.extf %2 : vector<1x2048xbf16> to vector<1x2048xf32>
    %cst = arith.constant 5.000000e-01 : f32
    %4 = vector.broadcast %cst : f32 to vector<1x2048xf32>
    %5 = arith.cmpf ogt, %3, %4 : vector<1x2048xf32>
    %c0_3 = arith.constant 0 : index
    %c0_4 = arith.constant 0 : index
    %6 = vector.load %arg8[%c0_3, %c0_4] : memref<64x8xf32, #tpu.memory_space<vmem>>, vector<64x1xf32>
    %c0_5 = arith.constant 0 : index
    %c1 = arith.constant 1 : index
    %7 = vector.load %arg8[%c0_5, %c1] : memref<64x8xf32, #tpu.memory_space<vmem>>, vector<64x1xf32>
    %c0_6 = arith.constant 0 : index
    %c2 = arith.constant 2 : index
    %8 = vector.load %arg8[%c0_6, %c2] : memref<64x8xf32, #tpu.memory_space<vmem>>, vector<8x1xf32>
    %c0_7 = arith.constant 0 : index
    %c0_8 = arith.constant 0 : index
    %9 = vector.load %arg3[%c0_7, %c0_8] : memref<64x32xbf16, #tpu.memory_space<vmem>>, vector<64x32xbf16>
    %cst_9 = arith.constant dense<0.000000e+00> : vector<64x2048xf32>
    %10 = tpu.matmul %9, %0, %cst_9 {dimension_numbers = #tpu.dot_dimension_numbers<[1], [0], [0], [1], [0, 0, 1, 1], [], []>} : vector<64x32xbf16>, vector<32x2048xbf16>, vector<64x2048xf32> -> vector<64x2048xf32>
    %11 = vector.broadcast %6 : vector<64x1xf32> to vector<64x2048xf32>
    %12 = arith.addf %10, %11 : vector<64x2048xf32>
    %cst_10 = arith.constant 0.000000e+00 : f32
    %13 = vector.broadcast %cst_10 : f32 to vector<64x2048xf32>
    %14 = arith.maximumf %12, %13 : vector<64x2048xf32>
    %15 = arith.truncf %14 : vector<64x2048xf32> to vector<64x2048xbf16>
    %c0_11 = arith.constant 0 : index
    %c0_12 = arith.constant 0 : index
    %16 = vector.load %arg4[%c0_11, %c0_12] : memref<72x64xbf16, #tpu.memory_space<vmem>>, vector<72x64xbf16>
    %cst_13 = arith.constant dense<0.000000e+00> : vector<72x2048xf32>
    %17 = tpu.matmul %16, %15, %cst_13 {dimension_numbers = #tpu.dot_dimension_numbers<[1], [0], [0], [1], [0, 0, 1, 1], [], []>} : vector<72x64xbf16>, vector<64x2048xbf16>, vector<72x2048xf32> -> vector<72x2048xf32>
    %c0_14 = arith.constant 0 : index
    %c0_15 = arith.constant 0 : index
    %18 = vector.load %arg5[%c0_14, %c0_15] : memref<72x32xbf16, #tpu.memory_space<vmem>>, vector<72x32xbf16>
    %cst_16 = arith.constant dense<0.000000e+00> : vector<72x2048xf32>
    %19 = tpu.matmul %18, %1, %cst_16 {dimension_numbers = #tpu.dot_dimension_numbers<[1], [0], [0], [1], [0, 0, 1, 1], [], []>} : vector<72x32xbf16>, vector<32x2048xbf16>, vector<72x2048xf32> -> vector<72x2048xf32>
    %20 = arith.addf %17, %19 : vector<72x2048xf32>
    %21 = vector.extract_strided_slice %20 {offsets = [0, 0], sizes = [64, 2048], strides = [1, 1]} : vector<72x2048xf32> to vector<64x2048xf32>
    %cst_17 = arith.constant 0.000000e+00 : f32
    %22 = vector.broadcast %cst_17 : f32 to vector<64x2048xf32>
    %23 = arith.maximumf %21, %22 : vector<64x2048xf32>
    %24 = arith.truncf %23 : vector<64x2048xf32> to vector<64x2048xbf16>
    %25 = vector.extract_strided_slice %20 {offsets = [64, 0], sizes = [1, 2048], strides = [1, 1]} : vector<72x2048xf32> to vector<1x2048xf32>
    %c0_18 = arith.constant 0 : index
    %c0_19 = arith.constant 0 : index
    %26 = vector.load %arg6[%c0_18, %c0_19] : memref<64x64xbf16, #tpu.memory_space<vmem>>, vector<64x64xbf16>
    %cst_20 = arith.constant dense<0.000000e+00> : vector<64x2048xf32>
    %27 = tpu.matmul %26, %24, %cst_20 {dimension_numbers = #tpu.dot_dimension_numbers<[1], [0], [0], [1], [0, 0, 1, 1], [], []>} : vector<64x64xbf16>, vector<64x2048xbf16>, vector<64x2048xf32> -> vector<64x2048xf32>
    %28 = vector.broadcast %7 : vector<64x1xf32> to vector<64x2048xf32>
    %29 = arith.addf %27, %28 : vector<64x2048xf32>
    %cst_21 = arith.constant 0.000000e+00 : f32
    %30 = vector.broadcast %cst_21 : f32 to vector<64x2048xf32>
    %31 = arith.maximumf %29, %30 : vector<64x2048xf32>
    %32 = arith.truncf %31 : vector<64x2048xf32> to vector<64x2048xbf16>
    %c0_22 = arith.constant 0 : index
    %c0_23 = arith.constant 0 : index
    %33 = vector.load %arg7[%c0_22, %c0_23] : memref<8x64xbf16, #tpu.memory_space<vmem>>, vector<8x64xbf16>
    %cst_24 = arith.constant dense<0.000000e+00> : vector<8x2048xf32>
    %34 = tpu.matmul %33, %32, %cst_24 {dimension_numbers = #tpu.dot_dimension_numbers<[1], [0], [0], [1], [0, 0, 1, 1], [], []>} : vector<8x64xbf16>, vector<64x2048xbf16>, vector<8x2048xf32> -> vector<8x2048xf32>
    %35 = vector.broadcast %8 : vector<8x1xf32> to vector<8x2048xf32>
    %36 = arith.addf %34, %35 : vector<8x2048xf32>
    %37 = tpu.iota {dimensions = array<i32: 0>} : vector<8x2048xi32>
    %c3_i32 = arith.constant 3 : i32
    %38 = vector.broadcast %c3_i32 : i32 to vector<8x2048xi32>
    %39 = arith.cmpi eq, %37, %38 : vector<8x2048xi32>
    %40 = vector.shape_cast %25 : vector<1x2048xf32> to vector<1x2048xf32>
    %41 = vector.broadcast %40 : vector<1x2048xf32> to vector<8x2048xf32>
    %42 = arith.select %39, %41, %36 : vector<8x2048xi1>, vector<8x2048xf32>
    %43 = arith.negf %42 : vector<8x2048xf32>
    %44 = math.exp %43 : vector<8x2048xf32>
    %cst_25 = arith.constant 1.000000e+00 : f32
    %45 = vector.broadcast %cst_25 : f32 to vector<8x2048xf32>
    %46 = arith.addf %45, %44 : vector<8x2048xf32>
    %47 = arith.divf %45, %46 : vector<8x2048xf32>
    %cst_26 = arith.constant 0.000000e+00 : f32
    %48 = vector.shape_cast %5 : vector<1x2048xi1> to vector<1x2048xi1>
    %49 = vector.broadcast %48 : vector<1x2048xi1> to vector<8x2048xi1>
    %50 = vector.broadcast %cst_26 : f32 to vector<8x2048xf32>
    %51 = arith.select %49, %47, %50 : vector<8x2048xi1>, vector<8x2048xf32>
    %cst_27 = arith.constant -1.000000e+05 : f32
    %52 = vector.shape_cast %5 : vector<1x2048xi1> to vector<1x2048xi1>
    %53 = vector.broadcast %52 : vector<1x2048xi1> to vector<8x2048xi1>
    %54 = vector.broadcast %cst_27 : f32 to vector<8x2048xf32>
    %55 = arith.select %53, %42, %54 : vector<8x2048xi1>, vector<8x2048xf32>
    %56 = math.exp %55 : vector<8x2048xf32>
    %c3_i32_28 = arith.constant 3 : i32
    %57 = vector.broadcast %c3_i32_28 : i32 to vector<8x2048xi32>
    %58 = arith.cmpi slt, %37, %57 : vector<8x2048xi32>
    %59 = arith.select %58, %51, %56 : vector<8x2048xi1>, vector<8x2048xf32>
    %c0_29 = arith.constant 0 : index
    %c0_30 = arith.constant 0 : index
    %60 = vector.load %arg9[%c0_29, %c0_30] : memref<8x2048xf32, #tpu.memory_space<vmem>>, vector<8x2048xf32>
    tpu.vector_store %arg9[%c0_29, %c0_30], %59 {strides = array<i32>} : memref<8x2048xf32, #tpu.memory_space<vmem>>, vector<8x2048xf32>,
    return
  }
  func.func @transform_0(%arg0: i32) -> (i32, i32) {
    %c0_i32 = arith.constant 0 : i32
    %c0_i32_0 = arith.constant 0 : i32
    return %c0_i32, %arg0 : i32, i32
  }
  func.func @transform_1(%arg0: i32) -> (i32, i32) {
    %c0_i32 = arith.constant 0 : i32
    %c0_i32_0 = arith.constant 0 : i32
    return %c0_i32, %arg0 : i32, i32
  }
  func.func @transform_2(%arg0: i32) -> (i32, i32) {
    %c0_i32 = arith.constant 0 : i32
    %c0_i32_0 = arith.constant 0 : i32
    %c0_i32_1 = arith.constant 0 : i32
    return %c0_i32, %c0_i32_0 : i32, i32
  }
  func.func @transform_3(%arg0: i32) -> (i32, i32) {
    %c0_i32 = arith.constant 0 : i32
    %c0_i32_0 = arith.constant 0 : i32
    %c0_i32_1 = arith.constant 0 : i32
    return %c0_i32, %c0_i32_0 : i32, i32
  }
  func.func @transform_4(%arg0: i32) -> (i32, i32) {
    %c0_i32 = arith.constant 0 : i32
    %c0_i32_0 = arith.constant 0 : i32
    %c0_i32_1 = arith.constant 0 : i32
    return %c0_i32, %c0_i32_0 : i32, i32
  }
  func.func @transform_5(%arg0: i32) -> (i32, i32) {
    %c0_i32 = arith.constant 0 : i32
    %c0_i32_0 = arith.constant 0 : i32
    %c0_i32_1 = arith.constant 0 : i32
    return %c0_i32, %c0_i32_0 : i32, i32
  }
  func.func @transform_6(%arg0: i32) -> (i32, i32) {
    %c0_i32 = arith.constant 0 : i32
    %c0_i32_0 = arith.constant 0 : i32
    %c0_i32_1 = arith.constant 0 : i32
    return %c0_i32, %c0_i32_0 : i32, i32
  }
  func.func @transform_7(%arg0: i32) -> (i32, i32) {
    %c0_i32 = arith.constant 0 : i32
    %c0_i32_0 = arith.constant 0 : i32
    %c0_i32_1 = arith.constant 0 : i32
    return %c0_i32, %c0_i32_0 : i32, i32
  }
  func.func @transform_8(%arg0: i32) -> (i32, i32) {
    %c0_i32 = arith.constant 0 : i32
    %c0_i32_0 = arith.constant 0 : i32
    return %c0_i32, %arg0 : i32, i32
  }
}

</mosaic_0001>

<bundles_post_ra>
// kernel: simplified_ngp_forward.1
= control target key start
LH: loop header
LB: loop body
LE: loop exit
PB: predicated region body
PF: predicated region fallthrough
CT: control target
= control target key end

     0   :  { %s5658_s27 = smov 0   ;;  %s5660_s28 = smov 0   ;;  %s7398_s0 = inlined_call_operand.vmem [shape: bf16[32,4096], index: 0, kind: input, shape index: {}]   ;;  %s7399_s1 = inlined_call_operand.vmem [shape: bf16[32,4096], index: 1, kind: input, shape index: {}]   ;;  %s7400_s2 = inlined_call_operand.vmem [shape: bf16[64,32], index: 2, kind: input, shape index: {}]   ;;  %s7401_s3 = inlined_call_operand.vmem [shape: bf16[72,64], index: 3, kind: input, shape index: {}]   ;;  %s7402_s4 = inlined_call_operand.vmem [shape: bf16[72,32], index: 4, kind: input, shape index: {}]   ;;  %s7403_s5 = inlined_call_operand.vmem [shape: bf16[64,64], index: 5, kind: input, shape index: {}]   ;;  %s7404_s6 = inlined_call_operand.vmem [shape: bf16[8,64], index: 6, kind: input, shape index: {}]   ;;  %s7405_s7 = inlined_call_operand.vmem [shape: f32[64,8], index: 7, kind: input, shape index: {}]   ;;  %s7406_s8 = inlined_call_operand.vmem [shape: f32[8,4096], index: 8, kind: output, shape index: {}]  }
   0x1   :  { %s5662_s29 = smov 0  }
   0x2 LB: > { %s4994_s30 = sadd.s32 4294967295, %s5608_s29   ;;  %s5675_s9 = sadd.s32 1, %s5608_s29   ;;  %s5608_s29 = sphi %s5662_s29, %s7458_s29   ;;  %s5604_s28 = sphi %s5660_s28, %s7457_s28   ;;  %s5600_s27 = sphi %s5658_s27, %s7456_s27  }
   0x3   : > { %s22_s10 = ssub.s32 %s5608_s29, %s5675_s9  ;;  %s25_s11 = sadd.s32 1, %s5604_s28 }
   0x4   : > { %p23_p0 = scmp.eq.s32.totalorder %s22_s10, 0  ;;  %p32_p1 = scmp.ne.s32.totalorder %s5604_s28, %s5600_s27 }
   0x5   : > { %p33_p2 = scmp.eq.s32.totalorder %s5608_s29, 0  ;;  %p4997_p4 = scmp.ge.s32.totalorder %s5608_s29, 2 }
   0x6   : > { %s5684_s12 = scalar_select %p23_p0, %s5604_s28, %s25_s11  }
   0x7   : > { %p5686_p3 = por %p33_p2, %p32_p1  ;;  %254 = sbr.rel (%p4997_p4) target bundleno = 54 (0x36), region = 40 }
   0xe   : > { %257 = sbr.rel (!%p5686_p3) target bundleno = 34 (0x22), region = 44  ;;  %s259_s14 = sand.u32 (%p5686_p3), 1, %s5604_s28  }
   0xf   : > { %s5261_s15 = sshll.u32 (%p5686_p3), %s5608_s29, 6  ;;  %s4998_s16 = sshll.u32 (%p5686_p3), %s259_s14, 8 }
  0x10   : > { %s5698_s19 = scalar_lea.vmem (%p5686_p3), %s7398_s0, %s5261_s15  ;;  %s5703_s20 = scalar_lea.vmem (%p5686_p3), [#allocation2], %s4998_s16 }
  0x11   : > { %v277_v0 = vld [vmem:[%s5698_s19] sm:$0xff] (%p5686_p3)  ;;  %v279_v1 = vld [vmem:[%s5698_s19 + $0x8] sm:$0xff] (%p5686_p3)  ;;  %v281_v2 = vld [vmem:[%s5698_s19 + $0x10] sm:$0xff] (%p5686_p3) }
  0x12   : > { %278 = vst [vmem:[%s5703_s20] sm:$0xff] (%p5686_p3), %v277_v0  ;;  %280 = vst [vmem:[%s5703_s20 + $0x8] sm:$0xff] (%p5686_p3), %v279_v1  ;;  %v283_v3 = vld [vmem:[%s5698_s19 + $0x18] sm:$0xff] (%p5686_p3)  ;;  %v285_v4 = vld [vmem:[%s5698_s19 + $0x20] sm:$0xff] (%p5686_p3) }
  0x13   : > { %282 = vst [vmem:[%s5703_s20 + $0x10] sm:$0xff] (%p5686_p3), %v281_v2  ;;  %v287_v5 = vld [vmem:[%s5698_s19 + $0x28] sm:$0xff] (%p5686_p3)  ;;  %284 = vst [vmem:[%s5703_s20 + $0x18] sm:$0xff] (%p5686_p3), %v283_v3  ;;  %v289_v6 = vld [vmem:[%s5698_s19 + $0x30] sm:$0xff] (%p5686_p3) }
  0x14   : > { %286 = vst [vmem:[%s5703_s20 + $0x20] sm:$0xff] (%p5686_p3), %v285_v4  ;;  %288 = vst [vmem:[%s5703_s20 + $0x28] sm:$0xff] (%p5686_p3), %v287_v5  ;;  %v291_v7 = vld [vmem:[%s5698_s19 + $0x38] sm:$0xff] (%p5686_p3)  ;;  %v293_v8 = vld [vmem:[%s5698_s19 + $0x80] sm:$0xff] (%p5686_p3) }
  0x15   : > { %290 = vst [vmem:[%s5703_s20 + $0x30] sm:$0xff] %v289_v6  ;;  %292 = vst [vmem:[%s5703_s20 + $0x38] sm:$0xff] %v291_v7  ;;  %v295_v9 = vld [vmem:[%s5698_s19 + $0x88] sm:$0xff]  ;;  %v297_v10 = vld [vmem:[%s5698_s19 + $0x90] sm:$0xff] }
  0x16   : > { %294 = vst [vmem:[%s5703_s20 + $0x40] sm:$0xff] %v293_v8  ;;  %v299_v11 = vld [vmem:[%s5698_s19 + $0x98] sm:$0xff]  ;;  %296 = vst [vmem:[%s5703_s20 + $0x48] sm:$0xff] %v295_v9  ;;  %v301_v12 = vld [vmem:[%s5698_s19 + $0xa0] sm:$0xff] }
  0x17   : > { %298 = vst [vmem:[%s5703_s20 + $0x50] sm:$0xff] %v297_v10  ;;  %300 = vst [vmem:[%s5703_s20 + $0x58] sm:$0xff] %v299_v11  ;;  %v303_v13 = vld [vmem:[%s5698_s19 + $0xa8] sm:$0xff]  ;;  %v305_v14 = vld [vmem:[%s5698_s19 + $0xb0] sm:$0xff] }
  0x18   : > { %302 = vst [vmem:[%s5703_s20 + $0x60] sm:$0xff] %v301_v12  ;;  %304 = vst [vmem:[%s5703_s20 + $0x68] sm:$0xff] %v303_v13  ;;  %v307_v15 = vld [vmem:[%s5698_s19 + $0xb8] sm:$0xff]  ;;  %v309_v16 = vld [vmem:[%s5698_s19 + $0x100] sm:$0xff] }
  0x19   : > { %306 = vst [vmem:[%s5703_s20 + $0x70] sm:$0xff] %v305_v14  ;;  %v311_v17 = vld [vmem:[%s5698_s19 + $0x108] sm:$0xff]  ;;  %308 = vst [vmem:[%s5703_s20 + $0x78] sm:$0xff] %v307_v15  ;;  %v313_v18 = vld [vmem:[%s5698_s19 + $0x110] sm:$0xff] }
  0x1a   : > { %310 = vst [vmem:[%s5703_s20 + $0x80] sm:$0xff] %v309_v16  ;;  %312 = vst [vmem:[%s5703_s20 + $0x88] sm:$0xff] %v311_v17  ;;  %v315_v19 = vld [vmem:[%s5698_s19 + $0x118] sm:$0xff]  ;;  %v317_v20 = vld [vmem:[%s5698_s19 + $0x120] sm:$0xff] }
  0x1b   : > { %314 = vst [vmem:[%s5703_s20 + $0x90] sm:$0xff] %v313_v18  ;;  %316 = vst [vmem:[%s5703_s20 + $0x98] sm:$0xff] %v315_v19  ;;  %v319_v21 = vld [vmem:[%s5698_s19 + $0x128] sm:$0xff]  ;;  %v321_v22 = vld [vmem:[%s5698_s19 + $0x130] sm:$0xff] }
  0x1c   : > { %318 = vst [vmem:[%s5703_s20 + $0xa0] sm:$0xff] %v317_v20  ;;  %v323_v23 = vld [vmem:[%s5698_s19 + $0x138] sm:$0xff]  ;;  %320 = vst [vmem:[%s5703_s20 + $0xa8] sm:$0xff] %v319_v21  ;;  %v325_v24 = vld [vmem:[%s5698_s19 + $0x180] sm:$0xff] }
  0x1d   : > { %322 = vst [vmem:[%s5703_s20 + $0xb0] sm:$0xff] %v321_v22  ;;  %324 = vst [vmem:[%s5703_s20 + $0xb8] sm:$0xff] %v323_v23  ;;  %v327_v25 = vld [vmem:[%s5698_s19 + $0x188] sm:$0xff]  ;;  %v329_v26 = vld [vmem:[%s5698_s19 + $0x190] sm:$0xff] }
  0x1e   : > { %326 = vst [vmem:[%s5703_s20 + $0xc0] sm:$0xff] %v325_v24  ;;  %328 = vst [vmem:[%s5703_s20 + $0xc8] sm:$0xff] %v327_v25  ;;  %v331_v27 = vld [vmem:[%s5698_s19 + $0x198] sm:$0xff]  ;;  %v333_v28 = vld [vmem:[%s5698_s19 + $0x1a0] sm:$0xff] }
  0x1f   : > { %330 = vst [vmem:[%s5703_s20 + $0xd0] sm:$0xff] %v329_v26  ;;  %v335_v29 = vld [vmem:[%s5698_s19 + $0x1a8] sm:$0xff]  ;;  %332 = vst [vmem:[%s5703_s20 + $0xd8] sm:$0xff] %v331_v27  ;;  %v337_v30 = vld [vmem:[%s5698_s19 + $0x1b0] sm:$0xff] }
  0x20   : > { %334 = vst [vmem:[%s5703_s20 + $0xe0] sm:$0xff] %v333_v28  ;;  %336 = vst [vmem:[%s5703_s20 + $0xe8] sm:$0xff] %v335_v29  ;;  %v339_v31 = vld [vmem:[%s5698_s19 + $0x1b8] sm:$0xff] }
  0x21   : > { %338 = vst [vmem:[%s5703_s20 + $0xf0] sm:$0xff] %v337_v30  ;;  %340 = vst [vmem:[%s5703_s20 + $0xf8] sm:$0xff] %v339_v31 }
  0x22 PF: > { %346 = sbr.rel (!%p5686_p3) target bundleno = 54 (0x36), region = 67  ;;  %s348_s21 = sand.u32 (%p5686_p3), 1, %s5604_s28  }
  0x23   : > { %s5262_s22 = sshll.u32 (%p5686_p3), %s5608_s29, 6  ;;  %s5001_s23 = sshll.u32 (%p5686_p3), %s348_s21, 8 }
  0x24   : > { %s5773_s26 = scalar_lea.vmem (%p5686_p3), %s7399_s1, %s5262_s22  ;;  %s5778_s10 = scalar_lea.vmem (%p5686_p3), [#allocation3], %s5001_s23 }
  0x25   : > { %v366_v32 = vld [vmem:[%s5773_s26] sm:$0xff] (%p5686_p3)  ;;  %v368_v33 = vld [vmem:[%s5773_s26 + $0x8] sm:$0xff] (%p5686_p3)  ;;  %v370_v34 = vld [vmem:[%s5773_s26 + $0x10] sm:$0xff] (%p5686_p3) }
  0x26   : > { %367 = vst [vmem:[%s5778_s10] sm:$0xff] (%p5686_p3), %v366_v32  ;;  %369 = vst [vmem:[%s5778_s10 + $0x8] sm:$0xff] (%p5686_p3), %v368_v33  ;;  %v372_v35 = vld [vmem:[%s5773_s26 + $0x18] sm:$0xff] (%p5686_p3)  ;;  %v374_v36 = vld [vmem:[%s5773_s26 + $0x20] sm:$0xff] (%p5686_p3) }
  0x27   : > { %371 = vst [vmem:[%s5778_s10 + $0x10] sm:$0xff] (%p5686_p3), %v370_v34  ;;  %v376_v37 = vld [vmem:[%s5773_s26 + $0x28] sm:$0xff] (%p5686_p3)  ;;  %373 = vst [vmem:[%s5778_s10 + $0x18] sm:$0xff] (%p5686_p3), %v372_v35  ;;  %v378_v38 = vld [vmem:[%s5773_s26 + $0x30] sm:$0xff] (%p5686_p3) }
  0x28   : > { %375 = vst [vmem:[%s5778_s10 + $0x20] sm:$0xff] (%p5686_p3), %v374_v36  ;;  %377 = vst [vmem:[%s5778_s10 + $0x28] sm:$0xff] (%p5686_p3), %v376_v37  ;;  %v380_v39 = vld [vmem:[%s5773_s26 + $0x38] sm:$0xff] (%p5686_p3)  ;;  %v382_v40 = vld [vmem:[%s5773_s26 + $0x80] sm:$0xff] (%p5686_p3) }
  0x29   : > { %379 = vst [vmem:[%s5778_s10 + $0x30] sm:$0xff] %v378_v38  ;;  %381 = vst [vmem:[%s5778_s10 + $0x38] sm:$0xff] %v380_v39  ;;  %v384_v41 = vld [vmem:[%s5773_s26 + $0x88] sm:$0xff]  ;;  %v386_v42 = vld [vmem:[%s5773_s26 + $0x90] sm:$0xff] }
  0x2a   : > { %383 = vst [vmem:[%s5778_s10 + $0x40] sm:$0xff] %v382_v40  ;;  %v388_v43 = vld [vmem:[%s5773_s26 + $0x98] sm:$0xff]  ;;  %385 = vst [vmem:[%s5778_s10 + $0x48] sm:$0xff] %v384_v41  ;;  %v390_v44 = vld [vmem:[%s5773_s26 + $0xa0] sm:$0xff] }
  0x2b   : > { %387 = vst [vmem:[%s5778_s10 + $0x50] sm:$0xff] %v386_v42  ;;  %389 = vst [vmem:[%s5778_s10 + $0x58] sm:$0xff] %v388_v43  ;;  %v392_v45 = vld [vmem:[%s5773_s26 + $0xa8] sm:$0xff]  ;;  %v394_v46 = vld [vmem:[%s5773_s26 + $0xb0] sm:$0xff] }
  0x2c   : > { %391 = vst [vmem:[%s5778_s10 + $0x60] sm:$0xff] %v390_v44  ;;  %393 = vst [vmem:[%s5778_s10 + $0x68] sm:$0xff] %v392_v45  ;;  %v396_v47 = vld [vmem:[%s5773_s26 + $0xb8] sm:$0xff]  ;;  %v398_v48 = vld [vmem:[%s5773_s26 + $0x100] sm:$0xff] }
  0x2d   : > { %395 = vst [vmem:[%s5778_s10 + $0x70] sm:$0xff] %v394_v46  ;;  %v400_v49 = vld [vmem:[%s5773_s26 + $0x108] sm:$0xff]  ;;  %397 = vst [vmem:[%s5778_s10 + $0x78] sm:$0xff] %v396_v47  ;;  %v402_v50 = vld [vmem:[%s5773_s26 + $0x110] sm:$0xff] }
  0x2e   : > { %399 = vst [vmem:[%s5778_s10 + $0x80] sm:$0xff] %v398_v48  ;;  %401 = vst [vmem:[%s5778_s10 + $0x88] sm:$0xff] %v400_v49  ;;  %v404_v51 = vld [vmem:[%s5773_s26 + $0x118] sm:$0xff]  ;;  %v406_v52 = vld [vmem:[%s5773_s26 + $0x120] sm:$0xff] }
  0x2f   : > { %403 = vst [vmem:[%s5778_s10 + $0x90] sm:$0xff] %v402_v50  ;;  %405 = vst [vmem:[%s5778_s10 + $0x98] sm:$0xff] %v404_v51  ;;  %v408_v53 = vld [vmem:[%s5773_s26 + $0x128] sm:$0xff]  ;;  %v410_v54 = vld [vmem:[%s5773_s26 + $0x130] sm:$0xff] }
  0x30   : > { %407 = vst [vmem:[%s5778_s10 + $0xa0] sm:$0xff] %v406_v52  ;;  %v412_v55 = vld [vmem:[%s5773_s26 + $0x138] sm:$0xff]  ;;  %409 = vst [vmem:[%s5778_s10 + $0xa8] sm:$0xff] %v408_v53  ;;  %v414_v56 = vld [vmem:[%s5773_s26 + $0x180] sm:$0xff] }
  0x31   : > { %411 = vst [vmem:[%s5778_s10 + $0xb0] sm:$0xff] %v410_v54  ;;  %413 = vst [vmem:[%s5778_s10 + $0xb8] sm:$0xff] %v412_v55  ;;  %v416_v57 = vld [vmem:[%s5773_s26 + $0x188] sm:$0xff]  ;;  %v418_v58 = vld [vmem:[%s5773_s26 + $0x190] sm:$0xff] }
  0x32   : > { %415 = vst [vmem:[%s5778_s10 + $0xc0] sm:$0xff] %v414_v56  ;;  %417 = vst [vmem:[%s5778_s10 + $0xc8] sm:$0xff] %v416_v57  ;;  %v420_v59 = vld [vmem:[%s5773_s26 + $0x198] sm:$0xff]  ;;  %v422_v60 = vld [vmem:[%s5773_s26 + $0x1a0] sm:$0xff] }
  0x33   : > { %419 = vst [vmem:[%s5778_s10 + $0xd0] sm:$0xff] %v418_v58  ;;  %v424_v61 = vld [vmem:[%s5773_s26 + $0x1a8] sm:$0xff]  ;;  %421 = vst [vmem:[%s5778_s10 + $0xd8] sm:$0xff] %v420_v59  ;;  %v426_v62 = vld [vmem:[%s5773_s26 + $0x1b0] sm:$0xff] }
  0x34   : > { %423 = vst [vmem:[%s5778_s10 + $0xe0] sm:$0xff] %v422_v60  ;;  %425 = vst [vmem:[%s5778_s10 + $0xe8] sm:$0xff] %v424_v61  ;;  %v428_v63 = vld [vmem:[%s5773_s26 + $0x1b8] sm:$0xff] }
  0x35   : > { %427 = vst [vmem:[%s5778_s10 + $0xf0] sm:$0xff] %v426_v62  ;;  %429 = vst [vmem:[%s5778_s10 + $0xf8] sm:$0xff] %v428_v63 }
  0x36 PF: > { %p5004_p5 = scmp.ge.s32.totalorder %s5608_s29, 1  ;;  %p434_p6 = scmp.lt.s32.totalorder %s5608_s29, 3 }
  0x38   : > { %p435_p7 = pnand %p5004_p5, %p434_p6 }
  0x39   : > { %s441_s11 = sand.u32 (!%p435_p7), 1, %s5600_s27   ;;  %v5610_v0 = vmov (!%p435_p7), 0   ;;  %v5868_v23 = vld [vmem:[%s7400_s2] sm:$0xff] (!%p435_p7)   ;;  %vm826_vm0 = vcmask (!%p435_p7), 261120   ;;  %v592_v40 = vld [vmem:[%s7405_s7 + $0x10] sm:$0xff] (!%p435_p7)  ;;  %v5905_v42 = vld [vmem:[%s7400_s2 + $0x8] sm:$0xff] (!%p435_p7)  }
  0x3a   : > { %438 = sbr.rel (%p435_p7) target bundleno = 1226 (0x4ca), region = 90  ;;  %s5844_s13 = sshll.u32 (!%p435_p7), %s441_s11, 8  ;;  %871 = vmatprep.mubr.bf16.mxu0 (!%p435_p7), %v5610_v0  ;;  %944 = vmatprep.mubr.bf16.mxu1 (!%p435_p7), %v5610_v0  ;;  %v590_v37 = vld [vmem:[%s7405_s7] sm:$0xff] (!%p435_p7)  ;;  %v591_v43 = vld [vmem:[%s7405_s7 + $0x8] sm:$0xff] (!%p435_p7)  ;;  %v593_v44 = vld [vmem:[%s7405_s7 + $0x18] sm:$0xff] (!%p435_p7)  ;;  %vm2502_vm1 = vcmask (!%p435_p7), 523264  }
  0x3b   : > { %5450 = vset.pattern.permute.xlu0 (!%p435_p7), %v5610_v0  ;;  %5451 = vset.pattern.permute.xlu1 (!%p435_p7), %v5610_v0  ;;  %s5851_s14 = scalar_lea.vmem (!%p435_p7), [#allocation2], %s5844_s13  ;;  %v594_v45 = vld [vmem:[%s7405_s7 + $0x20] sm:$0xff] (!%p435_p7)  ;;  %v5925_v46 = vld [vmem:[%s7400_s2 + $0x10] sm:$0xff] (!%p435_p7)   ;;  %v595_v47 = vld [vmem:[%s7405_s7 + $0x28] sm:$0xff] (!%p435_p7)  ;;  %s5994_s23 = scalar_lea.vmem (!%p435_p7), [#allocation3], %s5844_s13 }
  0x3c   : > { %v494_v1 = vld [vmem:[%s5851_s14] sm:$0xff] (!%p435_p7)  ;;  %v495_v3 = vld [vmem:[%s5851_s14 + $0x8] sm:$0xff] (!%p435_p7)  ;;  %v496_v14 = vld [vmem:[%s5851_s14 + $0x10] sm:$0xff] (!%p435_p7)  ;;  %608 = vperm.xlu0 (!%p435_p7), %5450, %v590_v37   ;;  %618 = vperm.xlu1 (!%p435_p7), %5451, %v592_v40   ;;  %s5007_s21 = sshll.u32 (!%p435_p7), %s4994_s30, 4 }
  0x3d   : > { %v502_v2 = vld [vmem:[%s5851_s14 + $0x40] sm:$0xff] (!%p435_p7)  ;;  %v503_v5 = vld [vmem:[%s5851_s14 + $0x48] sm:$0xff] (!%p435_p7)  ;;  %v504_v16 = vld [vmem:[%s5851_s14 + $0x50] sm:$0xff] (!%p435_p7)  ;;  %p488_p8 = scmp.lt.s32.totalorder (!%p435_p7), %s5007_s21, 31 }
  0x3e   : > { %v5014_v4 = vcombine.high (!%p435_p7), %v494_v1, %v502_v2  ;;  %v5013_v6 = vcombine.low (!%p435_p7), %v494_v1, %v502_v2  ;;  %v510_v7 = vld [vmem:[%s5851_s14 + $0x80] sm:$0xff] (!%p435_p7)  ;;  %v5016_v9 = vcombine.high (!%p435_p7), %v495_v3, %v503_v5  ;;  %v5015_v10 = vcombine.low (!%p435_p7), %v495_v3, %v503_v5  ;;  %v511_v12 = vld [vmem:[%s5851_s14 + $0x88] sm:$0xff] (!%p435_p7)  ;;  %v497_v17 = vld [vmem:[%s5851_s14 + $0x18] sm:$0xff] (!%p435_p7) }
  0x3f   : > { %v518_v8 = vld [vmem:[%s5851_s14 + $0xc0] sm:$0xff] (!%p435_p7)  ;;  %v519_v13 = vld [vmem:[%s5851_s14 + $0xc8] sm:$0xff] (!%p435_p7)  ;;  %v505_v18 = vld [vmem:[%s5851_s14 + $0x58] sm:$0xff] (!%p435_p7)  ;;  %v5018_v21 = vcombine.high (!%p435_p7), %v496_v14, %v504_v16  ;;  %v5017_v26 = vcombine.low (!%p435_p7), %v496_v14, %v504_v16 }
  0x40   : > { %v5030_v11 = vcombine.high (!%p435_p7), %v510_v7, %v518_v8  ;;  %839 = vmatprep.subr.bf16.mxu0 (!%p435_p7), %v5014_v4  ;;  %v5032_v15 = vcombine.high (!%p435_p7), %v511_v12, %v519_v13  ;;  %912 = vmatprep.subr.bf16.mxu1 (!%p435_p7), %v5016_v9  ;;  %v5029_v19 = vcombine.low (!%p435_p7), %v510_v7, %v518_v8  ;;  %v512_v24 = vld [vmem:[%s5851_s14 + $0x90] sm:$0xff] (!%p435_p7)  ;;  %v513_v27 = vld [vmem:[%s5851_s14 + $0x98] sm:$0xff] (!%p435_p7)  ;;  %v5875_v31 = vld [vmem:[%s5851_s14 + $0x20] sm:$0xff] (!%p435_p7) }
  0x41   : > { %840 = vmatpush1.bf16.msra.mxu0 %v5013_v6  ;;  %913 = vmatpush1.bf16.msra.mxu1 %v5015_v10  ;;  %v5031_v20 = vcombine.low %v511_v12, %v519_v13  ;;  %v5020_v22 = vcombine.high %v497_v17, %v505_v18  ;;  %v520_v25 = vld [vmem:[%s5851_s14 + $0xd0] sm:$0xff]  ;;  %v521_v28 = vld [vmem:[%s5851_s14 + $0xd8] sm:$0xff]  ;;  %v5019_v29 = vcombine.low %v497_v17, %v505_v18  ;;  %v5878_v32 = vld [vmem:[%s5851_s14 + $0x60] sm:$0xff]  ;;  %s7460_s21 = smov (!%p488_p8, %s5007_s21), 31 }
  0x42   : > { %841 = vmatprep.subr.bf16.mxu0 %v5030_v11  ;;  %914 = vmatprep.subr.bf16.mxu1 %v5032_v15  ;;  %v5034_v30 = vcombine.high %v512_v24, %v520_v25  ;;  %v5036_v33 = vcombine.high %v513_v27, %v521_v28  ;;  %v5883_v34 = vld [vmem:[%s5851_s14 + $0x28] sm:$0xff]  ;;  %v5033_v36 = vcombine.low %v512_v24, %v520_v25  ;;  %v596_v48 = vld [vmem:[%s7405_s7 + $0x30] sm:$0xff]  ;;  %v597_v49 = vld [vmem:[%s7405_s7 + $0x38] sm:$0xff]  ;;  %s5008_s29 = sshll.u32 %s7460_s21, 3 }
  0x43   : > { %v5886_v35 = vld [vmem:[%s5851_s14 + $0x68] sm:$0xff]  ;;  %v5035_v38 = vcombine.low %v513_v27, %v521_v28  ;;  %v5022_v39 = vcombine.high %v5875_v31, %v5878_v32  ;;  %613 = vperm.xlu0 %5450, %v591_v43   ;;  %623 = vperm.xlu1 %5451, %v593_v44   ;;  %v5945_v50 = vld [vmem:[%s7400_s2 + $0x18] sm:$0xff]   ;;  %v514_v51 = vld [vmem:[%s5851_s14 + $0xa0] sm:$0xff]  ;;  %v5021_v53 = vcombine.low %v5875_v31, %v5878_v32  ;;  %s7108_s13 = scalar_lea.vmem %s7406_s8, %s5008_s29 }
  0x44   : > { %v5024_v41 = vcombine.high %v5883_v34, %v5886_v35  ;;  %v522_v52 = vld [vmem:[%s5851_s14 + $0xe0] sm:$0xff]  ;;  %v515_v54 = vld [vmem:[%s5851_s14 + $0xa8] sm:$0xff]  ;;  %v5023_v56 = vcombine.low %v5883_v34, %v5886_v35  ;;  %v500_v58 = vld [vmem:[%s5851_s14 + $0x30] sm:$0xff] }
  0x45   : > { %842 = vmatpush1.bf16.msra.mxu0 %v5029_v19  ;;  %915 = vmatpush1.bf16.msra.mxu1 %v5031_v20  ;;  %v523_v55 = vld [vmem:[%s5851_s14 + $0xe8] sm:$0xff]  ;;  %v5038_v57 = vcombine.high %v514_v51, %v522_v52  ;;  %v508_v59 = vld [vmem:[%s5851_s14 + $0x70] sm:$0xff]  ;;  %v501_v61 = vld [vmem:[%s5851_s14 + $0x38] sm:$0xff]  ;;  %v5037_v63 = vcombine.low %v514_v51, %v522_v52 }
  0x46   : > { %985 = vmatprep.subr.bf16.mxu0 %v5018_v21  ;;  %1058 = vmatprep.subr.bf16.mxu1 %v5020_v22  ;;  %v5040_v60 = vcombine.high %v515_v54, %v523_v55  ;;  %v509_v62 = vld [vmem:[%s5851_s14 + $0x78] sm:$0xff]  ;;  %v5039_v1 = vcombine.low %v515_v54, %v523_v55  ;;  %v5026_v2 = vcombine.high %v500_v58, %v508_v59  ;;  %v516_v4 = vld [vmem:[%s5851_s14 + $0xb0] sm:$0xff]  ;;  %v526_v11 = vld [vmem:[%s5994_s23] sm:$0xff] }
  0x47   : > { %628 = vperm.xlu0 %5450, %v594_v45   ;;  %633 = vperm.xlu1 %5451, %v595_v47   ;;  %v5028_v3 = vcombine.high %v501_v61, %v509_v62  ;;  %v524_v5 = vld [vmem:[%s5851_s14 + $0xf0] sm:$0xff]  ;;  %v5025_v6 = vcombine.low %v500_v58, %v508_v59  ;;  %v517_v7 = vld [vmem:[%s5851_s14 + $0xb8] sm:$0xff]  ;;  %v5027_v9 = vcombine.low %v501_v61, %v509_v62  ;;  %v534_v12 = vld [vmem:[%s5994_s23 + $0x40] sm:$0xff] }
  0x48   : > { %5045 = vmatmul.mubr.msk.bf16.vlgmr.msra.gmra.mrb[0].mxu0 %vm826_vm0, %v5868_v23  ;;  %5049 = vmatmul.mubr.msk.bf16.vlgmr.msra.gmra.mrb[0].mxu1 %vm826_vm0, %v5868_v23  ;;  %v525_v8 = vld [vmem:[%s5851_s14 + $0xf8] sm:$0xff]  ;;  %v5042_v10 = vcombine.high %v516_v4, %v524_v5  ;;  %v527_v14 = vld [vmem:[%s5994_s23 + $0x8] sm:$0xff]  ;;  %v5041_v16 = vcombine.low %v516_v4, %v524_v5  ;;  %v5083_v18 = vcombine.high %v526_v11, %v534_v12  ;;  %v542_v20 = vld [vmem:[%s5994_s23 + $0x80] sm:$0xff] }
  0x49   : > { %986 = vmatpush1.bf16.msra.mxu0 %v5017_v26  ;;  %1059 = vmatpush1.bf16.msra.mxu1 %v5019_v29  ;;  %v5044_v13 = vcombine.high %v517_v7, %v525_v8  ;;  %v535_v15 = vld [vmem:[%s5994_s23 + $0x48] sm:$0xff]  ;;  %v5043_v17 = vcombine.low %v517_v7, %v525_v8  ;;  %v550_v21 = vld [vmem:[%s5994_s23 + $0xc0] sm:$0xff]  ;;  %v5082_v22 = vcombine.low %v526_v11, %v534_v12  ;;  %v528_v28 = vld [vmem:[%s5994_s23 + $0x10] sm:$0xff] }
  0x4a   : > { %881 = vmatprep.mubr.bf16.mxu0 %v5610_v0  ;;  %954 = vmatprep.mubr.bf16.mxu1 %v5610_v0  ;;  %v5085_v19 = vcombine.high %v527_v14, %v535_v15  ;;  %v543_v24 = vld [vmem:[%s5994_s23 + $0x88] sm:$0xff]  ;;  %v5084_v26 = vcombine.low %v527_v14, %v535_v15  ;;  %v5099_v27 = vcombine.high %v542_v20, %v550_v21  ;;  %v536_v29 = vld [vmem:[%s5994_s23 + $0x50] sm:$0xff]  ;;  %v529_v31 = vld [vmem:[%s5994_s23 + $0x18] sm:$0xff] }
  0x4b   : > { %987 = vmatprep.subr.bf16.mxu0 %v5034_v30  ;;  %1060 = vmatprep.subr.bf16.mxu1 %v5036_v33  ;;  %v551_v25 = vld [vmem:[%s5994_s23 + $0xc8] sm:$0xff]  ;;  %v537_v32 = vld [vmem:[%s5994_s23 + $0x58] sm:$0xff]  ;;  %v5098_v33 = vcombine.low %v542_v20, %v550_v21  ;;  %v5087_v35 = vcombine.high %v528_v28, %v536_v29  ;;  %v544_v37 = vld [vmem:[%s5994_s23 + $0x90] sm:$0xff] }
  0x4c   : > { %638 = vperm.xlu0 %5450, %v596_v48   ;;  %643 = vperm.xlu1 %5451, %v597_v49   ;;  %v5101_v30 = vcombine.high %v543_v24, %v551_v25  ;;  %v5100_v34 = vcombine.low %v543_v24, %v551_v25  ;;  %v545_v40 = vld [vmem:[%s5994_s23 + $0x98] sm:$0xff]  ;;  %v530_v44 = vld [vmem:[%s5994_s23 + $0x20] sm:$0xff]  ;;  %v531_v47 = vld [vmem:[%s5994_s23 + $0x28] sm:$0xff] }
  0x4d   : > { %988 = vmatpush1.bf16.msra.mxu0 %v5033_v36  ;;  %1061 = vmatpush1.bf16.msra.mxu1 %v5035_v38  ;;  %v5089_v36 = vcombine.high %v529_v31, %v537_v32  ;;  %v552_v38 = vld [vmem:[%s5994_s23 + $0xd0] sm:$0xff]  ;;  %v538_v45 = vld [vmem:[%s5994_s23 + $0x60] sm:$0xff]  ;;  %v539_v48 = vld [vmem:[%s5994_s23 + $0x68] sm:$0xff] }
  0x4e   : > { %1131 = vmatprep.subr.bf16.mxu0 %v5022_v39  ;;  %1204 = vmatprep.subr.bf16.mxu1 %v5024_v41  ;;  %v5086_v39 = vcombine.low %v528_v28, %v536_v29  ;;  %v553_v41 = vld [vmem:[%s5994_s23 + $0xd8] sm:$0xff]  ;;  %v5103_v43 = vcombine.high %v544_v37, %v552_v38  ;;  %v5102_v49 = vcombine.low %v544_v37, %v552_v38  ;;  %v6089_v54 = vld [vmem:[%s7402_s4 + $0x10] sm:$0xff]   ;;  %v554_v58 = vld [vmem:[%s5994_s23 + $0xe0] sm:$0xff] }
  0x4f   : > { %v5091_v51 = vcombine.high %v530_v44, %v538_v45  ;;  %v5093_v52 = vcombine.high %v531_v47, %v539_v48  ;;  %v6100_v55 = vld [vmem:[%s7402_s4 + $0x18] sm:$0xff]   ;;  %v5090_v59 = vcombine.low %v530_v44, %v538_v45  ;;  %v555_v61 = vld [vmem:[%s5994_s23 + $0xe8] sm:$0xff]  ;;  %v5092_v62 = vcombine.low %v531_v47, %v539_v48  ;;  %v556_v11 = vld [vmem:[%s5994_s23 + $0xf0] sm:$0xff] }
  0x50   : > { %5046 = vmatmul.mubr.msk.bf16.gmra.mrb[4].mxu0 %vm826_vm0, %v5905_v42  ;;  %5050 = vmatmul.mubr.msk.bf16.gmra.mrb[4].mxu1 %vm826_vm0, %v5905_v42  ;;  %v533_v4 = vld [vmem:[%s5994_s23 + $0x38] sm:$0xff] }
  0x51   : > { %891 = vmatprep.mubr.bf16.mxu0 %v5610_v0  ;;  %964 = vmatprep.mubr.bf16.mxu1 %v5610_v0  ;;  %v541_v5 = vld [vmem:[%s5994_s23 + $0x78] sm:$0xff] }
  0x52   : > { %v549_v14 = vld [vmem:[%s5994_s23 + $0xb8] sm:$0xff] }
  0x53   : > { %v557_v15 = vld [vmem:[%s5994_s23 + $0xf8] sm:$0xff] }
  0x54   : > { %v5112_v21 = vcombine.low %v549_v14, %v557_v15 }
  0x58   : > { %5047 = vmatmul.mubr.msk.bf16.gmra.mrb[8].mxu0 %vm826_vm0, %v5925_v46  ;;  %5051 = vmatmul.mubr.msk.bf16.gmra.mrb[8].mxu1 %vm826_vm0, %v5925_v46 }
  0x59   : > { %901 = vmatprep.mubr.bf16.mxu0 %v5610_v0  ;;  %974 = vmatprep.mubr.bf16.mxu1 %v5610_v0 }
  0x60   : > { %5048 = vmatmul.mubr.msk.bf16.gmra.mrb[12].mxu0 %vm826_vm0, %v5945_v50  ;;  %5052 = vmatmul.mubr.msk.bf16.gmra.mrb[12].mxu1 %vm826_vm0, %v5945_v50 }
  0x61   : > { %1017 = vmatprep.mubr.bf16.mxu0 %v5610_v0  ;;  %1090 = vmatprep.mubr.bf16.mxu1 %v5610_v0 }
  0x68   : > { %5053 = vmatmul.mubr.msk.bf16.vlgmr.msra.gmra.mrb[16].mxu0 %vm826_vm0, %v5868_v23  ;;  %5057 = vmatmul.mubr.msk.bf16.vlgmr.msra.gmra.mrb[16].mxu1 %vm826_vm0, %v5868_v23 }
  0x69   : > { %1132 = vmatpush1.bf16.msra.mxu0 %v5021_v53  ;;  %1205 = vmatpush1.bf16.msra.mxu1 %v5023_v56  ;;  %v6078_v53 = vld [vmem:[%s7402_s4 + $0x8] sm:$0xff]   ;;  %v6111_v56 = vld [vmem:[%s7402_s4 + $0x20] ss:$0 sps:$4 sm:$0xff]  }
  0x6a   : > { %1027 = vmatprep.mubr.bf16.mxu0 %v5610_v0  ;;  %1100 = vmatprep.mubr.bf16.mxu1 %v5610_v0 }
  0x6b   : > { %1133 = vmatprep.subr.bf16.mxu0 %v5038_v57  ;;  %1206 = vmatprep.subr.bf16.mxu1 %v5040_v60  ;;  %v546_v57 = vld [vmem:[%s5994_s23 + $0xa0] sm:$0xff]  ;;  %v547_v60 = vld [vmem:[%s5994_s23 + $0xa8] sm:$0xff] }
  0x6c   : > { %v5108_v7 = vcombine.low %v547_v60, %v555_v61 }
  0x6d   : > { %1134 = vmatpush1.bf16.msra.mxu0 %v5037_v63  ;;  %1207 = vmatpush1.bf16.msra.mxu1 %v5039_v1  ;;  %v5107_v63 = vcombine.high %v546_v57, %v554_v58  ;;  %v532_v1 = vld [vmem:[%s5994_s23 + $0x30] sm:$0xff] }
  0x6e   : > { %1277 = vmatprep.subr.bf16.mxu0 %v5026_v2  ;;  %1350 = vmatprep.subr.bf16.mxu1 %v5028_v3  ;;  %v540_v2 = vld [vmem:[%s5994_s23 + $0x70] sm:$0xff]  ;;  %v5109_v3 = vcombine.high %v547_v60, %v555_v61 }
  0x6f   : > { %v5095_v8 = vcombine.high %v532_v1, %v540_v2 }
  0x70   : > { %5054 = vmatmul.mubr.msk.bf16.gmra.mrb[20].mxu0 %vm826_vm0, %v5905_v42  ;;  %5058 = vmatmul.mubr.msk.bf16.gmra.mrb[20].mxu1 %vm826_vm0, %v5905_v42 }
  0x71   : > { %1037 = vmatprep.mubr.bf16.mxu0 %v5610_v0  ;;  %1110 = vmatprep.mubr.bf16.mxu1 %v5610_v0 }
  0x78   : > { %5055 = vmatmul.mubr.msk.bf16.gmra.mrb[24].mxu0 %vm826_vm0, %v5925_v46  ;;  %5059 = vmatmul.mubr.msk.bf16.gmra.mrb[24].mxu1 %vm826_vm0, %v5925_v46 }
  0x79   : > { %1047 = vmatprep.mubr.bf16.mxu0 %v5610_v0  ;;  %1120 = vmatprep.mubr.bf16.mxu1 %v5610_v0 }
  0x80   : > { %5056 = vmatmul.mubr.msk.bf16.gmra.mrb[28].mxu0 %vm826_vm0, %v5945_v50  ;;  %5060 = vmatmul.mubr.msk.bf16.gmra.mrb[28].mxu1 %vm826_vm0, %v5945_v50 }
  0x81   : > { %1163 = vmatprep.mubr.bf16.mxu0 %v5610_v0  ;;  %1236 = vmatprep.mubr.bf16.mxu1 %v5610_v0 }
  0x88   : > { %5061 = vmatmul.mubr.msk.bf16.vlgmr.msra.gmra.mrb[32].mxu0 %vm826_vm0, %v5868_v23  ;;  %5065 = vmatmul.mubr.msk.bf16.vlgmr.msra.gmra.mrb[32].mxu1 %vm826_vm0, %v5868_v23 }
  0x89   : > { %1278 = vmatpush1.bf16.msra.mxu0 %v5025_v6  ;;  %1351 = vmatpush1.bf16.msra.mxu1 %v5027_v9  ;;  %v5106_v6 = vcombine.low %v546_v57, %v554_v58  ;;  %v5097_v9 = vcombine.high %v533_v4, %v541_v5 }
  0x8a   : > { %1173 = vmatprep.mubr.bf16.mxu0 %v5610_v0  ;;  %1246 = vmatprep.mubr.bf16.mxu1 %v5610_v0 }
  0x8b   : > { %1279 = vmatprep.subr.bf16.mxu0 %v5042_v10  ;;  %1352 = vmatprep.subr.bf16.mxu1 %v5044_v13  ;;  %v548_v10 = vld [vmem:[%s5994_s23 + $0xb0] sm:$0xff]  ;;  %v5094_v13 = vcombine.low %v532_v1, %v540_v2 }
  0x8d   : > { %1280 = vmatpush1.bf16.msra.mxu0 %v5041_v16  ;;  %1353 = vmatpush1.bf16.msra.mxu1 %v5043_v17  ;;  %v5096_v16 = vcombine.low %v533_v4, %v541_v5  ;;  %v5111_v17 = vcombine.high %v548_v10, %v556_v11 }
  0x8e   : > { %1831 = vmatprep.subr.bf16.mxu0 %v5083_v18  ;;  %1912 = vmatprep.subr.bf16.mxu1 %v5085_v19  ;;  %v5113_v18 = vcombine.high %v549_v14, %v557_v15  ;;  %v5110_v19 = vcombine.low %v548_v10, %v556_v11 }
  0x90   : > { %5062 = vmatmul.mubr.msk.bf16.gmra.mrb[36].mxu0 %vm826_vm0, %v5905_v42  ;;  %5066 = vmatmul.mubr.msk.bf16.gmra.mrb[36].mxu1 %vm826_vm0, %v5905_v42 }
  0x91   : > { %1183 = vmatprep.mubr.bf16.mxu0 %v5610_v0  ;;  %1256 = vmatprep.mubr.bf16.mxu1 %v5610_v0 }
  0x98   : > { %5063 = vmatmul.mubr.msk.bf16.gmra.mrb[40].mxu0 %vm826_vm0, %v5925_v46  ;;  %5067 = vmatmul.mubr.msk.bf16.gmra.mrb[40].mxu1 %vm826_vm0, %v5925_v46 }
  0x99   : > { %1193 = vmatprep.mubr.bf16.mxu0 %v5610_v0  ;;  %1266 = vmatprep.mubr.bf16.mxu1 %v5610_v0 }
  0xa0   : > { %5064 = vmatmul.mubr.msk.bf16.gmra.mrb[44].mxu0 %vm826_vm0, %v5945_v50  ;;  %5068 = vmatmul.mubr.msk.bf16.gmra.mrb[44].mxu1 %vm826_vm0, %v5945_v50 }
  0xa1   : > { %1309 = vmatprep.mubr.bf16.mxu0 %v5610_v0  ;;  %1382 = vmatprep.mubr.bf16.mxu1 %v5610_v0 }
  0xa8   : > { %5069 = vmatmul.mubr.msk.bf16.vlgmr.msra.gmra.mrb[48].mxu0 %vm826_vm0, %v5868_v23  ;;  %5073 = vmatmul.mubr.msk.bf16.vlgmr.msra.gmra.mrb[48].mxu1 %vm826_vm0, %v5868_v23  ;;  %v6059_v23 = vld [vmem:[%s7402_s4] sm:$0xff]  }
  0xa9   : > { %1832 = vmatpush1.bf16.msra.mxu0 %v5082_v22  ;;  %1913 = vmatpush1.bf16.msra.mxu1 %v5084_v26 }
  0xaa   : > { %1319 = vmatprep.mubr.bf16.mxu0 %v5610_v0  ;;  %1392 = vmatprep.mubr.bf16.mxu1 %v5610_v0 }
  0xab   : > { %1833 = vmatprep.subr.bf16.mxu0 %v5099_v27  ;;  %1914 = vmatprep.subr.bf16.mxu1 %v5101_v30 }
  0xad   : > { %1834 = vmatpush1.bf16.msra.mxu0 %v5098_v33  ;;  %1915 = vmatpush1.bf16.msra.mxu1 %v5100_v34 }
  0xae   : > { %1993 = vmatprep.subr.bf16.mxu0 %v5087_v35  ;;  %2074 = vmatprep.subr.bf16.mxu1 %v5089_v36 }
  0xb0   : > { %5070 = vmatmul.mubr.msk.bf16.gmra.mrb[52].mxu0 %vm826_vm0, %v5905_v42  ;;  %5074 = vmatmul.mubr.msk.bf16.gmra.mrb[52].mxu1 %vm826_vm0, %v5905_v42  ;;  %v5088_v42 = vcombine.low %v529_v31, %v537_v32 }
  0xb1   : > { %1329 = vmatprep.mubr.bf16.mxu0 %v5610_v0  ;;  %1402 = vmatprep.mubr.bf16.mxu1 %v5610_v0 }
  0xb8   : > { %5071 = vmatmul.mubr.msk.bf16.gmra.mrb[56].mxu0 %vm826_vm0, %v5925_v46  ;;  %5075 = vmatmul.mubr.msk.bf16.gmra.mrb[56].mxu1 %vm826_vm0, %v5925_v46  ;;  %v5105_v46 = vcombine.high %v545_v40, %v553_v41 }
  0xb9   : > { %1339 = vmatprep.mubr.bf16.mxu0 %v5610_v0  ;;  %1412 = vmatprep.mubr.bf16.mxu1 %v5610_v0 }
  0xbb   : > { %v6159_v12 = vpop.permute.xlu0 %608  ;;  %v6168_v20 = vpop.permute.xlu1 %618 }
  0xc0   : > { %5072 = vmatmul.mubr.msk.bf16.gmra.mrb[60].mxu0 %vm826_vm0, %v5945_v50  ;;  %5076 = vmatmul.mubr.msk.bf16.gmra.mrb[60].mxu1 %vm826_vm0, %v5945_v50  ;;  %v5104_v50 = vcombine.low %v545_v40, %v553_v41 }
  0xc1   : > { %1863 = vmatprep.mubr.bf16.mxu0 %v5610_v0  ;;  %1944 = vmatprep.mubr.bf16.mxu1 %v5610_v0 }
  0xc2   : > { %v6170_v24 = vpop.permute.xlu0 %613 }
  0xc8   : > { %5114 = vmatmul.mubr.msk.bf16.vlgmr.msra.gmra.mrb[64].mxu0 %vm826_vm0, %v6059_v23  ;;  %5119 = vmatmul.mubr.msk.bf16.vlgmr.msra.gmra.mrb[64].mxu1 %vm826_vm0, %v6059_v23 }
  0xc9   : > { %1994 = vmatpush1.bf16.msra.mxu0 %v5086_v39  ;;  %2075 = vmatpush1.bf16.msra.mxu1 %v5088_v42 }
  0xca   : > { %1873 = vmatprep.mubr.bf16.mxu0 %v5610_v0  ;;  %1954 = vmatprep.mubr.bf16.mxu1 %v5610_v0 }
  0xcb   : > { %1995 = vmatprep.subr.bf16.mxu0 %v5103_v43  ;;  %2076 = vmatprep.subr.bf16.mxu1 %v5105_v46 }
  0xcd   : > { %1996 = vmatpush1.bf16.msra.mxu0 %v5102_v49  ;;  %2077 = vmatpush1.bf16.msra.mxu1 %v5104_v50 }
  0xce   : > { %2155 = vmatprep.subr.bf16.mxu0 %v5091_v51  ;;  %2236 = vmatprep.subr.bf16.mxu1 %v5093_v52  ;;  %v6191_v52 = vpop.permute.xlu1 %623 }
  0xd0   : > { %5115 = vmatmul.mubr.msk.bf16.gmra.mrb[68].mxu0 %vm826_vm0, %v6078_v53  ;;  %5120 = vmatmul.mubr.msk.bf16.gmra.mrb[68].mxu1 %vm826_vm0, %v6078_v53 }
  0xd1   : > { %1883 = vmatprep.mubr.bf16.mxu0 %v5610_v0  ;;  %1964 = vmatprep.mubr.bf16.mxu1 %v5610_v0 }
  0xd8   : > { %5116 = vmatmul.mubr.msk.bf16.gmra.mrb[72].mxu0 %vm826_vm0, %v6089_v54  ;;  %5121 = vmatmul.mubr.msk.bf16.gmra.mrb[72].mxu1 %vm826_vm0, %v6089_v54 }
  0xd9   : > { %1893 = vmatprep.mubr.bf16.mxu0 %v5610_v0  ;;  %1974 = vmatprep.mubr.bf16.mxu1 %v5610_v0 }
  0xe0   : > { %5117 = vmatmul.mubr.msk.bf16.gmra.mrb[76].mxu0 %vm826_vm0, %v6100_v55  ;;  %5122 = vmatmul.mubr.msk.bf16.gmra.mrb[76].mxu1 %vm826_vm0, %v6100_v55 }
  0xe1   : > { %1903 = vmatprep.mubr.bf16.mxu0 %v5610_v0  ;;  %1984 = vmatprep.mubr.bf16.mxu1 %v5610_v0 }
  0xe8   : > { %5118 = vmatmul.mubr.msk.bf16.gmra.mrb[80].mxu0 %vm826_vm0, %v6111_v56  ;;  %5123 = vmatmul.mubr.msk.bf16.gmra.mrb[80].mxu1 %vm826_vm0, %v6111_v56 }
  0xe9   : > { %2025 = vmatprep.mubr.bf16.mxu0 %v5610_v0  ;;  %2106 = vmatprep.mubr.bf16.mxu1 %v5610_v0 }
  0xf0   : > { %5124 = vmatmul.mubr.msk.bf16.vlgmr.msra.gmra.mrb[84].mxu0 %vm826_vm0, %v6059_v23  ;;  %5129 = vmatmul.mubr.msk.bf16.vlgmr.msra.gmra.mrb[84].mxu1 %vm826_vm0, %v6059_v23 }
  0xf1   : > { %2156 = vmatpush1.bf16.msra.mxu0 %v5090_v59  ;;  %2237 = vmatpush1.bf16.msra.mxu1 %v5092_v62 }
  0xf2   : > { %2035 = vmatprep.mubr.bf16.mxu0 %v5610_v0  ;;  %2116 = vmatprep.mubr.bf16.mxu1 %v5610_v0 }
  0xf3   : > { %2157 = vmatprep.subr.bf16.mxu0 %v5107_v63  ;;  %2238 = vmatprep.subr.bf16.mxu1 %v5109_v3 }
  0xf5   : > { %2158 = vmatpush1.bf16.msra.mxu0 %v5106_v6  ;;  %2239 = vmatpush1.bf16.msra.mxu1 %v5108_v7 }
  0xf6   : > { %2317 = vmatprep.subr.bf16.mxu0 %v5095_v8  ;;  %2398 = vmatprep.subr.bf16.mxu1 %v5097_v9 }
  0xf8   : > { %5125 = vmatmul.mubr.msk.bf16.gmra.mrb[88].mxu0 %vm826_vm0, %v6078_v53  ;;  %5130 = vmatmul.mubr.msk.bf16.gmra.mrb[88].mxu1 %vm826_vm0, %v6078_v53 }
  0xf9   : > { %2045 = vmatprep.mubr.bf16.mxu0 %v5610_v0  ;;  %2126 = vmatprep.mubr.bf16.mxu1 %v5610_v0 }
 0x100   : > { %5126 = vmatmul.mubr.msk.bf16.gmra.mrb[92].mxu0 %vm826_vm0, %v6089_v54  ;;  %5131 = vmatmul.mubr.msk.bf16.gmra.mrb[92].mxu1 %vm826_vm0, %v6089_v54 }
 0x101   : > { %2055 = vmatprep.mubr.bf16.mxu0 %v5610_v0  ;;  %2136 = vmatprep.mubr.bf16.mxu1 %v5610_v0 }
 0x108   : > { %5127 = vmatmul.mubr.msk.bf16.gmra.mrb[96].mxu0 %vm826_vm0, %v6100_v55  ;;  %5132 = vmatmul.mubr.msk.bf16.gmra.mrb[96].mxu1 %vm826_vm0, %v6100_v55 }
 0x109   : > { %2065 = vmatprep.mubr.bf16.mxu0 %v5610_v0  ;;  %2146 = vmatprep.mubr.bf16.mxu1 %v5610_v0 }
 0x110   : > { %5128 = vmatmul.mubr.msk.bf16.gmra.mrb[100].mxu0 %vm826_vm0, %v6111_v56  ;;  %5133 = vmatmul.mubr.msk.bf16.gmra.mrb[100].mxu1 %vm826_vm0, %v6111_v56 }
 0x111   : > { %2187 = vmatprep.mubr.bf16.mxu0 %v5610_v0  ;;  %2268 = vmatprep.mubr.bf16.mxu1 %v5610_v0 }
 0x118   : > { %5134 = vmatmul.mubr.msk.bf16.vlgmr.msra.gmra.mrb[104].mxu0 %vm826_vm0, %v6059_v23  ;;  %5139 = vmatmul.mubr.msk.bf16.vlgmr.msra.gmra.mrb[104].mxu1 %vm826_vm0, %v6059_v23 }
 0x119   : > { %2318 = vmatpush1.bf16.msra.mxu0 %v5094_v13  ;;  %2399 = vmatpush1.bf16.msra.mxu1 %v5096_v16 }
 0x11a   : > { %2197 = vmatprep.mubr.bf16.mxu0 %v5610_v0  ;;  %2278 = vmatprep.mubr.bf16.mxu1 %v5610_v0 }
 0x11b   : > { %v873_v22 = vpop.f32.mrb[0].mxu0  ;;  %2319 = vmatprep.subr.bf16.mxu0 %v5111_v17  ;;  %v946_v26 = vpop.f32.mrb[0].mxu1  ;;  %2400 = vmatprep.subr.bf16.mxu1 %v5113_v18 }
 0x11c   : > { %v874_v25 = vadd.f32 %v873_v22, %v6159_v12  ;;  %v875_v27 = vpop.f32.mrb[1].mxu0  ;;  %v947_v28 = vadd.f32 %v946_v26, %v6159_v12  ;;  %v948_v30 = vpop.f32.mrb[1].mxu1 }
 0x11d   : > { %v876_v29 = vadd.f32 %v875_v27, %v6159_v12  ;;  %v877_v31 = vpop.f32.mrb[2].mxu0  ;;  %2320 = vmatpush1.bf16.msra.mxu0 %v5110_v19  ;;  %v949_v32 = vadd.f32 %v948_v30, %v6159_v12  ;;  %v950_v34 = vpop.f32.mrb[2].mxu1  ;;  %2401 = vmatpush1.bf16.msra.mxu1 %v5112_v21 }
 0x11e   : > { %v878_v33 = vadd.f32 %v877_v31, %v6170_v24  ;;  %v879_v35 = vpop.f32.mrb[3].mxu0  ;;  %v951_v36 = vadd.f32 %v950_v34, %v6170_v24  ;;  %v952_v38 = vpop.f32.mrb[3].mxu1  ;;  %v1423_v39 = vmax.f32 %v874_v25, 0.0  ;;  %v1425_v42 = vmax.f32 %v947_v28, 0.0 }
 0x11f   : > { %v880_v37 = vadd.f32 %v879_v35, %v6170_v24  ;;  %v953_v41 = vadd.f32 %v952_v38, %v6170_v24  ;;  %v1424_v43 = vmax.f32 %v876_v29, 0.0  ;;  %v1426_v46 = vmax.f32 %v949_v32, 0.0  ;;  %v6205_v17 = vpop.permute.xlu0 %628  ;;  %v6215_v27 = vpop.permute.xlu1 %633 }
 0x120   : > { %v1439_v40 = vmax.f32 %v878_v33, 0.0  ;;  %5135 = vmatmul.mubr.msk.bf16.gmra.mrb[108].mxu0 %vm826_vm0, %v6078_v53  ;;  %v1441_v44 = vmax.f32 %v951_v36, 0.0  ;;  %5140 = vmatmul.mubr.msk.bf16.gmra.mrb[108].mxu1 %vm826_vm0, %v6078_v53 }
 0x121   : > { %v1440_v45 = vmax.f32 %v880_v37, 0.0  ;;  %2207 = vmatprep.mubr.bf16.mxu0 %v5610_v0  ;;  %v1442_v48 = vmax.f32 %v953_v41, 0.0  ;;  %2288 = vmatprep.mubr.bf16.mxu1 %v5610_v0 }
 0x122   : > { %v6186_v47 = vpack.c.bf16 %v1439_v40, %v1423_v39  ;;  %v6189_v49 = vpack.c.bf16 %v1441_v44, %v1425_v42 }
 0x123   : > { %v1552_v50 = vpack.c.bf16 %v1440_v45, %v1424_v43  ;;  %v883_v51 = vpop.f32.mrb[4].mxu0  ;;  %v1554_v57 = vpack.c.bf16 %v1442_v48, %v1426_v46  ;;  %v956_v59 = vpop.f32.mrb[4].mxu1 }
 0x124   : > { %v884_v58 = vadd.f32 %v883_v51, %v6168_v20  ;;  %v885_v60 = vpop.f32.mrb[5].mxu0  ;;  %v957_v61 = vadd.f32 %v956_v59, %v6168_v20  ;;  %v958_v63 = vpop.f32.mrb[5].mxu1 }
 0x125   : > { %v886_v62 = vadd.f32 %v885_v60, %v6168_v20  ;;  %v887_v1 = vpop.f32.mrb[6].mxu0  ;;  %2518 = vmatprep.subr.bf16.mxu0 %v1552_v50  ;;  %v959_v2 = vadd.f32 %v958_v63, %v6168_v20  ;;  %v960_v4 = vpop.f32.mrb[6].mxu1  ;;  %2599 = vmatprep.subr.bf16.mxu1 %v1554_v57 }
 0x126   : > { %v888_v3 = vadd.f32 %v887_v1, %v6191_v52  ;;  %v889_v5 = vpop.f32.mrb[7].mxu0  ;;  %v961_v6 = vadd.f32 %v960_v4, %v6191_v52  ;;  %v962_v8 = vpop.f32.mrb[7].mxu1  ;;  %v1455_v9 = vmax.f32 %v884_v58, 0.0  ;;  %v1457_v13 = vmax.f32 %v957_v61, 0.0 }
 0x127   : > { %v890_v7 = vadd.f32 %v889_v5, %v6191_v52  ;;  %v963_v11 = vadd.f32 %v962_v8, %v6191_v52  ;;  %v1456_v14 = vmax.f32 %v886_v62, 0.0  ;;  %v1458_v18 = vmax.f32 %v959_v2, 0.0  ;;  %v6231_v57 = vpop.permute.xlu0 %638  ;;  %v6241_v1 = vpop.permute.xlu1 %643 }
 0x128   : > { %v1471_v10 = vmax.f32 %v888_v3, 0.0  ;;  %5136 = vmatmul.mubr.msk.bf16.gmra.mrb[112].mxu0 %vm826_vm0, %v6089_v54  ;;  %v1473_v15 = vmax.f32 %v961_v6, 0.0  ;;  %5141 = vmatmul.mubr.msk.bf16.gmra.mrb[112].mxu1 %vm826_vm0, %v6089_v54 }
 0x129   : > { %v1472_v16 = vmax.f32 %v890_v7, 0.0  ;;  %2217 = vmatprep.mubr.bf16.mxu0 %v5610_v0  ;;  %v1474_v21 = vmax.f32 %v963_v11, 0.0  ;;  %2298 = vmatprep.mubr.bf16.mxu1 %v5610_v0 }
 0x12a   : > { %v6208_v19 = vpack.c.bf16 %v1471_v10, %v1455_v9  ;;  %v6211_v22 = vpack.c.bf16 %v1473_v15, %v1457_v13 }
 0x12b   : > { %v6213_v25 = vpack.c.bf16 %v1472_v16, %v1456_v14  ;;  %v893_v26 = vpop.f32.mrb[8].mxu0  ;;  %v6217_v28 = vpack.c.bf16 %v1474_v21, %v1458_v18  ;;  %v966_v30 = vpop.f32.mrb[8].mxu1 }
 0x12c   : > { %v894_v29 = vadd.f32 %v893_v26, %v6205_v17  ;;  %v895_v31 = vpop.f32.mrb[9].mxu0  ;;  %v967_v32 = vadd.f32 %v966_v30, %v6205_v17  ;;  %v968_v34 = vpop.f32.mrb[9].mxu1 }
 0x12d   : > { %v896_v33 = vadd.f32 %v895_v31, %v6205_v17  ;;  %v897_v35 = vpop.f32.mrb[10].mxu0  ;;  %v969_v36 = vadd.f32 %v968_v34, %v6205_v17  ;;  %v970_v38 = vpop.f32.mrb[10].mxu1 }
 0x12e   : > { %v898_v37 = vadd.f32 %v897_v35, %v6215_v27  ;;  %v899_v39 = vpop.f32.mrb[11].mxu0  ;;  %v971_v40 = vadd.f32 %v970_v38, %v6215_v27  ;;  %v972_v42 = vpop.f32.mrb[11].mxu1  ;;  %v1487_v43 = vmax.f32 %v894_v29, 0.0  ;;  %v1489_v46 = vmax.f32 %v967_v32, 0.0 }
 0x12f   : > { %v900_v41 = vadd.f32 %v899_v39, %v6215_v27  ;;  %v973_v45 = vadd.f32 %v972_v42, %v6215_v27  ;;  %v1488_v48 = vmax.f32 %v896_v33, 0.0  ;;  %v1490_v58 = vmax.f32 %v969_v36, 0.0 }
 0x130   : > { %v1503_v44 = vmax.f32 %v898_v37, 0.0  ;;  %5137 = vmatmul.mubr.msk.bf16.gmra.mrb[116].mxu0 %vm826_vm0, %v6100_v55  ;;  %v1505_v50 = vmax.f32 %v971_v40, 0.0  ;;  %5142 = vmatmul.mubr.msk.bf16.gmra.mrb[116].mxu1 %vm826_vm0, %v6100_v55 }
 0x131   : > { %v1504_v51 = vmax.f32 %v900_v41, 0.0  ;;  %2227 = vmatprep.mubr.bf16.mxu0 %v5610_v0  ;;  %v1506_v60 = vmax.f32 %v973_v45, 0.0  ;;  %2308 = vmatprep.mubr.bf16.mxu1 %v5610_v0 }
 0x132   : > { %v6234_v59 = vpack.c.bf16 %v1503_v44, %v1487_v43  ;;  %v6237_v61 = vpack.c.bf16 %v1505_v50, %v1489_v46 }
 0x133   : > { %v6239_v62 = vpack.c.bf16 %v1504_v51, %v1488_v48  ;;  %v903_v63 = vpop.f32.mrb[12].mxu0  ;;  %v6243_v2 = vpack.c.bf16 %v1506_v60, %v1490_v58  ;;  %v976_v4 = vpop.f32.mrb[12].mxu1 }
 0x134   : > { %v904_v3 = vadd.f32 %v903_v63, %v6231_v57  ;;  %v905_v5 = vpop.f32.mrb[13].mxu0  ;;  %v977_v6 = vadd.f32 %v976_v4, %v6231_v57  ;;  %v978_v8 = vpop.f32.mrb[13].mxu1 }
 0x135   : > { %v906_v7 = vadd.f32 %v905_v5, %v6231_v57  ;;  %v907_v9 = vpop.f32.mrb[14].mxu0  ;;  %v979_v10 = vadd.f32 %v978_v8, %v6231_v57  ;;  %v980_v13 = vpop.f32.mrb[14].mxu1 }
 0x136   : > { %v908_v11 = vadd.f32 %v907_v9, %v6241_v1  ;;  %v909_v14 = vpop.f32.mrb[15].mxu0  ;;  %v981_v15 = vadd.f32 %v980_v13, %v6241_v1  ;;  %v982_v18 = vpop.f32.mrb[15].mxu1  ;;  %v1519_v21 = vmax.f32 %v904_v3, 0.0  ;;  %v1521_v30 = vmax.f32 %v977_v6, 0.0 }
 0x137   : > { %v910_v16 = vadd.f32 %v909_v14, %v6241_v1  ;;  %v983_v29 = vadd.f32 %v982_v18, %v6241_v1  ;;  %v1520_v31 = vmax.f32 %v906_v7, 0.0  ;;  %v1522_v34 = vmax.f32 %v979_v10, 0.0 }
 0x138   : > { %v1535_v26 = vmax.f32 %v908_v11, 0.0  ;;  %5138 = vmatmul.mubr.msk.bf16.gmra.mrb[120].mxu0 %vm826_vm0, %v6111_v56  ;;  %v1537_v32 = vmax.f32 %v981_v15, 0.0  ;;  %5143 = vmatmul.mubr.msk.bf16.gmra.mrb[120].mxu1 %vm826_vm0, %v6111_v56 }
 0x139   : > { %v1536_v33 = vmax.f32 %v910_v16, 0.0  ;;  %2349 = vmatprep.mubr.bf16.mxu0 %v5610_v0  ;;  %v1538_v36 = vmax.f32 %v983_v29, 0.0  ;;  %2430 = vmatprep.mubr.bf16.mxu1 %v5610_v0 }
 0x13a   : > { %v6258_v35 = vpack.c.bf16 %v1535_v26, %v1519_v21  ;;  %v6261_v37 = vpack.c.bf16 %v1537_v32, %v1521_v30 }
 0x13b   : > { %v6263_v38 = vpack.c.bf16 %v1536_v33, %v1520_v31  ;;  %v1019_v39 = vpop.f32.mrb[16].mxu0  ;;  %v6265_v40 = vpack.c.bf16 %v1538_v36, %v1522_v34  ;;  %v1092_v42 = vpop.f32.mrb[16].mxu1 }
 0x13c   : > { %v1020_v41 = vadd.f32 %v1019_v39, %v6159_v12  ;;  %v1021_v43 = vpop.f32.mrb[17].mxu0  ;;  %v1093_v44 = vadd.f32 %v1092_v42, %v6159_v12  ;;  %v1094_v46 = vpop.f32.mrb[17].mxu1 }
 0x13d   : > { %v1022_v45 = vadd.f32 %v1021_v43, %v6159_v12  ;;  %v1023_v48 = vpop.f32.mrb[18].mxu0  ;;  %v1095_v50 = vadd.f32 %v1094_v46, %v6159_v12  ;;  %v1096_v58 = vpop.f32.mrb[18].mxu1 }
 0x13e   : > { %v1024_v51 = vadd.f32 %v1023_v48, %v6170_v24  ;;  %v1025_v60 = vpop.f32.mrb[19].mxu0  ;;  %v1097_v63 = vadd.f32 %v1096_v58, %v6170_v24  ;;  %v1098_v4 = vpop.f32.mrb[19].mxu1  ;;  %v1427_v5 = vmax.f32 %v1020_v41, 0.0  ;;  %v1429_v8 = vmax.f32 %v1093_v44, 0.0 }
 0x13f   : > { %v1026_v3 = vadd.f32 %v1025_v60, %v6170_v24  ;;  %v1099_v7 = vadd.f32 %v1098_v4, %v6170_v24  ;;  %v1428_v9 = vmax.f32 %v1022_v45, 0.0  ;;  %v1430_v13 = vmax.f32 %v1095_v50, 0.0 }
 0x140   : > { %v1443_v6 = vmax.f32 %v1024_v51, 0.0  ;;  %5144 = vmatmul.mubr.msk.bf16.vlgmr.msra.gmra.mrb[124].mxu0 %vm826_vm0, %v6059_v23  ;;  %v1445_v10 = vmax.f32 %v1097_v63, 0.0  ;;  %5149 = vmatmul.mubr.msk.bf16.vlgmr.msra.gmra.mrb[124].mxu1 %vm826_vm0, %v6059_v23 }
 0x141   : > { %v1444_v11 = vmax.f32 %v1026_v3, 0.0  ;;  %2519 = vmatpush1.bf16.msra.mxu0 %v6186_v47  ;;  %v1446_v15 = vmax.f32 %v1099_v7, 0.0  ;;  %2600 = vmatpush1.bf16.msra.mxu1 %v6189_v49 }
 0x142   : > { %v6280_v14 = vpack.c.bf16 %v1443_v6, %v1427_v5  ;;  %2520 = vmatprep.subr.bf16.mxu0 %v6213_v25  ;;  %v6284_v16 = vpack.c.bf16 %v1445_v10, %v1429_v8  ;;  %2601 = vmatprep.subr.bf16.mxu1 %v6217_v28 }
 0x143   : > { %v1556_v18 = vpack.c.bf16 %v1444_v11, %v1428_v9  ;;  %v1029_v21 = vpop.f32.mrb[20].mxu0  ;;  %2359 = vmatprep.mubr.bf16.mxu0 %v5610_v0  ;;  %v1558_v26 = vpack.c.bf16 %v1446_v15, %v1430_v13  ;;  %v1102_v47 = vpop.f32.mrb[20].mxu1  ;;  %2440 = vmatprep.mubr.bf16.mxu1 %v5610_v0 }
 0x144   : > { %v1030_v23 = vadd.f32 %v1029_v21, %v6168_v20  ;;  %v1031_v29 = vpop.f32.mrb[21].mxu0  ;;  %v1103_v30 = vadd.f32 %v1102_v47, %v6168_v20  ;;  %v1104_v25 = vpop.f32.mrb[21].mxu1 }
 0x145   : > { %v1032_v49 = vadd.f32 %v1031_v29, %v6168_v20  ;;  %2521 = vmatpush1.bf16.msra.mxu0 %v6208_v19  ;;  %v1033_v31 = vpop.f32.mrb[22].mxu0  ;;  %v1105_v28 = vadd.f32 %v1104_v25, %v6168_v20  ;;  %2602 = vmatpush1.bf16.msra.mxu1 %v6211_v22  ;;  %v1106_v33 = vpop.f32.mrb[22].mxu1 }
 0x146   : > { %v1034_v32 = vadd.f32 %v1033_v31, %v6191_v52  ;;  %2522 = vmatprep.subr.bf16.mxu0 %v6239_v62  ;;  %v1035_v34 = vpop.f32.mrb[23].mxu0  ;;  %v1107_v36 = vadd.f32 %v1106_v33, %v6191_v52  ;;  %2603 = vmatprep.subr.bf16.mxu1 %v6243_v2  ;;  %v1108_v41 = vpop.f32.mrb[23].mxu1  ;;  %v1459_v42 = vmax.f32 %v1030_v23, 0.0  ;;  %v1461_v22 = vmax.f32 %v1103_v30, 0.0 }
 0x147   : > { %v1036_v39 = vadd.f32 %v1035_v34, %v6191_v52  ;;  %v1109_v43 = vadd.f32 %v1108_v41, %v6191_v52  ;;  %v1460_v44 = vmax.f32 %v1032_v49, 0.0  ;;  %v1462_v62 = vmax.f32 %v1105_v28, 0.0 }
 0x148   : > { %v1475_v19 = vmax.f32 %v1034_v32, 0.0  ;;  %5145 = vmatmul.mubr.msk.bf16.gmra.mrb[128].mxu0 %vm826_vm0, %v6078_v53  ;;  %v1477_v45 = vmax.f32 %v1107_v36, 0.0  ;;  %5150 = vmatmul.mubr.msk.bf16.gmra.mrb[128].mxu1 %vm826_vm0, %v6078_v53 }
 0x149   : > { %v1476_v46 = vmax.f32 %v1036_v39, 0.0  ;;  %2523 = vmatpush1.bf16.msra.mxu0 %v6234_v59  ;;  %v1478_v48 = vmax.f32 %v1109_v43, 0.0  ;;  %2604 = vmatpush1.bf16.msra.mxu1 %v6237_v61 }
 0x14a   : > { %v6306_v2 = vpack.c.bf16 %v1475_v19, %v1459_v42  ;;  %2524 = vmatprep.subr.bf16.mxu0 %v6263_v38  ;;  %v6310_v50 = vpack.c.bf16 %v1477_v45, %v1461_v22  ;;  %2605 = vmatprep.subr.bf16.mxu1 %v6265_v40 }
 0x14b   : > { %v6312_v51 = vpack.c.bf16 %v1476_v46, %v1460_v44  ;;  %v1039_v58 = vpop.f32.mrb[24].mxu0  ;;  %2369 = vmatprep.mubr.bf16.mxu0 %v5610_v0  ;;  %v6316_v53 = vpack.c.bf16 %v1478_v48, %v1462_v62  ;;  %v1112_v60 = vpop.f32.mrb[24].mxu1  ;;  %2450 = vmatprep.mubr.bf16.mxu1 %v5610_v0 }
 0x14c   : > { %v1040_v59 = vadd.f32 %v1039_v58, %v6205_v17  ;;  %v1041_v63 = vpop.f32.mrb[25].mxu0  ;;  %v1113_v61 = vadd.f32 %v1112_v60, %v6205_v17  ;;  %v1114_v3 = vpop.f32.mrb[25].mxu1 }
 0x14d   : > { %v1042_v38 = vadd.f32 %v1041_v63, %v6205_v17  ;;  %2525 = vmatpush1.bf16.msra.mxu0 %v6258_v35  ;;  %v1043_v4 = vpop.f32.mrb[26].mxu0  ;;  %v1115_v40 = vadd.f32 %v1114_v3, %v6205_v17  ;;  %2606 = vmatpush1.bf16.msra.mxu1 %v6261_v37  ;;  %v1116_v6 = vpop.f32.mrb[26].mxu1 }
 0x14e   : > { %v1044_v5 = vadd.f32 %v1043_v4, %v6215_v27  ;;  %2680 = vmatprep.subr.bf16.mxu0 %v1556_v18  ;;  %v1045_v7 = vpop.f32.mrb[27].mxu0  ;;  %v1117_v8 = vadd.f32 %v1116_v6, %v6215_v27  ;;  %2761 = vmatprep.subr.bf16.mxu1 %v1558_v26  ;;  %v1118_v10 = vpop.f32.mrb[27].mxu1  ;;  %v1491_v11 = vmax.f32 %v1040_v59, 0.0  ;;  %v1493_v15 = vmax.f32 %v1113_v61, 0.0 }
 0x14f   : > { %v1046_v9 = vadd.f32 %v1045_v7, %v6215_v27  ;;  %v1119_v35 = vadd.f32 %v1118_v10, %v6215_v27  ;;  %v1492_v37 = vmax.f32 %v1042_v38, 0.0  ;;  %v1494_v18 = vmax.f32 %v1115_v40, 0.0 }
 0x150   : > { %v1507_v13 = vmax.f32 %v1044_v5, 0.0  ;;  %5146 = vmatmul.mubr.msk.bf16.gmra.mrb[132].mxu0 %vm826_vm0, %v6089_v54  ;;  %v1509_v21 = vmax.f32 %v1117_v8, 0.0  ;;  %5151 = vmatmul.mubr.msk.bf16.gmra.mrb[132].mxu1 %vm826_vm0, %v6089_v54 }
 0x151   : > { %v1508_v23 = vmax.f32 %v1046_v9, 0.0  ;;  %2379 = vmatprep.mubr.bf16.mxu0 %v5610_v0  ;;  %v1510_v47 = vmax.f32 %v1119_v35, 0.0  ;;  %2460 = vmatprep.mubr.bf16.mxu1 %v5610_v0 }
 0x152   : > { %v6334_v26 = vpack.c.bf16 %v1507_v13, %v1491_v11  ;;  %v6337_v29 = vpack.c.bf16 %v1509_v21, %v1493_v15 }
 0x153   : > { %v6339_v30 = vpack.c.bf16 %v1508_v23, %v1492_v37  ;;  %v1049_v49 = vpop.f32.mrb[28].mxu0  ;;  %v6341_v25 = vpack.c.bf16 %v1510_v47, %v1494_v18  ;;  %v1122_v28 = vpop.f32.mrb[28].mxu1 }
 0x154   : > { %v1050_v31 = vadd.f32 %v1049_v49, %v6231_v57  ;;  %v1051_v32 = vpop.f32.mrb[29].mxu0  ;;  %v1123_v54 = vadd.f32 %v1122_v28, %v6231_v57  ;;  %v1124_v34 = vpop.f32.mrb[29].mxu1 }
 0x155   : > { %v1052_v33 = vadd.f32 %v1051_v32, %v6231_v57  ;;  %v1053_v36 = vpop.f32.mrb[30].mxu0  ;;  %v1125_v39 = vadd.f32 %v1124_v34, %v6231_v57  ;;  %v1126_v42 = vpop.f32.mrb[30].mxu1 }
 0x156   : > { %v1054_v41 = vadd.f32 %v1053_v36, %v6241_v1  ;;  %v1055_v19 = vpop.f32.mrb[31].mxu0  ;;  %v1127_v43 = vadd.f32 %v1126_v42, %v6241_v1  ;;  %v1128_v44 = vpop.f32.mrb[31].mxu1  ;;  %v1523_v45 = vmax.f32 %v1050_v31, 0.0  ;;  %v1525_v48 = vmax.f32 %v1123_v54, 0.0 }
 0x157   : > { %v1056_v22 = vadd.f32 %v1055_v19, %v6241_v1  ;;  %v1129_v62 = vadd.f32 %v1128_v44, %v6241_v1  ;;  %v1524_v58 = vmax.f32 %v1052_v33, 0.0  ;;  %v1526_v63 = vmax.f32 %v1125_v39, 0.0 }
 0x158   : > { %v1539_v46 = vmax.f32 %v1054_v41, 0.0  ;;  %5147 = vmatmul.mubr.msk.bf16.gmra.mrb[136].mxu0 %vm826_vm0, %v6100_v55  ;;  %v1541_v59 = vmax.f32 %v1127_v43, 0.0  ;;  %5152 = vmatmul.mubr.msk.bf16.gmra.mrb[136].mxu1 %vm826_vm0, %v6100_v55 }
 0x159   : > { %v1540_v60 = vmax.f32 %v1056_v22, 0.0  ;;  %2389 = vmatprep.mubr.bf16.mxu0 %v5610_v0  ;;  %v1542_v38 = vmax.f32 %v1129_v62, 0.0  ;;  %2470 = vmatprep.mubr.bf16.mxu1 %v5610_v0 }
 0x15a   : > { %v6356_v61 = vpack.c.bf16 %v1539_v46, %v1523_v45  ;;  %v6359_v3 = vpack.c.bf16 %v1541_v59, %v1525_v48 }
 0x15b   : > { %v6361_v4 = vpack.c.bf16 %v1540_v60, %v1524_v58  ;;  %v1165_v40 = vpop.f32.mrb[32].mxu0  ;;  %v6363_v5 = vpack.c.bf16 %v1542_v38, %v1526_v63  ;;  %v1238_v7 = vpop.f32.mrb[32].mxu1 }
 0x15c   : > { %v1166_v6 = vadd.f32 %v1165_v40, %v6159_v12  ;;  %v1167_v8 = vpop.f32.mrb[33].mxu0  ;;  %v1239_v55 = vadd.f32 %v1238_v7, %v6159_v12  ;;  %v1240_v10 = vpop.f32.mrb[33].mxu1 }
 0x15d   : > { %v1168_v9 = vadd.f32 %v1167_v8, %v6159_v12  ;;  %v1169_v11 = vpop.f32.mrb[34].mxu0  ;;  %v1241_v13 = vadd.f32 %v1240_v10, %v6159_v12  ;;  %v1242_v15 = vpop.f32.mrb[34].mxu1 }
 0x15e   : > { %v1170_v35 = vadd.f32 %v1169_v11, %v6170_v24  ;;  %v1171_v37 = vpop.f32.mrb[35].mxu0  ;;  %v1243_v21 = vadd.f32 %v1242_v15, %v6170_v24  ;;  %v1244_v18 = vpop.f32.mrb[35].mxu1  ;;  %v1431_v47 = vmax.f32 %v1166_v6, 0.0  ;;  %v1433_v28 = vmax.f32 %v1239_v55, 0.0 }
 0x15f   : > { %v1172_v23 = vadd.f32 %v1171_v37, %v6170_v24  ;;  %v1245_v31 = vadd.f32 %v1244_v18, %v6170_v24  ;;  %v1432_v32 = vmax.f32 %v1168_v9, 0.0  ;;  %v1434_v34 = vmax.f32 %v1241_v13, 0.0 }
 0x160   : > { %v1447_v49 = vmax.f32 %v1170_v35, 0.0  ;;  %5148 = vmatmul.mubr.msk.bf16.gmra.mrb[140].mxu0 %vm826_vm0, %v6111_v56  ;;  %v1449_v54 = vmax.f32 %v1243_v21, 0.0  ;;  %5153 = vmatmul.mubr.msk.bf16.gmra.mrb[140].mxu1 %vm826_vm0, %v6111_v56  ;;  %v6391_v56 = vld [vmem:[%s7401_s3] sm:$0xff]  }
 0x161   : > { %v1448_v33 = vmax.f32 %v1172_v23, 0.0  ;;  %2550 = vmatprep.mubr.bf16.mxu0 %v5610_v0  ;;  %v1450_v39 = vmax.f32 %v1245_v31, 0.0  ;;  %2631 = vmatprep.mubr.bf16.mxu1 %v5610_v0 }
 0x162   : > { %v6378_v36 = vpack.c.bf16 %v1447_v49, %v1431_v47  ;;  %v6381_v41 = vpack.c.bf16 %v1449_v54, %v1433_v28 }
 0x163   : > { %v6383_v42 = vpack.c.bf16 %v1448_v33, %v1432_v32  ;;  %v1175_v19 = vpop.f32.mrb[36].mxu0  ;;  %v6385_v43 = vpack.c.bf16 %v1450_v39, %v1434_v34  ;;  %v1248_v44 = vpop.f32.mrb[36].mxu1 }
 0x164   : > { %v1176_v22 = vadd.f32 %v1175_v19, %v6168_v20  ;;  %v1177_v45 = vpop.f32.mrb[37].mxu0  ;;  %v1249_v46 = vadd.f32 %v1248_v44, %v6168_v20  ;;  %v1250_v48 = vpop.f32.mrb[37].mxu1 }
 0x165   : > { %v1178_v62 = vadd.f32 %v1177_v45, %v6168_v20  ;;  %v1179_v58 = vpop.f32.mrb[38].mxu0  ;;  %v1251_v59 = vadd.f32 %v1250_v48, %v6168_v20  ;;  %v1252_v63 = vpop.f32.mrb[38].mxu1 }
 0x166   : > { %v1180_v60 = vadd.f32 %v1179_v58, %v6191_v52  ;;  %v1181_v38 = vpop.f32.mrb[39].mxu0  ;;  %v1253_v40 = vadd.f32 %v1252_v63, %v6191_v52  ;;  %v1254_v7 = vpop.f32.mrb[39].mxu1  ;;  %v1463_v8 = vmax.f32 %v1176_v22, 0.0  ;;  %v1465_v10 = vmax.f32 %v1249_v46, 0.0 }
 0x167   : > { %v1182_v6 = vadd.f32 %v1181_v38, %v6191_v52  ;;  %v1255_v9 = vadd.f32 %v1254_v7, %v6191_v52  ;;  %v1464_v11 = vmax.f32 %v1178_v62, 0.0  ;;  %v1466_v15 = vmax.f32 %v1251_v59, 0.0 }
 0x168   : > { %v1479_v55 = vmax.f32 %v1180_v60, 0.0  ;;  %5159 = vmatmul.mubr.msk.bf16.vlgmr.msra.gmra.mrb[64].mxu0 %vm2502_vm1, %v6391_v56  ;;  %v1481_v13 = vmax.f32 %v1253_v40, 0.0  ;;  %5164 = vmatmul.mubr.msk.bf16.vlgmr.msra.gmra.mrb[64].mxu1 %vm2502_vm1, %v6391_v56 }
 0x169   : > { %v1480_v35 = vmax.f32 %v1182_v6, 0.0  ;;  %2681 = vmatpush1.bf16.msra.mxu0 %v6280_v14  ;;  %v1482_v21 = vmax.f32 %v1255_v9, 0.0  ;;  %2762 = vmatpush1.bf16.msra.mxu1 %v6284_v16  ;;  %v6422_v16 = vld [vmem:[%s7401_s3 + $0x8] sm:$0xff]  }
 0x16a   : > { %v6405_v37 = vpack.c.bf16 %v1479_v55, %v1463_v8  ;;  %2682 = vmatprep.subr.bf16.mxu0 %v6312_v51  ;;  %v6409_v23 = vpack.c.bf16 %v1481_v13, %v1465_v10  ;;  %2763 = vmatprep.subr.bf16.mxu1 %v6316_v53 }
 0x16b   : > { %v6411_v18 = vpack.c.bf16 %v1480_v35, %v1464_v11  ;;  %v1185_v47 = vpop.f32.mrb[40].mxu0  ;;  %2560 = vmatprep.mubr.bf16.mxu0 %v5610_v0  ;;  %v6415_v49 = vpack.c.bf16 %v1482_v21, %v1466_v15  ;;  %v1258_v31 = vpop.f32.mrb[40].mxu1  ;;  %2641 = vmatprep.mubr.bf16.mxu1 %v5610_v0 }
 0x16c   : > { %v1186_v14 = vadd.f32 %v1185_v47, %v6205_v17  ;;  %v1187_v28 = vpop.f32.mrb[41].mxu0  ;;  %v1259_v51 = vadd.f32 %v1258_v31, %v6205_v17  ;;  %v1260_v32 = vpop.f32.mrb[41].mxu1 }
 0x16d   : > { %v1188_v53 = vadd.f32 %v1187_v28, %v6205_v17  ;;  %2683 = vmatpush1.bf16.msra.mxu0 %v6306_v2  ;;  %v1189_v54 = vpop.f32.mrb[42].mxu0  ;;  %v1261_v33 = vadd.f32 %v1260_v32, %v6205_v17  ;;  %2764 = vmatpush1.bf16.msra.mxu1 %v6310_v50  ;;  %v1262_v39 = vpop.f32.mrb[42].mxu1 }
 0x16e   : > { %v1190_v34 = vadd.f32 %v1189_v54, %v6215_v27  ;;  %2684 = vmatprep.subr.bf16.mxu0 %v6339_v30  ;;  %v1191_v19 = vpop.f32.mrb[43].mxu0  ;;  %v1263_v22 = vadd.f32 %v1262_v39, %v6215_v27  ;;  %2765 = vmatprep.subr.bf16.mxu1 %v6341_v25  ;;  %v1264_v45 = vpop.f32.mrb[43].mxu1  ;;  %v1495_v46 = vmax.f32 %v1186_v14, 0.0  ;;  %v1497_v50 = vmax.f32 %v1259_v51, 0.0 }
 0x16f   : > { %v1192_v44 = vadd.f32 %v1191_v19, %v6215_v27  ;;  %v1265_v62 = vadd.f32 %v1264_v45, %v6215_v27  ;;  %v1496_v48 = vmax.f32 %v1188_v53, 0.0  ;;  %v1498_v30 = vmax.f32 %v1261_v33, 0.0  ;;  %v6488_v45 = vld [vmem:[%s7401_s3 + $0x18] sm:$0xff]  }
 0x170   : > { %v1511_v2 = vmax.f32 %v1190_v34, 0.0  ;;  %5160 = vmatmul.mubr.msk.bf16.gmra.mrb[68].mxu0 %vm2502_vm1, %v6422_v16  ;;  %v1513_v58 = vmax.f32 %v1263_v22, 0.0  ;;  %5165 = vmatmul.mubr.msk.bf16.gmra.mrb[68].mxu1 %vm2502_vm1, %v6422_v16 }
 0x171   : > { %v1512_v59 = vmax.f32 %v1192_v44, 0.0  ;;  %2685 = vmatpush1.bf16.msra.mxu0 %v6334_v26  ;;  %v1514_v60 = vmax.f32 %v1265_v62, 0.0  ;;  %2766 = vmatpush1.bf16.msra.mxu1 %v6337_v29  ;;  %v6457_v29 = vld [vmem:[%s7401_s3 + $0x10] sm:$0xff]  }
 0x172   : > { %v6440_v25 = vpack.c.bf16 %v1511_v2, %v1495_v46  ;;  %2686 = vmatprep.subr.bf16.mxu0 %v6361_v4  ;;  %v6444_v63 = vpack.c.bf16 %v1513_v58, %v1497_v50  ;;  %2767 = vmatprep.subr.bf16.mxu1 %v6363_v5 }
 0x173   : > { %v6446_v38 = vpack.c.bf16 %v1512_v59, %v1496_v48  ;;  %v1195_v40 = vpop.f32.mrb[44].mxu0  ;;  %2570 = vmatprep.mubr.bf16.mxu0 %v5610_v0  ;;  %v6450_v6 = vpack.c.bf16 %v1514_v60, %v1498_v30  ;;  %v1268_v7 = vpop.f32.mrb[44].mxu1  ;;  %2651 = vmatprep.mubr.bf16.mxu1 %v5610_v0 }
 0x174   : > { %v1196_v26 = vadd.f32 %v1195_v40, %v6231_v57  ;;  %v1197_v8 = vpop.f32.mrb[45].mxu0  ;;  %v1269_v4 = vadd.f32 %v1268_v7, %v6231_v57  ;;  %v1270_v55 = vpop.f32.mrb[45].mxu1 }
 0x175   : > { %v1198_v5 = vadd.f32 %v1197_v8, %v6231_v57  ;;  %2687 = vmatpush1.bf16.msra.mxu0 %v6356_v61  ;;  %v1199_v9 = vpop.f32.mrb[46].mxu0  ;;  %v1271_v10 = vadd.f32 %v1270_v55, %v6231_v57  ;;  %2768 = vmatpush1.bf16.msra.mxu1 %v6359_v3  ;;  %v1272_v13 = vpop.f32.mrb[46].mxu1 }
 0x176   : > { %v1200_v11 = vadd.f32 %v1199_v9, %v6241_v1  ;;  %2842 = vmatprep.subr.bf16.mxu0 %v6383_v42  ;;  %v1201_v35 = vpop.f32.mrb[47].mxu0  ;;  %v1273_v15 = vadd.f32 %v1272_v13, %v6241_v1  ;;  %2923 = vmatprep.subr.bf16.mxu1 %v6385_v43  ;;  %v1274_v47 = vpop.f32.mrb[47].mxu1  ;;  %v1527_v14 = vmax.f32 %v1196_v26, 0.0  ;;  %v1529_v3 = vmax.f32 %v1269_v4, 0.0 }
 0x177   : > { %v1202_v21 = vadd.f32 %v1201_v35, %v6241_v1  ;;  %v1275_v31 = vadd.f32 %v1274_v47, %v6241_v1  ;;  %v1528_v28 = vmax.f32 %v1198_v5, 0.0  ;;  %v1530_v42 = vmax.f32 %v1271_v10, 0.0 }
 0x178   : > { %v1543_v61 = vmax.f32 %v1200_v11, 0.0  ;;  %5161 = vmatmul.mubr.msk.bf16.gmra.mrb[72].mxu0 %vm2502_vm1, %v6457_v29  ;;  %v1545_v51 = vmax.f32 %v1273_v15, 0.0  ;;  %5166 = vmatmul.mubr.msk.bf16.gmra.mrb[72].mxu1 %vm2502_vm1, %v6457_v29 }
 0x179   : > { %v1544_v53 = vmax.f32 %v1202_v21, 0.0  ;;  %2580 = vmatprep.mubr.bf16.mxu0 %v5610_v0  ;;  %v1546_v32 = vmax.f32 %v1275_v31, 0.0  ;;  %2661 = vmatprep.mubr.bf16.mxu1 %v5610_v0  ;;  %v6515_v31 = vld [vmem:[%s7401_s3 + $0x20] ss:$0 sps:$4 sm:$0xff]  }
 0x17a   : > { %v6475_v43 = vpack.c.bf16 %v1543_v61, %v1527_v14  ;;  %v6478_v54 = vpack.c.bf16 %v1545_v51, %v1529_v3 }
 0x17b   : > { %v6480_v33 = vpack.c.bf16 %v1544_v53, %v1528_v28  ;;  %v1311_v34 = vpop.f32.mrb[48].mxu0  ;;  %v6482_v39 = vpack.c.bf16 %v1546_v32, %v1530_v42  ;;  %v1384_v22 = vpop.f32.mrb[48].mxu1 }
 0x17c   : > { %v1312_v19 = vadd.f32 %v1311_v34, %v6159_v12  ;;  %v1313_v44 = vpop.f32.mrb[49].mxu0  ;;  %v1385_v46 = vadd.f32 %v1384_v22, %v6159_v12  ;;  %v1386_v62 = vpop.f32.mrb[49].mxu1 }
 0x17d   : > { %v1314_v2 = vadd.f32 %v1313_v44, %v6159_v12  ;;  %v1315_v50 = vpop.f32.mrb[50].mxu0  ;;  %v1387_v48 = vadd.f32 %v1386_v62, %v6159_v12  ;;  %v1388_v59 = vpop.f32.mrb[50].mxu1 }
 0x17e   : > { %v1316_v58 = vadd.f32 %v1315_v50, %v6170_v24  ;;  %v1317_v30 = vpop.f32.mrb[51].mxu0  ;;  %v1389_v60 = vadd.f32 %v1388_v59, %v6170_v24  ;;  %v1390_v26 = vpop.f32.mrb[51].mxu1  ;;  %v1435_v7 = vmax.f32 %v1312_v19, 0.0  ;;  %v1437_v5 = vmax.f32 %v1385_v46, 0.0 }
 0x17f   : > { %v1318_v40 = vadd.f32 %v1317_v30, %v6170_v24  ;;  %v1391_v4 = vadd.f32 %v1390_v26, %v6170_v24  ;;  %v1436_v55 = vmax.f32 %v1314_v2, 0.0  ;;  %v1438_v10 = vmax.f32 %v1387_v48, 0.0 }
 0x180   : > { %v1451_v8 = vmax.f32 %v1316_v58, 0.0  ;;  %5162 = vmatmul.mubr.msk.bf16.gmra.mrb[76].mxu0 %vm2502_vm1, %v6488_v45  ;;  %v1453_v9 = vmax.f32 %v1389_v60, 0.0  ;;  %5167 = vmatmul.mubr.msk.bf16.gmra.mrb[76].mxu1 %vm2502_vm1, %v6488_v45 }
 0x181   : > { %v1452_v12 = vmax.f32 %v1318_v40, 0.0  ;;  %2590 = vmatprep.mubr.bf16.mxu0 %v5610_v0  ;;  %v1454_v13 = vmax.f32 %v1391_v4, 0.0  ;;  %2671 = vmatprep.mubr.bf16.mxu1 %v5610_v0 }
 0x182   : > { %v6502_v11 = vpack.c.bf16 %v1451_v8, %v1435_v7  ;;  %v6505_v35 = vpack.c.bf16 %v1453_v9, %v1437_v5 }
 0x183   : > { %v6507_v24 = vpack.c.bf16 %v1452_v12, %v1436_v55  ;;  %v1321_v15 = vpop.f32.mrb[52].mxu0  ;;  %v6509_v21 = vpack.c.bf16 %v1454_v13, %v1438_v10  ;;  %v1394_v14 = vpop.f32.mrb[52].mxu1 }
 0x184   : > { %v1322_v47 = vadd.f32 %v1321_v15, %v6168_v20  ;;  %v1323_v61 = vpop.f32.mrb[53].mxu0  ;;  %v1395_v3 = vadd.f32 %v1394_v14, %v6168_v20  ;;  %v1396_v51 = vpop.f32.mrb[53].mxu1 }
 0x185   : > { %v1324_v28 = vadd.f32 %v1323_v61, %v6168_v20  ;;  %v1325_v53 = vpop.f32.mrb[54].mxu0  ;;  %v1397_v42 = vadd.f32 %v1396_v51, %v6168_v20  ;;  %v1398_v34 = vpop.f32.mrb[54].mxu1 }
 0x186   : > { %v1326_v32 = vadd.f32 %v1325_v53, %v6191_v52  ;;  %v1327_v19 = vpop.f32.mrb[55].mxu0  ;;  %v1399_v22 = vadd.f32 %v1398_v34, %v6191_v52  ;;  %v1400_v46 = vpop.f32.mrb[55].mxu1  ;;  %v1467_v2 = vmax.f32 %v1322_v47, 0.0  ;;  %v1469_v48 = vmax.f32 %v1395_v3, 0.0 }
 0x187   : > { %v1328_v44 = vadd.f32 %v1327_v19, %v6191_v52  ;;  %v1401_v50 = vadd.f32 %v1400_v46, %v6191_v52  ;;  %v1468_v58 = vmax.f32 %v1324_v28, 0.0  ;;  %v1470_v30 = vmax.f32 %v1397_v42, 0.0 }
 0x188   : > { %v1483_v62 = vmax.f32 %v1326_v32, 0.0  ;;  %5163 = vmatmul.mubr.msk.bf16.gmra.mrb[80].mxu0 %vm2502_vm1, %v6515_v31  ;;  %v1485_v59 = vmax.f32 %v1399_v22, 0.0  ;;  %5168 = vmatmul.mubr.msk.bf16.gmra.mrb[80].mxu1 %vm2502_vm1, %v6515_v31 }
 0x189   : > { %v1484_v20 = vmax.f32 %v1328_v44, 0.0  ;;  %2712 = vmatprep.mubr.bf16.mxu0 %v5610_v0  ;;  %v1486_v40 = vmax.f32 %v1401_v50, 0.0  ;;  %2793 = vmatprep.mubr.bf16.mxu1 %v5610_v0 }
 0x18a   : > { %v6529_v60 = vpack.c.bf16 %v1483_v62, %v1467_v2  ;;  %v6532_v26 = vpack.c.bf16 %v1485_v59, %v1469_v48 }
 0x18b   : > { %v6534_v52 = vpack.c.bf16 %v1484_v20, %v1468_v58  ;;  %v1331_v7 = vpop.f32.mrb[56].mxu0  ;;  %v6536_v8 = vpack.c.bf16 %v1486_v40, %v1470_v30  ;;  %v1404_v5 = vpop.f32.mrb[56].mxu1 }
 0x18c   : > { %v1332_v4 = vadd.f32 %v1331_v7, %v6205_v17  ;;  %v1333_v55 = vpop.f32.mrb[57].mxu0  ;;  %v1405_v9 = vadd.f32 %v1404_v5, %v6205_v17  ;;  %v1406_v10 = vpop.f32.mrb[57].mxu1 }
 0x18d   : > { %v1334_v12 = vadd.f32 %v1333_v55, %v6205_v17  ;;  %v1335_v13 = vpop.f32.mrb[58].mxu0  ;;  %v1407_v15 = vadd.f32 %v1406_v10, %v6205_v17  ;;  %v1408_v14 = vpop.f32.mrb[58].mxu1 }
 0x18e   : > { %v1336_v47 = vadd.f32 %v1335_v13, %v6215_v27  ;;  %v1337_v61 = vpop.f32.mrb[59].mxu0  ;;  %v1409_v3 = vadd.f32 %v1408_v14, %v6215_v27  ;;  %v1410_v51 = vpop.f32.mrb[59].mxu1  ;;  %v1499_v53 = vmax.f32 %v1332_v4, 0.0  ;;  %v1501_v34 = vmax.f32 %v1405_v9, 0.0 }
 0x18f   : > { %v1338_v28 = vadd.f32 %v1337_v61, %v6215_v27  ;;  %v1411_v32 = vadd.f32 %v1410_v51, %v6215_v27  ;;  %v1500_v19 = vmax.f32 %v1334_v12, 0.0  ;;  %v1502_v44 = vmax.f32 %v1407_v15, 0.0 }
 0x190   : > { %v1515_v42 = vmax.f32 %v1336_v47, 0.0  ;;  %5169 = vmatmul.mubr.msk.bf16.vlgmr.msra.gmra.mrb[84].mxu0 %vm2502_vm1, %v6391_v56  ;;  %v1517_v22 = vmax.f32 %v1409_v3, 0.0  ;;  %5174 = vmatmul.mubr.msk.bf16.vlgmr.msra.gmra.mrb[84].mxu1 %vm2502_vm1, %v6391_v56  ;;  %v5611_v51 = vmov 1  }
 0x191   : > { %v1516_v17 = vmax.f32 %v1338_v28, 0.0  ;;  %2843 = vmatpush1.bf16.msra.mxu0 %v6378_v36  ;;  %v1518_v2 = vmax.f32 %v1411_v32, 0.0  ;;  %2924 = vmatpush1.bf16.msra.mxu1 %v6381_v41 }
 0x192   : > { %v6551_v46 = vpack.c.bf16 %v1515_v42, %v1499_v53  ;;  %2844 = vmatprep.subr.bf16.mxu0 %v6411_v18  ;;  %v6555_v27 = vpack.c.bf16 %v1517_v22, %v1501_v34  ;;  %2925 = vmatprep.subr.bf16.mxu1 %v6415_v49 }
 0x193   : > { %v6557_v62 = vpack.c.bf16 %v1516_v17, %v1500_v19  ;;  %v1341_v50 = vpop.f32.mrb[60].mxu0  ;;  %2722 = vmatprep.mubr.bf16.mxu0 %v5610_v0  ;;  %v6561_v48 = vpack.c.bf16 %v1518_v2, %v1502_v44  ;;  %v1414_v58 = vpop.f32.mrb[60].mxu1  ;;  %2803 = vmatprep.mubr.bf16.mxu1 %v5610_v0  ;;  %v6684_v2 = vld [vmem:[%s7405_s7] sm:$0xff] }
 0x194   : > { %v1342_v36 = vadd.f32 %v1341_v50, %v6231_v57  ;;  %v1343_v59 = vpop.f32.mrb[61].mxu0  ;;  %v1415_v41 = vadd.f32 %v1414_v58, %v6231_v57  ;;  %v1416_v20 = vpop.f32.mrb[61].mxu1  ;;  %5453 = vset.pattern.permute.xlu1 %v5611_v51  ;;  %5452 = vset.pattern.permute.xlu0 %v5611_v51 }
 0x195   : > { %v1344_v18 = vadd.f32 %v1343_v59, %v6231_v57  ;;  %2845 = vmatpush1.bf16.msra.mxu0 %v6405_v37  ;;  %v1345_v30 = vpop.f32.mrb[62].mxu0  ;;  %v1417_v49 = vadd.f32 %v1416_v20, %v6231_v57  ;;  %2926 = vmatpush1.bf16.msra.mxu1 %v6409_v23  ;;  %v1418_v7 = vpop.f32.mrb[62].mxu1 }
 0x196   : > { %v1346_v40 = vadd.f32 %v1345_v30, %v6241_v1  ;;  %2846 = vmatprep.subr.bf16.mxu0 %v6446_v38  ;;  %v1347_v4 = vpop.f32.mrb[63].mxu0  ;;  %v1419_v5 = vadd.f32 %v1418_v7, %v6241_v1  ;;  %2927 = vmatprep.subr.bf16.mxu1 %v6450_v6  ;;  %v1420_v9 = vpop.f32.mrb[63].mxu1  ;;  %v1531_v12 = vmax.f32 %v1342_v36, 0.0  ;;  %v1533_v57 = vmax.f32 %v1415_v41, 0.0 }
 0x197   : > { %v1348_v55 = vadd.f32 %v1347_v4, %v6241_v1  ;;  %v1421_v10 = vadd.f32 %v1420_v9, %v6241_v1  ;;  %v1532_v23 = vmax.f32 %v1344_v18, 0.0  ;;  %v1534_v38 = vmax.f32 %v1417_v49, 0.0  ;;  %3367 = vperm.xlu0 %5452, %v6684_v2   ;;  %v5572_v49 = vld [vmem:[%s7405_s7 + $0x10] sm:$0xff] }
 0x198   : > { %v1547_v37 = vmax.f32 %v1346_v40, 0.0  ;;  %5170 = vmatmul.mubr.msk.bf16.gmra.mrb[88].mxu0 %vm2502_vm1, %v6422_v16  ;;  %v1549_v13 = vmax.f32 %v1419_v5, 0.0  ;;  %5175 = vmatmul.mubr.msk.bf16.gmra.mrb[88].mxu1 %vm2502_vm1, %v6422_v16  ;;  %v5573_v40 = vld [vmem:[%s7405_s7 + $0x18] sm:$0xff] }
 0x199   : > { %v1548_v15 = vmax.f32 %v1348_v55, 0.0  ;;  %2847 = vmatpush1.bf16.msra.mxu0 %v6440_v25  ;;  %v1550_v47 = vmax.f32 %v1421_v10, 0.0  ;;  %2928 = vmatpush1.bf16.msra.mxu1 %v6444_v63 }
 0x19a   : > { %v1611_v6 = vpack.c.bf16 %v1547_v37, %v1531_v12  ;;  %2848 = vmatprep.subr.bf16.mxu0 %v6480_v33  ;;  %v1613_v1 = vpack.c.bf16 %v1549_v13, %v1533_v57  ;;  %2929 = vmatprep.subr.bf16.mxu1 %v6482_v39  ;;  %v5575_v13 = vld [vmem:[%s7405_s7 + $0x28] sm:$0xff] }
 0x19b   : > { %v1612_v14 = vpack.c.bf16 %v1548_v15, %v1532_v23  ;;  %2732 = vmatprep.mubr.bf16.mxu0 %v5610_v0  ;;  %v1614_v61 = vpack.c.bf16 %v1550_v47, %v1534_v38  ;;  %2813 = vmatprep.mubr.bf16.mxu1 %v5610_v0  ;;  %v5574_v23 = vld [vmem:[%s7405_s7 + $0x20] sm:$0xff] }
 0x19c   : > { %3379 = vperm.xlu0 %5452, %v5573_v40  }
 0x19d   : > { %2849 = vmatpush1.bf16.msra.mxu0 %v6475_v43  ;;  %2930 = vmatpush1.bf16.msra.mxu1 %v6478_v54 }
 0x19e   : > { %3004 = vmatprep.subr.bf16.mxu0 %v6507_v24  ;;  %3085 = vmatprep.subr.bf16.mxu1 %v6509_v21 }
 0x1a0   : > { %5171 = vmatmul.mubr.msk.bf16.gmra.mrb[92].mxu0 %vm2502_vm1, %v6457_v29  ;;  %5176 = vmatmul.mubr.msk.bf16.gmra.mrb[92].mxu1 %vm2502_vm1, %v6457_v29 }
 0x1a1   : > { %2742 = vmatprep.mubr.bf16.mxu0 %v5610_v0  ;;  %2823 = vmatprep.mubr.bf16.mxu1 %v5610_v0 }
 0x1a2   : > { %3387 = vperm.xlu0 %5452, %v5575_v13  }
 0x1a8   : > { %5172 = vmatmul.mubr.msk.bf16.gmra.mrb[96].mxu0 %vm2502_vm1, %v6488_v45  ;;  %5177 = vmatmul.mubr.msk.bf16.gmra.mrb[96].mxu1 %vm2502_vm1, %v6488_v45 }
 0x1a9   : > { %2752 = vmatprep.mubr.bf16.mxu0 %v5610_v0  ;;  %2833 = vmatprep.mubr.bf16.mxu1 %v5610_v0 }
 0x1b0   : > { %5173 = vmatmul.mubr.msk.bf16.gmra.mrb[100].mxu0 %vm2502_vm1, %v6515_v31  ;;  %5178 = vmatmul.mubr.msk.bf16.gmra.mrb[100].mxu1 %vm2502_vm1, %v6515_v31 }
 0x1b1   : > { %2874 = vmatprep.mubr.bf16.mxu0 %v5610_v0  ;;  %2955 = vmatprep.mubr.bf16.mxu1 %v5610_v0 }
 0x1b8   : > { %5179 = vmatmul.mubr.msk.bf16.vlgmr.msra.gmra.mrb[104].mxu0 %vm2502_vm1, %v6391_v56  ;;  %5184 = vmatmul.mubr.msk.bf16.vlgmr.msra.gmra.mrb[104].mxu1 %vm2502_vm1, %v6391_v56 }
 0x1b9   : > { %3005 = vmatpush1.bf16.msra.mxu0 %v6502_v11  ;;  %3086 = vmatpush1.bf16.msra.mxu1 %v6505_v35 }
 0x1ba   : > { %3006 = vmatprep.subr.bf16.mxu0 %v6534_v52  ;;  %3087 = vmatprep.subr.bf16.mxu1 %v6536_v8 }
 0x1bb   : > { %2884 = vmatprep.mubr.bf16.mxu0 %v5610_v0  ;;  %2965 = vmatprep.mubr.bf16.mxu1 %v5610_v0 }
 0x1bd   : > { %3007 = vmatpush1.bf16.msra.mxu0 %v6529_v60  ;;  %3088 = vmatpush1.bf16.msra.mxu1 %v6532_v26 }
 0x1be   : > { %3008 = vmatprep.subr.bf16.mxu0 %v6557_v62  ;;  %3089 = vmatprep.subr.bf16.mxu1 %v6561_v48 }
 0x1c0   : > { %5180 = vmatmul.mubr.msk.bf16.gmra.mrb[108].mxu0 %vm2502_vm1, %v6422_v16  ;;  %5185 = vmatmul.mubr.msk.bf16.gmra.mrb[108].mxu1 %vm2502_vm1, %v6422_v16 }
 0x1c1   : > { %3009 = vmatpush1.bf16.msra.mxu0 %v6551_v46  ;;  %3090 = vmatpush1.bf16.msra.mxu1 %v6555_v27  ;;  %v5570_v46 = vld [vmem:[%s7405_s7 + $0x8] sm:$0xff] }
 0x1c2   : > { %3010 = vmatprep.subr.bf16.mxu0 %v1612_v14  ;;  %3091 = vmatprep.subr.bf16.mxu1 %v1614_v61 }
 0x1c3   : > { %2894 = vmatprep.mubr.bf16.mxu0 %v5610_v0  ;;  %2975 = vmatprep.mubr.bf16.mxu1 %v5610_v0 }
 0x1c4   : > { %3371 = vperm.xlu1 %5453, %v5570_v46  }
 0x1c5   : > { %3011 = vmatpush1.bf16.msra.mxu0 %v1611_v6  ;;  %3092 = vmatpush1.bf16.msra.mxu1 %v1613_v1 }
 0x1c8   : > { %5181 = vmatmul.mubr.msk.bf16.gmra.mrb[112].mxu0 %vm2502_vm1, %v6457_v29  ;;  %5186 = vmatmul.mubr.msk.bf16.gmra.mrb[112].mxu1 %vm2502_vm1, %v6457_v29 }
 0x1c9   : > { %2904 = vmatprep.mubr.bf16.mxu0 %v5610_v0  ;;  %2985 = vmatprep.mubr.bf16.mxu1 %v5610_v0 }
 0x1ca   : > { %3375 = vperm.xlu1 %5453, %v5572_v49  }
 0x1ce   : > { %3383 = vperm.xlu1 %5453, %v5574_v23  }
 0x1d0   : > { %5182 = vmatmul.mubr.msk.bf16.gmra.mrb[116].mxu0 %vm2502_vm1, %v6488_v45  ;;  %5187 = vmatmul.mubr.msk.bf16.gmra.mrb[116].mxu1 %vm2502_vm1, %v6488_v45 }
 0x1d1   : > { %2914 = vmatprep.mubr.bf16.mxu0 %v5610_v0  ;;  %2995 = vmatprep.mubr.bf16.mxu1 %v5610_v0 }
 0x1d8   : > { %5183 = vmatmul.mubr.msk.bf16.gmra.mrb[120].mxu0 %vm2502_vm1, %v6515_v31  ;;  %5188 = vmatmul.mubr.msk.bf16.gmra.mrb[120].mxu1 %vm2502_vm1, %v6515_v31 }
 0x1d9   : > { %3036 = vmatprep.mubr.bf16.mxu0 %v5610_v0  ;;  %3117 = vmatprep.mubr.bf16.mxu1 %v5610_v0 }
 0x1e0   : > { %5189 = vmatmul.mubr.msk.bf16.vlgmr.msra.gmra.mrb[124].mxu0 %vm2502_vm1, %v6391_v56  ;;  %5194 = vmatmul.mubr.msk.bf16.vlgmr.msra.gmra.mrb[124].mxu1 %vm2502_vm1, %v6391_v56 }
 0x1e1   : > { %3046 = vmatprep.mubr.bf16.mxu0 %v5610_v0  ;;  %3127 = vmatprep.mubr.bf16.mxu1 %v5610_v0 }
 0x1e8   : > { %5190 = vmatmul.mubr.msk.bf16.gmra.mrb[128].mxu0 %vm2502_vm1, %v6422_v16  ;;  %5195 = vmatmul.mubr.msk.bf16.gmra.mrb[128].mxu1 %vm2502_vm1, %v6422_v16 }
 0x1e9   : > { %3056 = vmatprep.mubr.bf16.mxu0 %v5610_v0  ;;  %3137 = vmatprep.mubr.bf16.mxu1 %v5610_v0 }
 0x1f0   : > { %5191 = vmatmul.mubr.msk.bf16.gmra.mrb[132].mxu0 %vm2502_vm1, %v6457_v29  ;;  %5196 = vmatmul.mubr.msk.bf16.gmra.mrb[132].mxu1 %vm2502_vm1, %v6457_v29 }
 0x1f1   : > { %3066 = vmatprep.mubr.bf16.mxu0 %v5610_v0  ;;  %3147 = vmatprep.mubr.bf16.mxu1 %v5610_v0 }
 0x1f8   : > { %5192 = vmatmul.mubr.msk.bf16.gmra.mrb[136].mxu0 %vm2502_vm1, %v6488_v45  ;;  %5197 = vmatmul.mubr.msk.bf16.gmra.mrb[136].mxu1 %vm2502_vm1, %v6488_v45 }
 0x1f9   : > { %3076 = vmatprep.mubr.bf16.mxu0 %v5610_v0  ;;  %3157 = vmatprep.mubr.bf16.mxu1 %v5610_v0 }
 0x200   : > { %5193 = vmatmul.mubr.msk.bf16.gmra.mrb[140].mxu0 %vm2502_vm1, %v6515_v31  ;;  %5198 = vmatmul.mubr.msk.bf16.gmra.mrb[140].mxu1 %vm2502_vm1, %v6515_v31 }
 0x201   : > { %3462 = vmatprep.mubr.bf16.mxu0 %v5610_v0  ;;  %3535 = vmatprep.mubr.bf16.mxu1 %v5610_v0 }
 0x23b   : > { %v2552_v56 = vpop.f32.mrb[64].mxu0  ;;  %v2633_v16 = vpop.f32.mrb[64].mxu1 }
 0x23c   : > { %v2554_v25 = vpop.f32.mrb[65].mxu0  ;;  %v2635_v63 = vpop.f32.mrb[65].mxu1  ;;  %v3166_v43 = vmax.f32 %v2552_v56, 0.0  ;;  %v3168_v45 = vmax.f32 %v2633_v16, 0.0 }
 0x23d   : > { %v2556_v29 = vpop.f32.mrb[66].mxu0  ;;  %v2637_v33 = vpop.f32.mrb[66].mxu1  ;;  %v3167_v11 = vmax.f32 %v2554_v25, 0.0  ;;  %v3169_v60 = vmax.f32 %v2635_v63, 0.0 }
 0x23e   : > { %v3182_v54 = vmax.f32 %v2556_v29, 0.0  ;;  %v2558_v39 = vpop.f32.mrb[67].mxu0  ;;  %v3184_v35 = vmax.f32 %v2637_v33, 0.0  ;;  %v2639_v21 = vpop.f32.mrb[67].mxu1  ;;  %v5576_v29 = vld [vmem:[%s7405_s7 + $0x30] sm:$0xff] }
 0x23f   : > { %v3183_v24 = vmax.f32 %v2558_v39, 0.0  ;;  %v3185_v26 = vmax.f32 %v2639_v21, 0.0  ;;  %3391 = vperm.xlu1 %5453, %v5576_v29  }
 0x240   : > { %v3294_v31 = vpack.c.bf16 %v3182_v54, %v3166_v43  ;;  %v3296_v52 = vpack.c.bf16 %v3184_v35, %v3168_v45  ;;  %v5577_v43 = vld [vmem:[%s7405_s7 + $0x38] sm:$0xff] }
 0x241   : > { %v3295_v8 = vpack.c.bf16 %v3183_v24, %v3167_v11  ;;  %v3297_v3 = vpack.c.bf16 %v3185_v26, %v3169_v60  ;;  %3395 = vperm.xlu0 %5452, %v5577_v43  }
 0x243   : > { %v2562_v28 = vpop.f32.mrb[68].mxu0  ;;  %3430 = vmatprep.subr.bf16.mxu0 %v3295_v8  ;;  %v2643_v53 = vpop.f32.mrb[68].mxu1  ;;  %3503 = vmatprep.subr.bf16.mxu1 %v3297_v3 }
 0x244   : > { %v2564_v42 = vpop.f32.mrb[69].mxu0  ;;  %3431 = vmatpush1.bf16.msra.mxu0 %v3294_v31  ;;  %v2645_v32 = vpop.f32.mrb[69].mxu1  ;;  %3504 = vmatpush1.bf16.msra.mxu1 %v3296_v52  ;;  %v3198_v19 = vmax.f32 %v2562_v28, 0.0  ;;  %v3200_v27 = vmax.f32 %v2643_v53, 0.0 }
 0x245   : > { %v2566_v34 = vpop.f32.mrb[70].mxu0  ;;  %v2647_v17 = vpop.f32.mrb[70].mxu1  ;;  %v3199_v62 = vmax.f32 %v2564_v42, 0.0  ;;  %v3201_v58 = vmax.f32 %v2645_v32, 0.0 }
 0x246   : > { %v3214_v22 = vmax.f32 %v2566_v34, 0.0  ;;  %v2568_v44 = vpop.f32.mrb[71].mxu0  ;;  %v3216_v50 = vmax.f32 %v2647_v17, 0.0  ;;  %v2649_v36 = vpop.f32.mrb[71].mxu1 }
 0x247   : > { %v3215_v48 = vmax.f32 %v2568_v44, 0.0  ;;  %v3217_v41 = vmax.f32 %v2649_v36, 0.0 }
 0x248   : > { %v3310_v59 = vpack.c.bf16 %v3214_v22, %v3198_v19  ;;  %v3312_v18 = vpack.c.bf16 %v3216_v50, %v3200_v27  ;;  %v6710_v22 = vld [vmem:[%s7403_s5] sm:$0xff]  }
 0x249   : > { %v3311_v20 = vpack.c.bf16 %v3215_v48, %v3199_v62  ;;  %v3313_v30 = vpack.c.bf16 %v3217_v41, %v3201_v58  ;;  %v6727_v58 = vld [vmem:[%s7403_s5 + $0x8] sm:$0xff]  }
 0x24b   : > { %v2572_v7 = vpop.f32.mrb[72].mxu0  ;;  %3432 = vmatprep.subr.bf16.mxu0 %v3311_v20  ;;  %v2653_v4 = vpop.f32.mrb[72].mxu1  ;;  %3505 = vmatprep.subr.bf16.mxu1 %v3313_v30 }
 0x24c   : > { %v2574_v5 = vpop.f32.mrb[73].mxu0  ;;  %3433 = vmatpush1.bf16.msra.mxu0 %v3310_v59  ;;  %v2655_v55 = vpop.f32.mrb[73].mxu1  ;;  %3506 = vmatpush1.bf16.msra.mxu1 %v3312_v18  ;;  %v3230_v12 = vmax.f32 %v2572_v7, 0.0  ;;  %v3232_v15 = vmax.f32 %v2653_v4, 0.0 }
 0x24d   : > { %v2576_v9 = vpop.f32.mrb[74].mxu0  ;;  %v2657_v10 = vpop.f32.mrb[74].mxu1  ;;  %v3231_v38 = vmax.f32 %v2574_v5, 0.0  ;;  %v3233_v14 = vmax.f32 %v2655_v55, 0.0 }
 0x24e   : > { %v3246_v37 = vmax.f32 %v2576_v9, 0.0  ;;  %v2578_v57 = vpop.f32.mrb[75].mxu0  ;;  %v3248_v6 = vmax.f32 %v2657_v10, 0.0  ;;  %v2659_v1 = vpop.f32.mrb[75].mxu1 }
 0x24f   : > { %v3247_v47 = vmax.f32 %v2578_v57, 0.0  ;;  %v3249_v56 = vmax.f32 %v2659_v1, 0.0 }
 0x250   : > { %v3326_v61 = vpack.c.bf16 %v3246_v37, %v3230_v12  ;;  %v3328_v16 = vpack.c.bf16 %v3248_v6, %v3232_v15  ;;  %v6738_v6 = vld [vmem:[%s7403_s5 + $0x10] sm:$0xff]  }
 0x251   : > { %v3327_v25 = vpack.c.bf16 %v3247_v47, %v3231_v38  ;;  %v3329_v63 = vpack.c.bf16 %v3249_v56, %v3233_v14 }
 0x253   : > { %v2582_v54 = vpop.f32.mrb[76].mxu0  ;;  %3434 = vmatprep.subr.bf16.mxu0 %v3327_v25  ;;  %v2663_v33 = vpop.f32.mrb[76].mxu1  ;;  %3507 = vmatprep.subr.bf16.mxu1 %v3329_v63 }
 0x254   : > { %v2584_v39 = vpop.f32.mrb[77].mxu0  ;;  %3435 = vmatpush1.bf16.msra.mxu0 %v3326_v61  ;;  %v2665_v45 = vpop.f32.mrb[77].mxu1  ;;  %3508 = vmatpush1.bf16.msra.mxu1 %v3328_v16  ;;  %v3262_v35 = vmax.f32 %v2582_v54, 0.0  ;;  %v3264_v31 = vmax.f32 %v2663_v33, 0.0 }
 0x255   : > { %v2586_v11 = vpop.f32.mrb[78].mxu0  ;;  %v2667_v21 = vpop.f32.mrb[78].mxu1  ;;  %v3263_v26 = vmax.f32 %v2584_v39, 0.0  ;;  %v3265_v28 = vmax.f32 %v2665_v45, 0.0 }
 0x256   : > { %v3278_v24 = vmax.f32 %v2586_v11, 0.0  ;;  %v2588_v60 = vpop.f32.mrb[79].mxu0  ;;  %v3280_v52 = vmax.f32 %v2667_v21, 0.0  ;;  %v2669_v3 = vpop.f32.mrb[79].mxu1 }
 0x257   : > { %v3279_v8 = vmax.f32 %v2588_v60, 0.0  ;;  %v3281_v53 = vmax.f32 %v2669_v3, 0.0 }
 0x258   : > { %v3342_v51 = vpack.c.bf16 %v3278_v24, %v3262_v35  ;;  %v3344_v42 = vpack.c.bf16 %v3280_v52, %v3264_v31 }
 0x259   : > { %v3343_v32 = vpack.c.bf16 %v3279_v8, %v3263_v26  ;;  %v3345_v34 = vpack.c.bf16 %v3281_v53, %v3265_v28  ;;  %v6749_v26 = vld [vmem:[%s7403_s5 + $0x18] sm:$0xff]  }
 0x25b   : > { %v6705_v19 = vpop.f32.mrb[80].mxu0  ;;  %3436 = vmatprep.subr.bf16.mxu0 %v3343_v32  ;;  %v6712_v17 = vpop.f32.mrb[80].mxu1  ;;  %3509 = vmatprep.subr.bf16.mxu1 %v3345_v34 }
 0x25c   : > { %v6714_v44 = vpop.f32.mrb[81].mxu0  ;;  %3437 = vmatpush1.bf16.msra.mxu0 %v3342_v51  ;;  %v6716_v46 = vpop.f32.mrb[81].mxu1  ;;  %3510 = vmatpush1.bf16.msra.mxu1 %v3344_v42 }
 0x25d   : > { %v2596_v27 = vpop.f32.mrb[82].mxu0  ;;  %v2677_v62 = vpop.f32.mrb[82].mxu1 }
 0x25e   : > { %v2597_v50 = vpop.f32.mrb[83].mxu0  ;;  %v2678_v48 = vpop.f32.mrb[83].mxu1 }
 0x25f   : > { %5203 = vmatmul.mubr.msk.bf16.vlgmr.msra.gmra.mrb[144].mxu0 %vm2502_vm1, %v6710_v22  ;;  %5207 = vmatmul.mubr.msk.bf16.vlgmr.msra.gmra.mrb[144].mxu1 %vm2502_vm1, %v6710_v22 }
 0x260   : > { %3472 = vmatprep.mubr.bf16.mxu0 %v5610_v0  ;;  %3545 = vmatprep.mubr.bf16.mxu1 %v5610_v0 }
 0x263   : > { %v2714_v36 = vpop.f32.mrb[84].mxu0  ;;  %v2795_v59 = vpop.f32.mrb[84].mxu1 }
 0x264   : > { %v2716_v41 = vpop.f32.mrb[85].mxu0  ;;  %v2797_v18 = vpop.f32.mrb[85].mxu1  ;;  %v3170_v30 = vmax.f32 %v2714_v36, 0.0  ;;  %v3172_v4 = vmax.f32 %v2795_v59, 0.0 }
 0x265   : > { %v2718_v20 = vpop.f32.mrb[86].mxu0  ;;  %v2799_v40 = vpop.f32.mrb[86].mxu1  ;;  %v3171_v5 = vmax.f32 %v2716_v41, 0.0  ;;  %v3173_v37 = vmax.f32 %v2797_v18, 0.0 }
 0x266   : > { %v3186_v49 = vmax.f32 %v2718_v20, 0.0  ;;  %v2720_v7 = vpop.f32.mrb[87].mxu0  ;;  %v3188_v55 = vmax.f32 %v2799_v40, 0.0  ;;  %v2801_v12 = vpop.f32.mrb[87].mxu1 }
 0x267   : > { %v3187_v9 = vmax.f32 %v2720_v7, 0.0  ;;  %5204 = vmatmul.mubr.msk.bf16.gmra.mrb[148].mxu0 %vm2502_vm1, %v6727_v58  ;;  %v3189_v57 = vmax.f32 %v2801_v12, 0.0  ;;  %5208 = vmatmul.mubr.msk.bf16.gmra.mrb[148].mxu1 %vm2502_vm1, %v6727_v58 }
 0x268   : > { %v3298_v10 = vpack.c.bf16 %v3186_v49, %v3170_v30  ;;  %3482 = vmatprep.mubr.bf16.mxu0 %v5610_v0  ;;  %v3300_v23 = vpack.c.bf16 %v3188_v55, %v3172_v4  ;;  %3555 = vmatprep.mubr.bf16.mxu1 %v5610_v0 }
 0x269   : > { %v3299_v13 = vpack.c.bf16 %v3187_v9, %v3171_v5  ;;  %v3301_v15 = vpack.c.bf16 %v3189_v57, %v3173_v37 }
 0x26b   : > { %v2724_v38 = vpop.f32.mrb[88].mxu0  ;;  %3576 = vmatprep.subr.bf16.mxu0 %v3299_v13  ;;  %v2805_v47 = vpop.f32.mrb[88].mxu1  ;;  %3649 = vmatprep.subr.bf16.mxu1 %v3301_v15 }
 0x26c   : > { %v2726_v1 = vpop.f32.mrb[89].mxu0  ;;  %3577 = vmatpush1.bf16.msra.mxu0 %v3298_v10  ;;  %v2807_v14 = vpop.f32.mrb[89].mxu1  ;;  %3650 = vmatpush1.bf16.msra.mxu1 %v3300_v23  ;;  %v3202_v56 = vmax.f32 %v2724_v38, 0.0  ;;  %v3204_v29 = vmax.f32 %v2805_v47, 0.0 }
 0x26d   : > { %v2728_v61 = vpop.f32.mrb[90].mxu0  ;;  %v2809_v25 = vpop.f32.mrb[90].mxu1  ;;  %v3203_v43 = vmax.f32 %v2726_v1, 0.0  ;;  %v3205_v45 = vmax.f32 %v2807_v14, 0.0 }
 0x26e   : > { %v3218_v16 = vmax.f32 %v2728_v61, 0.0  ;;  %v2730_v63 = vpop.f32.mrb[91].mxu0  ;;  %v3220_v54 = vmax.f32 %v2809_v25, 0.0  ;;  %v2811_v39 = vpop.f32.mrb[91].mxu1 }
 0x26f   : > { %v3219_v33 = vmax.f32 %v2730_v63, 0.0  ;;  %5205 = vmatmul.mubr.msk.bf16.gmra.mrb[152].mxu0 %vm2502_vm1, %v6738_v6  ;;  %v3221_v35 = vmax.f32 %v2811_v39, 0.0  ;;  %5209 = vmatmul.mubr.msk.bf16.gmra.mrb[152].mxu1 %vm2502_vm1, %v6738_v6 }
 0x270   : > { %v3314_v11 = vpack.c.bf16 %v3218_v16, %v3202_v56  ;;  %3492 = vmatprep.mubr.bf16.mxu0 %v5610_v0  ;;  %v3316_v24 = vpack.c.bf16 %v3220_v54, %v3204_v29  ;;  %3565 = vmatprep.mubr.bf16.mxu1 %v5610_v0 }
 0x271   : > { %v3315_v21 = vpack.c.bf16 %v3219_v33, %v3203_v43  ;;  %v3317_v60 = vpack.c.bf16 %v3221_v35, %v3205_v45 }
 0x273   : > { %v2734_v31 = vpop.f32.mrb[92].mxu0  ;;  %3578 = vmatprep.subr.bf16.mxu0 %v3315_v21  ;;  %v2815_v52 = vpop.f32.mrb[92].mxu1  ;;  %3651 = vmatprep.subr.bf16.mxu1 %v3317_v60 }
 0x274   : > { %v2736_v8 = vpop.f32.mrb[93].mxu0  ;;  %3579 = vmatpush1.bf16.msra.mxu0 %v3314_v11  ;;  %v2817_v3 = vpop.f32.mrb[93].mxu1  ;;  %3652 = vmatpush1.bf16.msra.mxu1 %v3316_v24  ;;  %v3234_v51 = vmax.f32 %v2734_v31, 0.0  ;;  %v3236_v34 = vmax.f32 %v2815_v52, 0.0 }
 0x275   : > { %v2738_v28 = vpop.f32.mrb[94].mxu0  ;;  %v2819_v42 = vpop.f32.mrb[94].mxu1  ;;  %v3235_v27 = vmax.f32 %v2736_v8, 0.0  ;;  %v3237_v36 = vmax.f32 %v2817_v3, 0.0 }
 0x276   : > { %v3250_v53 = vmax.f32 %v2738_v28, 0.0  ;;  %v2740_v32 = vpop.f32.mrb[95].mxu0  ;;  %v3252_v62 = vmax.f32 %v2819_v42, 0.0  ;;  %v2821_v48 = vpop.f32.mrb[95].mxu1 }
 0x277   : > { %v3251_v50 = vmax.f32 %v2740_v32, 0.0  ;;  %5206 = vmatmul.mubr.msk.bf16.gmra.mrb[156].mxu0 %vm2502_vm1, %v6749_v26  ;;  %v3253_v41 = vmax.f32 %v2821_v48, 0.0  ;;  %5210 = vmatmul.mubr.msk.bf16.gmra.mrb[156].mxu1 %vm2502_vm1, %v6749_v26 }
 0x278   : > { %v3330_v59 = vpack.c.bf16 %v3250_v53, %v3234_v51  ;;  %3608 = vmatprep.mubr.bf16.mxu0 %v5610_v0  ;;  %v3332_v18 = vpack.c.bf16 %v3252_v62, %v3236_v34  ;;  %3681 = vmatprep.mubr.bf16.mxu1 %v5610_v0 }
 0x279   : > { %v3331_v20 = vpack.c.bf16 %v3251_v50, %v3235_v27  ;;  %v3333_v30 = vpack.c.bf16 %v3253_v41, %v3237_v36 }
 0x27b   : > { %v2744_v49 = vpop.f32.mrb[96].mxu0  ;;  %3580 = vmatprep.subr.bf16.mxu0 %v3331_v20  ;;  %v2825_v40 = vpop.f32.mrb[96].mxu1  ;;  %3653 = vmatprep.subr.bf16.mxu1 %v3333_v30 }
 0x27c   : > { %v2746_v7 = vpop.f32.mrb[97].mxu0  ;;  %3581 = vmatpush1.bf16.msra.mxu0 %v3330_v59  ;;  %v2827_v4 = vpop.f32.mrb[97].mxu1  ;;  %3654 = vmatpush1.bf16.msra.mxu1 %v3332_v18  ;;  %v3266_v55 = vmax.f32 %v2744_v49, 0.0  ;;  %v3268_v10 = vmax.f32 %v2825_v40, 0.0 }
 0x27d   : > { %v2748_v5 = vpop.f32.mrb[98].mxu0  ;;  %v2829_v12 = vpop.f32.mrb[98].mxu1  ;;  %v3267_v57 = vmax.f32 %v2746_v7, 0.0  ;;  %v3269_v38 = vmax.f32 %v2827_v4, 0.0 }
 0x27e   : > { %v3282_v9 = vmax.f32 %v2748_v5, 0.0  ;;  %v2750_v37 = vpop.f32.mrb[99].mxu0  ;;  %v3284_v23 = vmax.f32 %v2829_v12, 0.0  ;;  %v2831_v15 = vpop.f32.mrb[99].mxu1 }
 0x27f   : > { %v3283_v13 = vmax.f32 %v2750_v37, 0.0  ;;  %v3285_v1 = vmax.f32 %v2831_v15, 0.0 }
 0x280   : > { %v3346_v47 = vpack.c.bf16 %v3282_v9, %v3266_v55  ;;  %v3348_v14 = vpack.c.bf16 %v3284_v23, %v3268_v10 }
 0x281   : > { %v3347_v61 = vpack.c.bf16 %v3283_v13, %v3267_v57  ;;  %v3349_v56 = vpack.c.bf16 %v3285_v1, %v3269_v38 }
 0x283   : > { %v6757_v16 = vpop.f32.mrb[100].mxu0  ;;  %3582 = vmatprep.subr.bf16.mxu0 %v3347_v61  ;;  %v6759_v25 = vpop.f32.mrb[100].mxu1  ;;  %3655 = vmatprep.subr.bf16.mxu1 %v3349_v56 }
 0x284   : > { %v6761_v63 = vpop.f32.mrb[101].mxu0  ;;  %3583 = vmatpush1.bf16.msra.mxu0 %v3346_v47  ;;  %v6763_v29 = vpop.f32.mrb[101].mxu1  ;;  %3656 = vmatpush1.bf16.msra.mxu1 %v3348_v14 }
 0x285   : > { %v2758_v43 = vpop.f32.mrb[102].mxu0  ;;  %v2839_v54 = vpop.f32.mrb[102].mxu1 }
 0x286   : > { %v2759_v33 = vpop.f32.mrb[103].mxu0  ;;  %v2840_v39 = vpop.f32.mrb[103].mxu1 }
 0x287   : > { %5211 = vmatmul.mubr.msk.bf16.vlgmr.msra.gmra.mrb[160].mxu0 %vm2502_vm1, %v6710_v22  ;;  %5215 = vmatmul.mubr.msk.bf16.vlgmr.msra.gmra.mrb[160].mxu1 %vm2502_vm1, %v6710_v22 }
 0x288   : > { %3618 = vmatprep.mubr.bf16.mxu0 %v5610_v0  ;;  %3691 = vmatprep.mubr.bf16.mxu1 %v5610_v0 }
 0x28b   : > { %v2876_v45 = vpop.f32.mrb[104].mxu0  ;;  %v2957_v11 = vpop.f32.mrb[104].mxu1 }
 0x28c   : > { %v2878_v35 = vpop.f32.mrb[105].mxu0  ;;  %v2959_v24 = vpop.f32.mrb[105].mxu1  ;;  %v3174_v60 = vmax.f32 %v2876_v45, 0.0  ;;  %v3176_v3 = vmax.f32 %v2957_v11, 0.0 }
 0x28d   : > { %v2880_v21 = vpop.f32.mrb[106].mxu0  ;;  %v2961_v52 = vpop.f32.mrb[106].mxu1  ;;  %v3175_v28 = vmax.f32 %v2878_v35, 0.0  ;;  %v3177_v32 = vmax.f32 %v2959_v24, 0.0 }
 0x28e   : > { %v3190_v31 = vmax.f32 %v2880_v21, 0.0  ;;  %v2882_v8 = vpop.f32.mrb[107].mxu0  ;;  %v3192_v51 = vmax.f32 %v2961_v52, 0.0  ;;  %v2963_v42 = vpop.f32.mrb[107].mxu1 }
 0x28f   : > { %v3191_v53 = vmax.f32 %v2882_v8, 0.0  ;;  %5212 = vmatmul.mubr.msk.bf16.gmra.mrb[164].mxu0 %vm2502_vm1, %v6727_v58  ;;  %v3193_v27 = vmax.f32 %v2963_v42, 0.0  ;;  %5216 = vmatmul.mubr.msk.bf16.gmra.mrb[164].mxu1 %vm2502_vm1, %v6727_v58 }
 0x290   : > { %v3302_v34 = vpack.c.bf16 %v3190_v31, %v3174_v60  ;;  %3628 = vmatprep.mubr.bf16.mxu0 %v5610_v0  ;;  %v3304_v62 = vpack.c.bf16 %v3192_v51, %v3176_v3  ;;  %3701 = vmatprep.mubr.bf16.mxu1 %v5610_v0 }
 0x291   : > { %v3303_v50 = vpack.c.bf16 %v3191_v53, %v3175_v28  ;;  %v3305_v48 = vpack.c.bf16 %v3193_v27, %v3177_v32 }
 0x293   : > { %v2886_v36 = vpop.f32.mrb[108].mxu0  ;;  %3722 = vmatprep.subr.bf16.mxu0 %v3303_v50  ;;  %v2967_v59 = vpop.f32.mrb[108].mxu1  ;;  %3795 = vmatprep.subr.bf16.mxu1 %v3305_v48 }
 0x294   : > { %v2888_v41 = vpop.f32.mrb[109].mxu0  ;;  %3723 = vmatpush1.bf16.msra.mxu0 %v3302_v34  ;;  %v2969_v18 = vpop.f32.mrb[109].mxu1  ;;  %3796 = vmatpush1.bf16.msra.mxu1 %v3304_v62  ;;  %v3206_v30 = vmax.f32 %v2886_v36, 0.0  ;;  %v3208_v4 = vmax.f32 %v2967_v59, 0.0 }
 0x295   : > { %v2890_v20 = vpop.f32.mrb[110].mxu0  ;;  %v2971_v40 = vpop.f32.mrb[110].mxu1  ;;  %v3207_v5 = vmax.f32 %v2888_v41, 0.0  ;;  %v3209_v37 = vmax.f32 %v2969_v18, 0.0 }
 0x296   : > { %v3222_v49 = vmax.f32 %v2890_v20, 0.0  ;;  %v2892_v7 = vpop.f32.mrb[111].mxu0  ;;  %v3224_v55 = vmax.f32 %v2971_v40, 0.0  ;;  %v2973_v12 = vpop.f32.mrb[111].mxu1 }
 0x297   : > { %v3223_v9 = vmax.f32 %v2892_v7, 0.0  ;;  %5213 = vmatmul.mubr.msk.bf16.gmra.mrb[168].mxu0 %vm2502_vm1, %v6738_v6  ;;  %v3225_v57 = vmax.f32 %v2973_v12, 0.0  ;;  %5217 = vmatmul.mubr.msk.bf16.gmra.mrb[168].mxu1 %vm2502_vm1, %v6738_v6 }
 0x298   : > { %v3318_v10 = vpack.c.bf16 %v3222_v49, %v3206_v30  ;;  %3638 = vmatprep.mubr.bf16.mxu0 %v5610_v0  ;;  %v3320_v23 = vpack.c.bf16 %v3224_v55, %v3208_v4  ;;  %3711 = vmatprep.mubr.bf16.mxu1 %v5610_v0 }
 0x299   : > { %v3319_v13 = vpack.c.bf16 %v3223_v9, %v3207_v5  ;;  %v3321_v15 = vpack.c.bf16 %v3225_v57, %v3209_v37 }
 0x29b   : > { %v2896_v38 = vpop.f32.mrb[112].mxu0  ;;  %3724 = vmatprep.subr.bf16.mxu0 %v3319_v13  ;;  %v2977_v47 = vpop.f32.mrb[112].mxu1  ;;  %3797 = vmatprep.subr.bf16.mxu1 %v3321_v15 }
 0x29c   : > { %v2898_v1 = vpop.f32.mrb[113].mxu0  ;;  %3725 = vmatpush1.bf16.msra.mxu0 %v3318_v10  ;;  %v2979_v14 = vpop.f32.mrb[113].mxu1  ;;  %3798 = vmatpush1.bf16.msra.mxu1 %v3320_v23  ;;  %v3238_v56 = vmax.f32 %v2896_v38, 0.0  ;;  %v3240_v39 = vmax.f32 %v2977_v47, 0.0 }
 0x29d   : > { %v2900_v61 = vpop.f32.mrb[114].mxu0  ;;  %v2981_v54 = vpop.f32.mrb[114].mxu1  ;;  %v3239_v45 = vmax.f32 %v2898_v1, 0.0  ;;  %v3241_v21 = vmax.f32 %v2979_v14, 0.0 }
 0x29e   : > { %v3254_v43 = vmax.f32 %v2900_v61, 0.0  ;;  %v2902_v33 = vpop.f32.mrb[115].mxu0  ;;  %v3256_v11 = vmax.f32 %v2981_v54, 0.0  ;;  %v2983_v24 = vpop.f32.mrb[115].mxu1 }
 0x29f   : > { %v3255_v35 = vmax.f32 %v2902_v33, 0.0  ;;  %5214 = vmatmul.mubr.msk.bf16.gmra.mrb[172].mxu0 %vm2502_vm1, %v6749_v26  ;;  %v3257_v31 = vmax.f32 %v2983_v24, 0.0  ;;  %5218 = vmatmul.mubr.msk.bf16.gmra.mrb[172].mxu1 %vm2502_vm1, %v6749_v26 }
 0x2a0   : > { %v3334_v60 = vpack.c.bf16 %v3254_v43, %v3238_v56  ;;  %3754 = vmatprep.mubr.bf16.mxu0 %v5610_v0  ;;  %v3336_v52 = vpack.c.bf16 %v3256_v11, %v3240_v39  ;;  %3827 = vmatprep.mubr.bf16.mxu1 %v5610_v0 }
 0x2a1   : > { %v3335_v8 = vpack.c.bf16 %v3255_v35, %v3239_v45  ;;  %v3337_v3 = vpack.c.bf16 %v3257_v31, %v3241_v21 }
 0x2a3   : > { %v2906_v28 = vpop.f32.mrb[116].mxu0  ;;  %3726 = vmatprep.subr.bf16.mxu0 %v3335_v8  ;;  %v2987_v51 = vpop.f32.mrb[116].mxu1  ;;  %3799 = vmatprep.subr.bf16.mxu1 %v3337_v3 }
 0x2a4   : > { %v2908_v53 = vpop.f32.mrb[117].mxu0  ;;  %3727 = vmatpush1.bf16.msra.mxu0 %v3334_v60  ;;  %v2989_v42 = vpop.f32.mrb[117].mxu1  ;;  %3800 = vmatpush1.bf16.msra.mxu1 %v3336_v52  ;;  %v3270_v34 = vmax.f32 %v2906_v28, 0.0  ;;  %v3272_v48 = vmax.f32 %v2987_v51, 0.0 }
 0x2a5   : > { %v2910_v32 = vpop.f32.mrb[118].mxu0  ;;  %v2991_v62 = vpop.f32.mrb[118].mxu1  ;;  %v3271_v36 = vmax.f32 %v2908_v53, 0.0  ;;  %v3273_v20 = vmax.f32 %v2989_v42, 0.0 }
 0x2a6   : > { %v3286_v27 = vmax.f32 %v2910_v32, 0.0  ;;  %v2912_v50 = vpop.f32.mrb[119].mxu0  ;;  %v3288_v59 = vmax.f32 %v2991_v62, 0.0  ;;  %v2993_v18 = vpop.f32.mrb[119].mxu1 }
 0x2a7   : > { %v3287_v41 = vmax.f32 %v2912_v50, 0.0  ;;  %v3289_v49 = vmax.f32 %v2993_v18, 0.0 }
 0x2a8   : > { %v3350_v30 = vpack.c.bf16 %v3286_v27, %v3270_v34  ;;  %v3352_v40 = vpack.c.bf16 %v3288_v59, %v3272_v48 }
 0x2a9   : > { %v3351_v7 = vpack.c.bf16 %v3287_v41, %v3271_v36  ;;  %v3353_v4 = vpack.c.bf16 %v3289_v49, %v3273_v20 }
 0x2ab   : > { %v6789_v5 = vpop.f32.mrb[120].mxu0  ;;  %3728 = vmatprep.subr.bf16.mxu0 %v3351_v7  ;;  %v6791_v55 = vpop.f32.mrb[120].mxu1  ;;  %3801 = vmatprep.subr.bf16.mxu1 %v3353_v4 }
 0x2ac   : > { %v6793_v9 = vpop.f32.mrb[121].mxu0  ;;  %3729 = vmatpush1.bf16.msra.mxu0 %v3350_v30  ;;  %v6795_v12 = vpop.f32.mrb[121].mxu1  ;;  %3802 = vmatpush1.bf16.msra.mxu1 %v3352_v40 }
 0x2ad   : > { %v2920_v37 = vpop.f32.mrb[122].mxu0  ;;  %v3001_v10 = vpop.f32.mrb[122].mxu1 }
 0x2ae   : > { %v2921_v57 = vpop.f32.mrb[123].mxu0  ;;  %v3002_v23 = vpop.f32.mrb[123].mxu1 }
 0x2af   : > { %5219 = vmatmul.mubr.msk.bf16.vlgmr.msra.gmra.mrb[176].mxu0 %vm2502_vm1, %v6710_v22  ;;  %5223 = vmatmul.mubr.msk.bf16.vlgmr.msra.gmra.mrb[176].mxu1 %vm2502_vm1, %v6710_v22 }
 0x2b0   : > { %3764 = vmatprep.mubr.bf16.mxu0 %v5610_v0  ;;  %3837 = vmatprep.mubr.bf16.mxu1 %v5610_v0 }
 0x2b3   : > { %v3038_v13 = vpop.f32.mrb[124].mxu0  ;;  %v3119_v15 = vpop.f32.mrb[124].mxu1 }
 0x2b4   : > { %v3040_v38 = vpop.f32.mrb[125].mxu0  ;;  %v3121_v47 = vpop.f32.mrb[125].mxu1  ;;  %v3178_v14 = vmax.f32 %v3038_v13, 0.0  ;;  %v3180_v54 = vmax.f32 %v3119_v15, 0.0 }
 0x2b5   : > { %v3042_v1 = vpop.f32.mrb[126].mxu0  ;;  %v3123_v56 = vpop.f32.mrb[126].mxu1  ;;  %v3179_v33 = vmax.f32 %v3040_v38, 0.0  ;;  %v3181_v35 = vmax.f32 %v3121_v47, 0.0 }
 0x2b6   : > { %v3194_v61 = vmax.f32 %v3042_v1, 0.0  ;;  %v3044_v43 = vpop.f32.mrb[127].mxu0  ;;  %v3196_v39 = vmax.f32 %v3123_v56, 0.0  ;;  %v3125_v11 = vpop.f32.mrb[127].mxu1 }
 0x2b7   : > { %v3195_v45 = vmax.f32 %v3044_v43, 0.0  ;;  %5220 = vmatmul.mubr.msk.bf16.gmra.mrb[180].mxu0 %vm2502_vm1, %v6727_v58  ;;  %v3197_v21 = vmax.f32 %v3125_v11, 0.0  ;;  %5224 = vmatmul.mubr.msk.bf16.gmra.mrb[180].mxu1 %vm2502_vm1, %v6727_v58 }
 0x2b8   : > { %v3306_v24 = vpack.c.bf16 %v3194_v61, %v3178_v14  ;;  %3774 = vmatprep.mubr.bf16.mxu0 %v5610_v0  ;;  %v3308_v60 = vpack.c.bf16 %v3196_v39, %v3180_v54  ;;  %3847 = vmatprep.mubr.bf16.mxu1 %v5610_v0 }
 0x2b9   : > { %v3307_v31 = vpack.c.bf16 %v3195_v45, %v3179_v33  ;;  %v3309_v52 = vpack.c.bf16 %v3197_v21, %v3181_v35 }
 0x2bb   : > { %v3048_v8 = vpop.f32.mrb[128].mxu0  ;;  %3868 = vmatprep.subr.bf16.mxu0 %v3307_v31  ;;  %v3129_v3 = vpop.f32.mrb[128].mxu1  ;;  %3941 = vmatprep.subr.bf16.mxu1 %v3309_v52 }
 0x2bc   : > { %v3050_v28 = vpop.f32.mrb[129].mxu0  ;;  %3869 = vmatpush1.bf16.msra.mxu0 %v3306_v24  ;;  %v3131_v51 = vpop.f32.mrb[129].mxu1  ;;  %3942 = vmatpush1.bf16.msra.mxu1 %v3308_v60  ;;  %v3210_v42 = vmax.f32 %v3048_v8, 0.0  ;;  %v3212_v62 = vmax.f32 %v3129_v3, 0.0 }
 0x2bd   : > { %v3052_v53 = vpop.f32.mrb[130].mxu0  ;;  %v3133_v34 = vpop.f32.mrb[130].mxu1  ;;  %v3211_v50 = vmax.f32 %v3050_v28, 0.0  ;;  %v3213_v41 = vmax.f32 %v3131_v51, 0.0 }
 0x2be   : > { %v3226_v32 = vmax.f32 %v3052_v53, 0.0  ;;  %v3054_v27 = vpop.f32.mrb[131].mxu0  ;;  %v3228_v48 = vmax.f32 %v3133_v34, 0.0  ;;  %v3135_v59 = vpop.f32.mrb[131].mxu1 }
 0x2bf   : > { %v3227_v36 = vmax.f32 %v3054_v27, 0.0  ;;  %5221 = vmatmul.mubr.msk.bf16.gmra.mrb[184].mxu0 %vm2502_vm1, %v6738_v6  ;;  %v3229_v20 = vmax.f32 %v3135_v59, 0.0  ;;  %5225 = vmatmul.mubr.msk.bf16.gmra.mrb[184].mxu1 %vm2502_vm1, %v6738_v6 }
 0x2c0   : > { %v3322_v18 = vpack.c.bf16 %v3226_v32, %v3210_v42  ;;  %3784 = vmatprep.mubr.bf16.mxu0 %v5610_v0  ;;  %v3324_v30 = vpack.c.bf16 %v3228_v48, %v3212_v62  ;;  %3857 = vmatprep.mubr.bf16.mxu1 %v5610_v0 }
 0x2c1   : > { %v3323_v49 = vpack.c.bf16 %v3227_v36, %v3211_v50  ;;  %v3325_v40 = vpack.c.bf16 %v3229_v20, %v3213_v41 }
 0x2c3   : > { %v3058_v7 = vpop.f32.mrb[132].mxu0  ;;  %3870 = vmatprep.subr.bf16.mxu0 %v3323_v49  ;;  %v3139_v4 = vpop.f32.mrb[132].mxu1  ;;  %3943 = vmatprep.subr.bf16.mxu1 %v3325_v40 }
 0x2c4   : > { %v3060_v37 = vpop.f32.mrb[133].mxu0  ;;  %3871 = vmatpush1.bf16.msra.mxu0 %v3322_v18  ;;  %v3141_v10 = vpop.f32.mrb[133].mxu1  ;;  %3944 = vmatpush1.bf16.msra.mxu1 %v3324_v30  ;;  %v3242_v23 = vmax.f32 %v3058_v7, 0.0  ;;  %v3244_v47 = vmax.f32 %v3139_v4, 0.0 }
 0x2c5   : > { %v3062_v57 = vpop.f32.mrb[134].mxu0  ;;  %v3143_v15 = vpop.f32.mrb[134].mxu1  ;;  %v3243_v1 = vmax.f32 %v3060_v37, 0.0  ;;  %v3245_v43 = vmax.f32 %v3141_v10, 0.0 }
 0x2c6   : > { %v3258_v13 = vmax.f32 %v3062_v57, 0.0  ;;  %v3064_v38 = vpop.f32.mrb[135].mxu0  ;;  %v3260_v14 = vmax.f32 %v3143_v15, 0.0  ;;  %v3145_v56 = vpop.f32.mrb[135].mxu1 }
 0x2c7   : > { %v3259_v61 = vmax.f32 %v3064_v38, 0.0  ;;  %5222 = vmatmul.mubr.msk.bf16.gmra.mrb[188].mxu0 %vm2502_vm1, %v6749_v26  ;;  %v3261_v33 = vmax.f32 %v3145_v56, 0.0  ;;  %5226 = vmatmul.mubr.msk.bf16.gmra.mrb[188].mxu1 %vm2502_vm1, %v6749_v26  ;;  %v6856_v37 = vpop.permute.xlu1 %3371 }
 0x2c8   : > { %v3338_v54 = vpack.c.bf16 %v3258_v13, %v3242_v23  ;;  %3900 = vmatprep.mubr.bf16.mxu0 %v5610_v0  ;;  %v3340_v39 = vpack.c.bf16 %v3260_v14, %v3244_v47  ;;  %3973 = vmatprep.mubr.bf16.mxu1 %v5610_v0 }
 0x2c9   : > { %v3339_v45 = vpack.c.bf16 %v3259_v61, %v3243_v1  ;;  %v3341_v11 = vpack.c.bf16 %v3261_v33, %v3245_v43 }
 0x2cb   : > { %v3068_v35 = vpop.f32.mrb[136].mxu0  ;;  %3872 = vmatprep.subr.bf16.mxu0 %v3339_v45  ;;  %v3149_v24 = vpop.f32.mrb[136].mxu1  ;;  %3945 = vmatprep.subr.bf16.mxu1 %v3341_v11 }
 0x2cc   : > { %v3070_v21 = vpop.f32.mrb[137].mxu0  ;;  %3873 = vmatpush1.bf16.msra.mxu0 %v3338_v54  ;;  %v3151_v60 = vpop.f32.mrb[137].mxu1  ;;  %3946 = vmatpush1.bf16.msra.mxu1 %v3340_v39  ;;  %v3274_v52 = vmax.f32 %v3068_v35, 0.0  ;;  %v3276_v51 = vmax.f32 %v3149_v24, 0.0 }
 0x2cd   : > { %v3072_v31 = vpop.f32.mrb[138].mxu0  ;;  %v3153_v3 = vpop.f32.mrb[138].mxu1  ;;  %v3275_v53 = vmax.f32 %v3070_v21, 0.0  ;;  %v3277_v27 = vmax.f32 %v3151_v60, 0.0 }
 0x2ce   : > { %v3290_v8 = vmax.f32 %v3072_v31, 0.0  ;;  %v3074_v28 = vpop.f32.mrb[139].mxu0  ;;  %v3292_v42 = vmax.f32 %v3153_v3, 0.0  ;;  %v3155_v34 = vpop.f32.mrb[139].mxu1 }
 0x2cf   : > { %v3291_v32 = vmax.f32 %v3074_v28, 0.0  ;;  %v3293_v50 = vmax.f32 %v3155_v34, 0.0  ;;  %v6866_v21 = vpop.permute.xlu1 %3375 }
 0x2d0   : > { %v3354_v62 = vpack.c.bf16 %v3290_v8, %v3274_v52  ;;  %v3356_v48 = vpack.c.bf16 %v3292_v42, %v3276_v51 }
 0x2d1   : > { %v3355_v36 = vpack.c.bf16 %v3291_v32, %v3275_v53  ;;  %v3357_v59 = vpack.c.bf16 %v3293_v50, %v3277_v27 }
 0x2d3   : > { %v6821_v41 = vpop.f32.mrb[140].mxu0  ;;  %3874 = vmatprep.subr.bf16.mxu0 %v3355_v36  ;;  %v6823_v18 = vpop.f32.mrb[140].mxu1  ;;  %3947 = vmatprep.subr.bf16.mxu1 %v3357_v59 }
 0x2d4   : > { %v6825_v20 = vpop.f32.mrb[141].mxu0  ;;  %3875 = vmatpush1.bf16.msra.mxu0 %v3354_v62  ;;  %v6827_v30 = vpop.f32.mrb[141].mxu1  ;;  %3948 = vmatpush1.bf16.msra.mxu1 %v3356_v48 }
 0x2d5   : > { %v3082_v49 = vpop.f32.mrb[142].mxu0  ;;  %v3163_v40 = vpop.f32.mrb[142].mxu1 }
 0x2d6   : > { %v3083_v7 = vpop.f32.mrb[143].mxu0  ;;  %v3164_v4 = vpop.f32.mrb[143].mxu1 }
 0x2d7   : > { %5227 = vmatmul.mubr.msk.bf16.vlgmr.msra.gmra.mrb[192].mxu0 %vm2502_vm1, %v6710_v22  ;;  %5231 = vmatmul.mubr.msk.bf16.vlgmr.msra.gmra.mrb[192].mxu1 %vm2502_vm1, %v6710_v22  ;;  %v5612_v22 = vmov 2  }
 0x2d8   : > { %3910 = vmatprep.mubr.bf16.mxu0 %v5610_v0  ;;  %3983 = vmatprep.mubr.bf16.mxu1 %v5610_v0 }
 0x2d9   : > { %5454 = vset.pattern.permute.xlu1 %v5612_v22  ;;  %5455 = vset.pattern.permute.xlu0 %v5612_v22 }
 0x2da   : > { %4208 = vperm.xlu1 %5454, %v6684_v2  }
 0x2df   : > { %5228 = vmatmul.mubr.msk.bf16.gmra.mrb[196].mxu0 %vm2502_vm1, %v6727_v58  ;;  %5232 = vmatmul.mubr.msk.bf16.gmra.mrb[196].mxu1 %vm2502_vm1, %v6727_v58  ;;  %v6854_v58 = vpop.permute.xlu0 %3367 }
 0x2e0   : > { %3920 = vmatprep.mubr.bf16.mxu0 %v5610_v0  ;;  %3993 = vmatprep.mubr.bf16.mxu1 %v5610_v0 }
 0x2e3   : > { %v6868_v28 = vpop.permute.xlu0 %3379 }
 0x2e7   : > { %5229 = vmatmul.mubr.msk.bf16.gmra.mrb[200].mxu0 %vm2502_vm1, %v6738_v6  ;;  %5233 = vmatmul.mubr.msk.bf16.gmra.mrb[200].mxu1 %vm2502_vm1, %v6738_v6 }
 0x2e8   : > { %3930 = vmatprep.mubr.bf16.mxu0 %v5610_v0  ;;  %4003 = vmatprep.mubr.bf16.mxu1 %v5610_v0 }
 0x2ef   : > { %5230 = vmatmul.mubr.msk.bf16.gmra.mrb[204].mxu0 %vm2502_vm1, %v6749_v26  ;;  %5234 = vmatmul.mubr.msk.bf16.gmra.mrb[204].mxu1 %vm2502_vm1, %v6749_v26 }
 0x2f0   : > { %4246 = vmatprep.mubr.bf16.mxu0 %v5610_v0  ;;  %4287 = vmatprep.mubr.bf16.mxu1 %v5610_v0 }
 0x332   : > { %v3464_v6 = vpop.f32.mrb[144].mxu0  ;;  %v3537_v10 = vpop.f32.mrb[144].mxu1 }
 0x333   : > { %v3466_v57 = vpop.f32.mrb[145].mxu0  ;;  %v3465_v23 = vadd.f32 %v3464_v6, %v6854_v58  ;;  %v3539_v13 = vpop.f32.mrb[145].mxu1  ;;  %v3538_v38 = vadd.f32 %v3537_v10, %v6854_v58 }
 0x334   : > { %v3468_v26 = vpop.f32.mrb[146].mxu0  ;;  %v3467_v15 = vadd.f32 %v3466_v57, %v6854_v58  ;;  %v3541_v47 = vpop.f32.mrb[146].mxu1  ;;  %v3540_v14 = vadd.f32 %v3539_v13, %v6854_v58 }
 0x335   : > { %v3470_v1 = vpop.f32.mrb[147].mxu0  ;;  %v3469_v2 = vadd.f32 %v3468_v26, %v6856_v37  ;;  %v4014_v61 = vmax.f32 %v3465_v23, 0.0  ;;  %v3543_v54 = vpop.f32.mrb[147].mxu1  ;;  %v3542_v33 = vadd.f32 %v3541_v47, %v6856_v37  ;;  %v4016_v39 = vmax.f32 %v3538_v38, 0.0 }
 0x336   : > { %v3471_v56 = vadd.f32 %v3470_v1, %v6856_v37  ;;  %v4015_v43 = vmax.f32 %v3467_v15, 0.0  ;;  %v3544_v45 = vadd.f32 %v3543_v54, %v6856_v37  ;;  %v4017_v11 = vmax.f32 %v3540_v14, 0.0  ;;  %v6878_v38 = vpop.permute.xlu1 %3383 }
 0x337   : > { %v4030_v35 = vmax.f32 %v3469_v2, 0.0  ;;  %v4032_v60 = vmax.f32 %v3542_v33, 0.0 }
 0x338   : > { %v4031_v24 = vmax.f32 %v3471_v56, 0.0  ;;  %v4033_v31 = vmax.f32 %v3544_v45, 0.0  ;;  %v6880_v56 = vpop.permute.xlu0 %3387 }
 0x339   : > { %v4142_v52 = vpack.c.bf16 %v4030_v35, %v4014_v61  ;;  %v4144_v51 = vpack.c.bf16 %v4032_v60, %v4016_v39 }
 0x33a   : > { %v4143_v8 = vpack.c.bf16 %v4031_v24, %v4015_v43  ;;  %v3474_v3 = vpop.f32.mrb[148].mxu0  ;;  %v4145_v53 = vpack.c.bf16 %v4033_v31, %v4017_v11  ;;  %v3547_v42 = vpop.f32.mrb[148].mxu1 }
 0x33b   : > { %v3476_v32 = vpop.f32.mrb[149].mxu0  ;;  %v3475_v34 = vadd.f32 %v3474_v3, %v6866_v21  ;;  %v3549_v27 = vpop.f32.mrb[149].mxu1  ;;  %v3548_v48 = vadd.f32 %v3547_v42, %v6866_v21 }
 0x33c   : > { %v3478_v62 = vpop.f32.mrb[150].mxu0  ;;  %v3477_v50 = vadd.f32 %v3476_v32, %v6866_v21  ;;  %4214 = vmatprep.subr.bf16.mxu0 %v4143_v8  ;;  %v3551_v36 = vpop.f32.mrb[150].mxu1  ;;  %v3550_v49 = vadd.f32 %v3549_v27, %v6866_v21  ;;  %4255 = vmatprep.subr.bf16.mxu1 %v4145_v53 }
 0x33d   : > { %v3480_v59 = vpop.f32.mrb[151].mxu0  ;;  %4215 = vmatpush1.bf16.msra.mxu0 %v4142_v52  ;;  %v3479_v40 = vadd.f32 %v3478_v62, %v6868_v28  ;;  %v4046_v7 = vmax.f32 %v3475_v34, 0.0  ;;  %v3553_v6 = vpop.f32.mrb[151].mxu1  ;;  %4256 = vmatpush1.bf16.msra.mxu1 %v4144_v51  ;;  %v3552_v10 = vadd.f32 %v3551_v36, %v6868_v28  ;;  %v4048_v57 = vmax.f32 %v3548_v48, 0.0 }
 0x33e   : > { %v3481_v4 = vadd.f32 %v3480_v59, %v6868_v28  ;;  %v4047_v22 = vmax.f32 %v3477_v50, 0.0  ;;  %v3554_v23 = vadd.f32 %v3553_v6, %v6868_v28  ;;  %v4049_v13 = vmax.f32 %v3550_v49, 0.0  ;;  %v6890_v59 = vpop.permute.xlu1 %3391  ;;  %v6892_v6 = vpop.permute.xlu0 %3395 }
 0x33f   : > { %v4062_v26 = vmax.f32 %v3479_v40, 0.0  ;;  %v4064_v47 = vmax.f32 %v3552_v10, 0.0 }
 0x340   : > { %v4063_v15 = vmax.f32 %v3481_v4, 0.0  ;;  %v4065_v1 = vmax.f32 %v3554_v23, 0.0 }
 0x341   : > { %v4158_v14 = vpack.c.bf16 %v4062_v26, %v4046_v7  ;;  %v4160_v43 = vpack.c.bf16 %v4064_v47, %v4048_v57 }
 0x342   : > { %v4159_v2 = vpack.c.bf16 %v4063_v15, %v4047_v22  ;;  %v3484_v61 = vpop.f32.mrb[152].mxu0  ;;  %v4161_v54 = vpack.c.bf16 %v4065_v1, %v4049_v13  ;;  %v3557_v33 = vpop.f32.mrb[152].mxu1 }
 0x343   : > { %v3486_v39 = vpop.f32.mrb[153].mxu0  ;;  %v3485_v45 = vadd.f32 %v3484_v61, %v6878_v38  ;;  %v3559_v11 = vpop.f32.mrb[153].mxu1  ;;  %v3558_v60 = vadd.f32 %v3557_v33, %v6878_v38 }
 0x344   : > { %v3488_v35 = vpop.f32.mrb[154].mxu0  ;;  %v3487_v24 = vadd.f32 %v3486_v39, %v6878_v38  ;;  %4216 = vmatprep.subr.bf16.mxu0 %v4159_v2  ;;  %v3561_v31 = vpop.f32.mrb[154].mxu1  ;;  %v3560_v8 = vadd.f32 %v3559_v11, %v6878_v38  ;;  %4257 = vmatprep.subr.bf16.mxu1 %v4161_v54 }
 0x345   : > { %v3490_v52 = vpop.f32.mrb[155].mxu0  ;;  %4217 = vmatpush1.bf16.msra.mxu0 %v4158_v14  ;;  %v3489_v3 = vadd.f32 %v3488_v35, %v6880_v56  ;;  %v4078_v51 = vmax.f32 %v3485_v45, 0.0  ;;  %v3563_v32 = vpop.f32.mrb[155].mxu1  ;;  %4258 = vmatpush1.bf16.msra.mxu1 %v4160_v43  ;;  %v3562_v34 = vadd.f32 %v3561_v31, %v6880_v56  ;;  %v4080_v27 = vmax.f32 %v3558_v60, 0.0 }
 0x346   : > { %v3491_v53 = vadd.f32 %v3490_v52, %v6880_v56  ;;  %v4079_v42 = vmax.f32 %v3487_v24, 0.0  ;;  %v3564_v62 = vadd.f32 %v3563_v32, %v6880_v56  ;;  %v4081_v50 = vmax.f32 %v3560_v8, 0.0 }
 0x347   : > { %v4094_v48 = vmax.f32 %v3489_v3, 0.0  ;;  %v4096_v49 = vmax.f32 %v3562_v34, 0.0 }
 0x348   : > { %v4095_v36 = vmax.f32 %v3491_v53, 0.0  ;;  %v4097_v40 = vmax.f32 %v3564_v62, 0.0 }
 0x349   : > { %v4174_v7 = vpack.c.bf16 %v4094_v48, %v4078_v51  ;;  %v4176_v10 = vpack.c.bf16 %v4096_v49, %v4080_v27  ;;  %v6905_v27 = vld [vmem:[%s7404_s6] sm:$0xf] }
 0x34a   : > { %v4175_v4 = vpack.c.bf16 %v4095_v36, %v4079_v42  ;;  %v3494_v22 = vpop.f32.mrb[156].mxu0  ;;  %v4177_v57 = vpack.c.bf16 %v4097_v40, %v4081_v50  ;;  %v3567_v23 = vpop.f32.mrb[156].mxu1 }
 0x34b   : > { %v3496_v13 = vpop.f32.mrb[157].mxu0  ;;  %v3495_v26 = vadd.f32 %v3494_v22, %v6890_v59  ;;  %v3569_v15 = vpop.f32.mrb[157].mxu1  ;;  %v3568_v14 = vadd.f32 %v3567_v23, %v6890_v59 }
 0x34c   : > { %v3498_v47 = vpop.f32.mrb[158].mxu0  ;;  %v3497_v1 = vadd.f32 %v3496_v13, %v6890_v59  ;;  %4218 = vmatprep.subr.bf16.mxu0 %v4175_v4  ;;  %v3571_v2 = vpop.f32.mrb[158].mxu1  ;;  %v3570_v43 = vadd.f32 %v3569_v15, %v6890_v59  ;;  %4259 = vmatprep.subr.bf16.mxu1 %v4177_v57 }
 0x34d   : > { %v3500_v61 = vpop.f32.mrb[159].mxu0  ;;  %4219 = vmatpush1.bf16.msra.mxu0 %v4174_v7  ;;  %v3499_v54 = vadd.f32 %v3498_v47, %v6892_v6  ;;  %v4110_v33 = vmax.f32 %v3495_v26, 0.0  ;;  %v3573_v11 = vpop.f32.mrb[159].mxu1  ;;  %4260 = vmatpush1.bf16.msra.mxu1 %v4176_v10  ;;  %v3572_v35 = vadd.f32 %v3571_v2, %v6892_v6  ;;  %v4112_v24 = vmax.f32 %v3568_v14, 0.0 }
 0x34e   : > { %v3501_v39 = vadd.f32 %v3500_v61, %v6892_v6  ;;  %v4111_v45 = vmax.f32 %v3497_v1, 0.0  ;;  %v3574_v60 = vadd.f32 %v3573_v11, %v6892_v6  ;;  %v4113_v31 = vmax.f32 %v3570_v43, 0.0 }
 0x34f   : > { %v4126_v52 = vmax.f32 %v3499_v54, 0.0  ;;  %v4128_v3 = vmax.f32 %v3572_v35, 0.0 }
 0x350   : > { %v4127_v8 = vmax.f32 %v3501_v39, 0.0  ;;  %v4129_v51 = vmax.f32 %v3574_v60, 0.0 }
 0x351   : > { %v4190_v53 = vpack.c.bf16 %v4126_v52, %v4110_v33  ;;  %v4192_v32 = vpack.c.bf16 %v4128_v3, %v4112_v24 }
 0x352   : > { %v4191_v42 = vpack.c.bf16 %v4127_v8, %v4111_v45  ;;  %v4193_v34 = vpack.c.bf16 %v4129_v51, %v4113_v31 }
 0x354   : > { %4220 = vmatprep.subr.bf16.mxu0 %v4191_v42  ;;  %4261 = vmatprep.subr.bf16.mxu1 %v4193_v34 }
 0x355   : > { %4221 = vmatpush1.bf16.msra.mxu0 %v4190_v53  ;;  %4262 = vmatpush1.bf16.msra.mxu1 %v4192_v32 }
 0x358   : > { %5235 = vmatmul.mubr.msk.bf16.vlgmr.msra.gmra.mrb[208].mxu0 %vm2502_vm1, %v6905_v27  ;;  %5236 = vmatmul.mubr.msk.bf16.vlgmr.msra.gmra.mrb[208].mxu1 %vm2502_vm1, %v6905_v27 }
 0x359   : > { %4328 = vmatprep.mubr.bf16.mxu0 %v5610_v0  ;;  %4369 = vmatprep.mubr.bf16.mxu1 %v5610_v0 }
 0x35a   : > { %v3610_v62 = vpop.f32.mrb[160].mxu0  ;;  %v3683_v48 = vpop.f32.mrb[160].mxu1 }
 0x35b   : > { %v3611_v50 = vadd.f32 %v3610_v62, %v6854_v58  ;;  %v3612_v36 = vpop.f32.mrb[161].mxu0  ;;  %v3684_v49 = vadd.f32 %v3683_v48, %v6854_v58  ;;  %v3685_v7 = vpop.f32.mrb[161].mxu1 }
 0x35c   : > { %v3613_v40 = vadd.f32 %v3612_v36, %v6854_v58  ;;  %v3614_v4 = vpop.f32.mrb[162].mxu0  ;;  %v3686_v10 = vadd.f32 %v3685_v7, %v6854_v58  ;;  %v3687_v23 = vpop.f32.mrb[162].mxu1 }
 0x35d   : > { %v4018_v22 = vmax.f32 %v3611_v50, 0.0  ;;  %v3615_v57 = vadd.f32 %v3614_v4, %v6856_v37  ;;  %v3616_v13 = vpop.f32.mrb[163].mxu0  ;;  %v4020_v26 = vmax.f32 %v3684_v49, 0.0  ;;  %v3688_v47 = vadd.f32 %v3687_v23, %v6856_v37  ;;  %v3689_v14 = vpop.f32.mrb[163].mxu1 }
 0x35e   : > { %v4019_v15 = vmax.f32 %v3613_v40, 0.0  ;;  %v3617_v1 = vadd.f32 %v3616_v13, %v6856_v37  ;;  %v4021_v2 = vmax.f32 %v3686_v10, 0.0  ;;  %v3690_v43 = vadd.f32 %v3689_v14, %v6856_v37 }
 0x35f   : > { %v4034_v61 = vmax.f32 %v3615_v57, 0.0  ;;  %v4036_v54 = vmax.f32 %v3688_v47, 0.0 }
 0x360   : > { %v4035_v33 = vmax.f32 %v3617_v1, 0.0  ;;  %v4037_v45 = vmax.f32 %v3690_v43, 0.0 }
 0x361   : > { %v4146_v39 = vpack.c.bf16 %v4034_v61, %v4018_v22  ;;  %v4148_v11 = vpack.c.bf16 %v4036_v54, %v4020_v26 }
 0x362   : > { %v4147_v35 = vpack.c.bf16 %v4035_v33, %v4019_v15  ;;  %v3620_v24 = vpop.f32.mrb[164].mxu0  ;;  %v4149_v60 = vpack.c.bf16 %v4037_v45, %v4021_v2  ;;  %v3693_v52 = vpop.f32.mrb[164].mxu1 }
 0x363   : > { %v3621_v31 = vadd.f32 %v3620_v24, %v6866_v21  ;;  %v3622_v8 = vpop.f32.mrb[165].mxu0  ;;  %v3694_v3 = vadd.f32 %v3693_v52, %v6866_v21  ;;  %v3695_v53 = vpop.f32.mrb[165].mxu1 }
 0x364   : > { %v3623_v51 = vadd.f32 %v3622_v8, %v6866_v21  ;;  %v3624_v42 = vpop.f32.mrb[166].mxu0  ;;  %4296 = vmatprep.subr.bf16.mxu0 %v4147_v35  ;;  %v3696_v34 = vadd.f32 %v3695_v53, %v6866_v21  ;;  %v3697_v50 = vpop.f32.mrb[166].mxu1  ;;  %4337 = vmatprep.subr.bf16.mxu1 %v4149_v60 }
 0x365   : > { %v4050_v32 = vmax.f32 %v3621_v31, 0.0  ;;  %v3625_v62 = vadd.f32 %v3624_v42, %v6868_v28  ;;  %v3626_v48 = vpop.f32.mrb[167].mxu0  ;;  %4297 = vmatpush1.bf16.msra.mxu0 %v4146_v39  ;;  %v4052_v36 = vmax.f32 %v3694_v3, 0.0  ;;  %v3698_v40 = vadd.f32 %v3697_v50, %v6868_v28  ;;  %v3699_v4 = vpop.f32.mrb[167].mxu1  ;;  %4338 = vmatpush1.bf16.msra.mxu1 %v4148_v11 }
 0x366   : > { %v4051_v49 = vmax.f32 %v3623_v51, 0.0  ;;  %v3627_v7 = vadd.f32 %v3626_v48, %v6868_v28  ;;  %v4053_v22 = vmax.f32 %v3696_v34, 0.0  ;;  %v3700_v57 = vadd.f32 %v3699_v4, %v6868_v28 }
 0x367   : > { %v4066_v10 = vmax.f32 %v3625_v62, 0.0  ;;  %v4068_v23 = vmax.f32 %v3698_v40, 0.0 }
 0x368   : > { %v4067_v13 = vmax.f32 %v3627_v7, 0.0  ;;  %v4069_v15 = vmax.f32 %v3700_v57, 0.0 }
 0x369   : > { %v4162_v26 = vpack.c.bf16 %v4066_v10, %v4050_v32  ;;  %v4164_v47 = vpack.c.bf16 %v4068_v23, %v4052_v36 }
 0x36a   : > { %v4163_v1 = vpack.c.bf16 %v4067_v13, %v4051_v49  ;;  %v3630_v14 = vpop.f32.mrb[168].mxu0  ;;  %v4165_v2 = vpack.c.bf16 %v4069_v15, %v4053_v22  ;;  %v3703_v43 = vpop.f32.mrb[168].mxu1 }
 0x36b   : > { %v3631_v61 = vadd.f32 %v3630_v14, %v6878_v38  ;;  %v3632_v54 = vpop.f32.mrb[169].mxu0  ;;  %v3704_v33 = vadd.f32 %v3703_v43, %v6878_v38  ;;  %v3705_v45 = vpop.f32.mrb[169].mxu1 }
 0x36c   : > { %v3633_v39 = vadd.f32 %v3632_v54, %v6878_v38  ;;  %v3634_v11 = vpop.f32.mrb[170].mxu0  ;;  %4298 = vmatprep.subr.bf16.mxu0 %v4163_v1  ;;  %v3706_v24 = vadd.f32 %v3705_v45, %v6878_v38  ;;  %v3707_v31 = vpop.f32.mrb[170].mxu1  ;;  %4339 = vmatprep.subr.bf16.mxu1 %v4165_v2 }
 0x36d   : > { %v4082_v35 = vmax.f32 %v3631_v61, 0.0  ;;  %v3635_v60 = vadd.f32 %v3634_v11, %v6880_v56  ;;  %v3636_v52 = vpop.f32.mrb[171].mxu0  ;;  %4299 = vmatpush1.bf16.msra.mxu0 %v4162_v26  ;;  %v4084_v8 = vmax.f32 %v3704_v33, 0.0  ;;  %v3708_v51 = vadd.f32 %v3707_v31, %v6880_v56  ;;  %v3709_v42 = vpop.f32.mrb[171].mxu1  ;;  %4340 = vmatpush1.bf16.msra.mxu1 %v4164_v47 }
 0x36e   : > { %v4083_v3 = vmax.f32 %v3633_v39, 0.0  ;;  %v3637_v53 = vadd.f32 %v3636_v52, %v6880_v56  ;;  %v4085_v32 = vmax.f32 %v3706_v24, 0.0  ;;  %v3710_v62 = vadd.f32 %v3709_v42, %v6880_v56 }
 0x36f   : > { %v4098_v34 = vmax.f32 %v3635_v60, 0.0  ;;  %v4100_v50 = vmax.f32 %v3708_v51, 0.0 }
 0x370   : > { %v4099_v48 = vmax.f32 %v3637_v53, 0.0  ;;  %v4101_v49 = vmax.f32 %v3710_v62, 0.0 }
 0x371   : > { %v4178_v36 = vpack.c.bf16 %v4098_v34, %v4082_v35  ;;  %v4180_v40 = vpack.c.bf16 %v4100_v50, %v4084_v8 }
 0x372   : > { %v4179_v7 = vpack.c.bf16 %v4099_v48, %v4083_v3  ;;  %v3640_v4 = vpop.f32.mrb[172].mxu0  ;;  %v4181_v22 = vpack.c.bf16 %v4101_v49, %v4085_v32  ;;  %v3713_v57 = vpop.f32.mrb[172].mxu1 }
 0x373   : > { %v3641_v10 = vadd.f32 %v3640_v4, %v6890_v59  ;;  %v3642_v23 = vpop.f32.mrb[173].mxu0  ;;  %v3714_v13 = vadd.f32 %v3713_v57, %v6890_v59  ;;  %v3715_v15 = vpop.f32.mrb[173].mxu1 }
 0x374   : > { %v3643_v26 = vadd.f32 %v3642_v23, %v6890_v59  ;;  %v3644_v47 = vpop.f32.mrb[174].mxu0  ;;  %4300 = vmatprep.subr.bf16.mxu0 %v4179_v7  ;;  %v3716_v14 = vadd.f32 %v3715_v15, %v6890_v59  ;;  %v3717_v61 = vpop.f32.mrb[174].mxu1  ;;  %4341 = vmatprep.subr.bf16.mxu1 %v4181_v22 }
 0x375   : > { %v4114_v1 = vmax.f32 %v3641_v10, 0.0  ;;  %v3645_v2 = vadd.f32 %v3644_v47, %v6892_v6  ;;  %v3646_v43 = vpop.f32.mrb[175].mxu0  ;;  %4301 = vmatpush1.bf16.msra.mxu0 %v4178_v36  ;;  %v4116_v54 = vmax.f32 %v3714_v13, 0.0  ;;  %v3718_v39 = vadd.f32 %v3717_v61, %v6892_v6  ;;  %v3719_v11 = vpop.f32.mrb[175].mxu1  ;;  %4342 = vmatpush1.bf16.msra.mxu1 %v4180_v40 }
 0x376   : > { %v4115_v33 = vmax.f32 %v3643_v26, 0.0  ;;  %v3647_v45 = vadd.f32 %v3646_v43, %v6892_v6  ;;  %v4117_v35 = vmax.f32 %v3716_v14, 0.0  ;;  %v3720_v60 = vadd.f32 %v3719_v11, %v6892_v6 }
 0x377   : > { %v4130_v24 = vmax.f32 %v3645_v2, 0.0  ;;  %v4132_v31 = vmax.f32 %v3718_v39, 0.0 }
 0x378   : > { %v4131_v52 = vmax.f32 %v3647_v45, 0.0  ;;  %v4133_v3 = vmax.f32 %v3720_v60, 0.0 }
 0x379   : > { %v4194_v8 = vpack.c.bf16 %v4130_v24, %v4114_v1  ;;  %v4196_v51 = vpack.c.bf16 %v4132_v31, %v4116_v54 }
 0x37a   : > { %v4195_v53 = vpack.c.bf16 %v4131_v52, %v4115_v33  ;;  %v4197_v42 = vpack.c.bf16 %v4133_v3, %v4117_v35 }
 0x37c   : > { %4302 = vmatprep.subr.bf16.mxu0 %v4195_v53  ;;  %4343 = vmatprep.subr.bf16.mxu1 %v4197_v42 }
 0x37d   : > { %4303 = vmatpush1.bf16.msra.mxu0 %v4194_v8  ;;  %4344 = vmatpush1.bf16.msra.mxu1 %v4196_v51 }
 0x380   : > { %5237 = vmatmul.mubr.msk.bf16.vlgmr.msra.gmra.mrb[212].mxu0 %vm2502_vm1, %v6905_v27  ;;  %5238 = vmatmul.mubr.msk.bf16.vlgmr.msra.gmra.mrb[212].mxu1 %vm2502_vm1, %v6905_v27 }
 0x381   : > { %4410 = vmatprep.mubr.bf16.mxu0 %v5610_v0  ;;  %4451 = vmatprep.mubr.bf16.mxu1 %v5610_v0 }
 0x382   : > { %v3756_v32 = vpop.f32.mrb[176].mxu0  ;;  %v3829_v62 = vpop.f32.mrb[176].mxu1 }
 0x383   : > { %v3757_v34 = vadd.f32 %v3756_v32, %v6854_v58  ;;  %v3758_v50 = vpop.f32.mrb[177].mxu0  ;;  %v3830_v48 = vadd.f32 %v3829_v62, %v6854_v58  ;;  %v3831_v49 = vpop.f32.mrb[177].mxu1 }
 0x384   : > { %v3759_v36 = vadd.f32 %v3758_v50, %v6854_v58  ;;  %v3760_v40 = vpop.f32.mrb[178].mxu0  ;;  %v3832_v4 = vadd.f32 %v3831_v49, %v6854_v58  ;;  %v3833_v10 = vpop.f32.mrb[178].mxu1 }
 0x385   : > { %v4022_v7 = vmax.f32 %v3757_v34, 0.0  ;;  %v3761_v22 = vadd.f32 %v3760_v40, %v6856_v37  ;;  %v3762_v57 = vpop.f32.mrb[179].mxu0  ;;  %v4024_v23 = vmax.f32 %v3830_v48, 0.0  ;;  %v3834_v26 = vadd.f32 %v3833_v10, %v6856_v37  ;;  %v3835_v47 = vpop.f32.mrb[179].mxu1 }
 0x386   : > { %v4023_v13 = vmax.f32 %v3759_v36, 0.0  ;;  %v3763_v15 = vadd.f32 %v3762_v57, %v6856_v37  ;;  %v4025_v1 = vmax.f32 %v3832_v4, 0.0  ;;  %v3836_v2 = vadd.f32 %v3835_v47, %v6856_v37 }
 0x387   : > { %v4038_v14 = vmax.f32 %v3761_v22, 0.0  ;;  %v4040_v61 = vmax.f32 %v3834_v26, 0.0 }
 0x388   : > { %v4039_v43 = vmax.f32 %v3763_v15, 0.0  ;;  %v4041_v33 = vmax.f32 %v3836_v2, 0.0 }
 0x389   : > { %v4150_v54 = vpack.c.bf16 %v4038_v14, %v4022_v7  ;;  %v4152_v39 = vpack.c.bf16 %v4040_v61, %v4024_v23 }
 0x38a   : > { %v4151_v45 = vpack.c.bf16 %v4039_v43, %v4023_v13  ;;  %v3766_v11 = vpop.f32.mrb[180].mxu0  ;;  %v4153_v35 = vpack.c.bf16 %v4041_v33, %v4025_v1  ;;  %v3839_v60 = vpop.f32.mrb[180].mxu1 }
 0x38b   : > { %v3767_v24 = vadd.f32 %v3766_v11, %v6866_v21  ;;  %v3768_v31 = vpop.f32.mrb[181].mxu0  ;;  %v3840_v52 = vadd.f32 %v3839_v60, %v6866_v21  ;;  %v3841_v3 = vpop.f32.mrb[181].mxu1 }
 0x38c   : > { %v3769_v8 = vadd.f32 %v3768_v31, %v6866_v21  ;;  %v3770_v51 = vpop.f32.mrb[182].mxu0  ;;  %4378 = vmatprep.subr.bf16.mxu0 %v4151_v45  ;;  %v3842_v53 = vadd.f32 %v3841_v3, %v6866_v21  ;;  %v3843_v32 = vpop.f32.mrb[182].mxu1  ;;  %4419 = vmatprep.subr.bf16.mxu1 %v4153_v35 }
 0x38d   : > { %v3771_v42 = vadd.f32 %v3770_v51, %v6868_v28  ;;  %v3772_v34 = vpop.f32.mrb[183].mxu0  ;;  %4379 = vmatpush1.bf16.msra.mxu0 %v4150_v54  ;;  %v3844_v62 = vadd.f32 %v3843_v32, %v6868_v28  ;;  %v3845_v48 = vpop.f32.mrb[183].mxu1  ;;  %4420 = vmatpush1.bf16.msra.mxu1 %v4152_v39  ;;  %v4054_v36 = vmax.f32 %v3767_v24, 0.0  ;;  %v4056_v7 = vmax.f32 %v3840_v52, 0.0 }
 0x38e   : > { %v3773_v50 = vadd.f32 %v3772_v34, %v6868_v28  ;;  %v3846_v40 = vadd.f32 %v3845_v48, %v6868_v28  ;;  %v4055_v4 = vmax.f32 %v3769_v8, 0.0  ;;  %v4057_v57 = vmax.f32 %v3842_v53, 0.0 }
 0x38f   : > { %v4070_v49 = vmax.f32 %v3771_v42, 0.0  ;;  %v4072_v22 = vmax.f32 %v3844_v62, 0.0 }
 0x390   : > { %v4071_v10 = vmax.f32 %v3773_v50, 0.0  ;;  %v4073_v13 = vmax.f32 %v3846_v40, 0.0 }
 0x391   : > { %v4166_v23 = vpack.c.bf16 %v4070_v49, %v4054_v36  ;;  %v4168_v26 = vpack.c.bf16 %v4072_v22, %v4056_v7 }
 0x392   : > { %v4167_v15 = vpack.c.bf16 %v4071_v10, %v4055_v4  ;;  %v3776_v47 = vpop.f32.mrb[184].mxu0  ;;  %v4169_v1 = vpack.c.bf16 %v4073_v13, %v4057_v57  ;;  %v3849_v2 = vpop.f32.mrb[184].mxu1 }
 0x393   : > { %v3777_v14 = vadd.f32 %v3776_v47, %v6878_v38  ;;  %v3778_v61 = vpop.f32.mrb[185].mxu0  ;;  %v3850_v43 = vadd.f32 %v3849_v2, %v6878_v38  ;;  %v3851_v33 = vpop.f32.mrb[185].mxu1 }
 0x394   : > { %v3779_v54 = vadd.f32 %v3778_v61, %v6878_v38  ;;  %v3780_v39 = vpop.f32.mrb[186].mxu0  ;;  %4380 = vmatprep.subr.bf16.mxu0 %v4167_v15  ;;  %v3852_v45 = vadd.f32 %v3851_v33, %v6878_v38  ;;  %v3853_v35 = vpop.f32.mrb[186].mxu1  ;;  %4421 = vmatprep.subr.bf16.mxu1 %v4169_v1 }
 0x395   : > { %v3781_v11 = vadd.f32 %v3780_v39, %v6880_v56  ;;  %v3782_v24 = vpop.f32.mrb[187].mxu0  ;;  %4381 = vmatpush1.bf16.msra.mxu0 %v4166_v23  ;;  %v3854_v60 = vadd.f32 %v3853_v35, %v6880_v56  ;;  %v3855_v52 = vpop.f32.mrb[187].mxu1  ;;  %4422 = vmatpush1.bf16.msra.mxu1 %v4168_v26  ;;  %v4086_v8 = vmax.f32 %v3777_v14, 0.0  ;;  %v4088_v53 = vmax.f32 %v3850_v43, 0.0 }
 0x396   : > { %v3783_v31 = vadd.f32 %v3782_v24, %v6880_v56  ;;  %v3856_v51 = vadd.f32 %v3855_v52, %v6880_v56  ;;  %v4087_v42 = vmax.f32 %v3779_v54, 0.0  ;;  %v4089_v62 = vmax.f32 %v3852_v45, 0.0 }
 0x397   : > { %v4102_v3 = vmax.f32 %v3781_v11, 0.0  ;;  %v4104_v32 = vmax.f32 %v3854_v60, 0.0 }
 0x398   : > { %v4103_v34 = vmax.f32 %v3783_v31, 0.0  ;;  %v4105_v48 = vmax.f32 %v3856_v51, 0.0 }
 0x399   : > { %v4182_v50 = vpack.c.bf16 %v4102_v3, %v4086_v8  ;;  %v4184_v36 = vpack.c.bf16 %v4104_v32, %v4088_v53 }
 0x39a   : > { %v4183_v49 = vpack.c.bf16 %v4103_v34, %v4087_v42  ;;  %v3786_v40 = vpop.f32.mrb[188].mxu0  ;;  %v4185_v7 = vpack.c.bf16 %v4105_v48, %v4089_v62  ;;  %v3859_v22 = vpop.f32.mrb[188].mxu1 }
 0x39b   : > { %v3787_v4 = vadd.f32 %v3786_v40, %v6890_v59  ;;  %v3788_v10 = vpop.f32.mrb[189].mxu0  ;;  %v3860_v57 = vadd.f32 %v3859_v22, %v6890_v59  ;;  %v3861_v13 = vpop.f32.mrb[189].mxu1 }
 0x39c   : > { %v3789_v23 = vadd.f32 %v3788_v10, %v6890_v59  ;;  %v3790_v26 = vpop.f32.mrb[190].mxu0  ;;  %4382 = vmatprep.subr.bf16.mxu0 %v4183_v49  ;;  %v3862_v15 = vadd.f32 %v3861_v13, %v6890_v59  ;;  %v3863_v1 = vpop.f32.mrb[190].mxu1  ;;  %4423 = vmatprep.subr.bf16.mxu1 %v4185_v7 }
 0x39d   : > { %v3791_v47 = vadd.f32 %v3790_v26, %v6892_v6  ;;  %v3792_v14 = vpop.f32.mrb[191].mxu0  ;;  %4383 = vmatpush1.bf16.msra.mxu0 %v4182_v50  ;;  %v3864_v2 = vadd.f32 %v3863_v1, %v6892_v6  ;;  %v3865_v43 = vpop.f32.mrb[191].mxu1  ;;  %4424 = vmatpush1.bf16.msra.mxu1 %v4184_v36  ;;  %v4118_v54 = vmax.f32 %v3787_v4, 0.0  ;;  %v4120_v45 = vmax.f32 %v3860_v57, 0.0 }
 0x39e   : > { %v3793_v61 = vadd.f32 %v3792_v14, %v6892_v6  ;;  %v3866_v39 = vadd.f32 %v3865_v43, %v6892_v6  ;;  %v4119_v11 = vmax.f32 %v3789_v23, 0.0  ;;  %v4121_v60 = vmax.f32 %v3862_v15, 0.0 }
 0x39f   : > { %v4134_v33 = vmax.f32 %v3791_v47, 0.0  ;;  %v4136_v35 = vmax.f32 %v3864_v2, 0.0 }
 0x3a0   : > { %v4135_v24 = vmax.f32 %v3793_v61, 0.0  ;;  %v4137_v52 = vmax.f32 %v3866_v39, 0.0 }
 0x3a1   : > { %v4198_v31 = vpack.c.bf16 %v4134_v33, %v4118_v54  ;;  %v4200_v8 = vpack.c.bf16 %v4136_v35, %v4120_v45 }
 0x3a2   : > { %v4199_v3 = vpack.c.bf16 %v4135_v24, %v4119_v11  ;;  %v4201_v51 = vpack.c.bf16 %v4137_v52, %v4121_v60 }
 0x3a4   : > { %4384 = vmatprep.subr.bf16.mxu0 %v4199_v3  ;;  %4425 = vmatprep.subr.bf16.mxu1 %v4201_v51 }
 0x3a5   : > { %4385 = vmatpush1.bf16.msra.mxu0 %v4198_v31  ;;  %4426 = vmatpush1.bf16.msra.mxu1 %v4200_v8 }
 0x3a8   : > { %5239 = vmatmul.mubr.msk.bf16.vlgmr.msra.gmra.mrb[216].mxu0 %vm2502_vm1, %v6905_v27  ;;  %5240 = vmatmul.mubr.msk.bf16.vlgmr.msra.gmra.mrb[216].mxu1 %vm2502_vm1, %v6905_v27 }
 0x3a9   : > { %4492 = vmatprep.mubr.bf16.mxu0 %v5610_v0  ;;  %4533 = vmatprep.mubr.bf16.mxu1 %v5610_v0 }
 0x3aa   : > { %v3902_v53 = vpop.f32.mrb[192].mxu0  ;;  %v3975_v32 = vpop.f32.mrb[192].mxu1 }
 0x3ab   : > { %v3903_v42 = vadd.f32 %v3902_v53, %v6854_v58  ;;  %v3904_v34 = vpop.f32.mrb[193].mxu0  ;;  %v3976_v62 = vadd.f32 %v3975_v32, %v6854_v58  ;;  %v3977_v48 = vpop.f32.mrb[193].mxu1 }
 0x3ac   : > { %v3905_v50 = vadd.f32 %v3904_v34, %v6854_v58  ;;  %v3906_v36 = vpop.f32.mrb[194].mxu0  ;;  %v3978_v49 = vadd.f32 %v3977_v48, %v6854_v58  ;;  %v3979_v7 = vpop.f32.mrb[194].mxu1 }
 0x3ad   : > { %v3907_v40 = vadd.f32 %v3906_v36, %v6856_v37  ;;  %v3908_v4 = vpop.f32.mrb[195].mxu0  ;;  %v3980_v22 = vadd.f32 %v3979_v7, %v6856_v37  ;;  %v3981_v57 = vpop.f32.mrb[195].mxu1  ;;  %v4026_v23 = vmax.f32 %v3903_v42, 0.0  ;;  %v4028_v15 = vmax.f32 %v3976_v62, 0.0 }
 0x3ae   : > { %v3909_v10 = vadd.f32 %v3908_v4, %v6856_v37  ;;  %v3982_v26 = vadd.f32 %v3981_v57, %v6856_v37  ;;  %v4027_v47 = vmax.f32 %v3905_v50, 0.0  ;;  %v4029_v2 = vmax.f32 %v3978_v49, 0.0 }
 0x3af   : > { %v4042_v13 = vmax.f32 %v3907_v40, 0.0  ;;  %v4044_v1 = vmax.f32 %v3980_v22, 0.0 }
 0x3b0   : > { %v4043_v14 = vmax.f32 %v3909_v10, 0.0  ;;  %v4045_v58 = vmax.f32 %v3982_v26, 0.0 }
 0x3b1   : > { %v4154_v61 = vpack.c.bf16 %v4042_v13, %v4026_v23  ;;  %v4156_v43 = vpack.c.bf16 %v4044_v1, %v4028_v15 }
 0x3b2   : > { %v4155_v54 = vpack.c.bf16 %v4043_v14, %v4027_v47  ;;  %v3912_v33 = vpop.f32.mrb[196].mxu0  ;;  %v4157_v39 = vpack.c.bf16 %v4045_v58, %v4029_v2  ;;  %v3985_v11 = vpop.f32.mrb[196].mxu1 }
 0x3b3   : > { %v3913_v45 = vadd.f32 %v3912_v33, %v6866_v21  ;;  %v3914_v35 = vpop.f32.mrb[197].mxu0  ;;  %v3986_v24 = vadd.f32 %v3985_v11, %v6866_v21  ;;  %v3987_v37 = vpop.f32.mrb[197].mxu1 }
 0x3b4   : > { %v3915_v60 = vadd.f32 %v3914_v35, %v6866_v21  ;;  %v3916_v31 = vpop.f32.mrb[198].mxu0  ;;  %4460 = vmatprep.subr.bf16.mxu0 %v4155_v54  ;;  %v3988_v52 = vadd.f32 %v3987_v37, %v6866_v21  ;;  %v3989_v3 = vpop.f32.mrb[198].mxu1  ;;  %4501 = vmatprep.subr.bf16.mxu1 %v4157_v39 }
 0x3b5   : > { %v3917_v8 = vadd.f32 %v3916_v31, %v6868_v28  ;;  %v3918_v51 = vpop.f32.mrb[199].mxu0  ;;  %4461 = vmatpush1.bf16.msra.mxu0 %v4154_v61  ;;  %v3990_v53 = vadd.f32 %v3989_v3, %v6868_v28  ;;  %v3991_v32 = vpop.f32.mrb[199].mxu1  ;;  %4502 = vmatpush1.bf16.msra.mxu1 %v4156_v43  ;;  %v4058_v34 = vmax.f32 %v3913_v45, 0.0  ;;  %v4060_v48 = vmax.f32 %v3986_v24, 0.0 }
 0x3b6   : > { %v3919_v42 = vadd.f32 %v3918_v51, %v6868_v28  ;;  %v3992_v50 = vadd.f32 %v3991_v32, %v6868_v28  ;;  %v4059_v36 = vmax.f32 %v3915_v60, 0.0  ;;  %v4061_v40 = vmax.f32 %v3988_v52, 0.0 }
 0x3b7   : > { %v4074_v62 = vmax.f32 %v3917_v8, 0.0  ;;  %v4076_v49 = vmax.f32 %v3990_v53, 0.0 }
 0x3b8   : > { %v4075_v21 = vmax.f32 %v3919_v42, 0.0  ;;  %v4077_v4 = vmax.f32 %v3992_v50, 0.0 }
 0x3b9   : > { %v4170_v7 = vpack.c.bf16 %v4074_v62, %v4058_v34  ;;  %v4172_v22 = vpack.c.bf16 %v4076_v49, %v4060_v48 }
 0x3ba   : > { %v4171_v10 = vpack.c.bf16 %v4075_v21, %v4059_v36  ;;  %v3922_v57 = vpop.f32.mrb[200].mxu0  ;;  %v4173_v23 = vpack.c.bf16 %v4077_v4, %v4061_v40  ;;  %v3995_v26 = vpop.f32.mrb[200].mxu1 }
 0x3bb   : > { %v3923_v13 = vadd.f32 %v3922_v57, %v6878_v38  ;;  %v3924_v15 = vpop.f32.mrb[201].mxu0  ;;  %v3996_v47 = vadd.f32 %v3995_v26, %v6878_v38  ;;  %v3997_v28 = vpop.f32.mrb[201].mxu1 }
 0x3bc   : > { %v3925_v1 = vadd.f32 %v3924_v15, %v6878_v38  ;;  %v3926_v14 = vpop.f32.mrb[202].mxu0  ;;  %4462 = vmatprep.subr.bf16.mxu0 %v4171_v10  ;;  %v3998_v2 = vadd.f32 %v3997_v28, %v6878_v38  ;;  %v3999_v58 = vpop.f32.mrb[202].mxu1  ;;  %4503 = vmatprep.subr.bf16.mxu1 %v4173_v23 }
 0x3bd   : > { %v3927_v61 = vadd.f32 %v3926_v14, %v6880_v56  ;;  %v3928_v43 = vpop.f32.mrb[203].mxu0  ;;  %4463 = vmatpush1.bf16.msra.mxu0 %v4170_v7  ;;  %v4000_v54 = vadd.f32 %v3999_v58, %v6880_v56  ;;  %v4001_v39 = vpop.f32.mrb[203].mxu1  ;;  %4504 = vmatpush1.bf16.msra.mxu1 %v4172_v22  ;;  %v4090_v45 = vmax.f32 %v3923_v13, 0.0  ;;  %v4092_v24 = vmax.f32 %v3996_v47, 0.0 }
 0x3be   : > { %v3929_v33 = vadd.f32 %v3928_v43, %v6880_v56  ;;  %v4002_v35 = vadd.f32 %v4001_v39, %v6880_v56  ;;  %v4091_v60 = vmax.f32 %v3925_v1, 0.0  ;;  %v4093_v31 = vmax.f32 %v3998_v2, 0.0 }
 0x3bf   : > { %v4106_v11 = vmax.f32 %v3927_v61, 0.0  ;;  %v4108_v37 = vmax.f32 %v4000_v54, 0.0 }
 0x3c0   : > { %v4107_v38 = vmax.f32 %v3929_v33, 0.0  ;;  %v4109_v8 = vmax.f32 %v4002_v35, 0.0  ;;  %v5578_v33 = vld [vmem:[%s5994_s23 + $0xc0] sm:$0xff] }
 0x3c1   : > { %v4186_v52 = vpack.c.bf16 %v4106_v11, %v4090_v45  ;;  %v4188_v3 = vpack.c.bf16 %v4108_v37, %v4092_v24  ;;  %v558_v39 = vunpack.c.l.bf16 %v5578_v33  ;;  %v7031_v45 = vpop.permute.xlu1 %4208  ;;  %v5579_v11 = vld [vmem:[%s5994_s23 + $0xc8] sm:$0xff]  ;;  %v559_v37 = vunpack.c.h.bf16 %v5578_v33 }
 0x3c2   : > { %v4187_v51 = vpack.c.bf16 %v4107_v38, %v4091_v60  ;;  %v3932_v53 = vpop.f32.mrb[204].mxu0  ;;  %v4189_v42 = vpack.c.bf16 %v4109_v8, %v4093_v31  ;;  %v4005_v34 = vpop.f32.mrb[204].mxu1  ;;  %v560_v35 = vunpack.c.l.bf16 %v5579_v11 }
 0x3c3   : > { %v3933_v32 = vadd.f32 %v3932_v53, %v6890_v59  ;;  %v3934_v62 = vpop.f32.mrb[205].mxu0  ;;  %v4006_v50 = vadd.f32 %v4005_v34, %v6890_v59  ;;  %v4007_v56 = vpop.f32.mrb[205].mxu1  ;;  %vm7036_vm2 = vcmp.gt.f32.partialorder %v558_v39, 0.5  ;;  %vm575_vm5 = vcmp.gt.f32.partialorder %v559_v37, 0.5 }
 0x3c4   : > { %v3935_v48 = vadd.f32 %v3934_v62, %v6890_v59  ;;  %v3936_v36 = vpop.f32.mrb[206].mxu0  ;;  %4464 = vmatprep.subr.bf16.mxu0 %v4187_v51  ;;  %v4008_v49 = vadd.f32 %v4007_v56, %v6890_v59  ;;  %v4009_v40 = vpop.f32.mrb[206].mxu1  ;;  %4505 = vmatprep.subr.bf16.mxu1 %v4189_v42  ;;  %vm7049_vm4 = vcmp.gt.f32.partialorder %v560_v35, 0.5  ;;  %v4721_v62 = vsel %vm7036_vm2, 1, %v5610_v0 }
 0x3c5   : > { %v3937_v21 = vadd.f32 %v3936_v36, %v6892_v6  ;;  %v3938_v7 = vpop.f32.mrb[207].mxu0  ;;  %4465 = vmatpush1.bf16.msra.mxu0 %v4186_v52  ;;  %v4010_v4 = vadd.f32 %v4009_v40, %v6892_v6  ;;  %v4011_v10 = vpop.f32.mrb[207].mxu1  ;;  %4506 = vmatpush1.bf16.msra.mxu1 %v4188_v3  ;;  %v4122_v57 = vmax.f32 %v3933_v32, 0.0  ;;  %v4124_v26 = vmax.f32 %v4006_v50, 0.0 }
 0x3c6   : > { %v3939_v22 = vadd.f32 %v3938_v7, %v6892_v6  ;;  %v4012_v13 = vadd.f32 %v4011_v10, %v6892_v6  ;;  %v4123_v15 = vmax.f32 %v3935_v48, 0.0  ;;  %v4125_v1 = vmax.f32 %v4008_v49, 0.0 }
 0x3c7   : > { %v4138_v23 = vmax.f32 %v3937_v21, 0.0  ;;  %v4140_v47 = vmax.f32 %v4010_v4, 0.0  ;;  %v4542_v6 = vlaneseq  ;;  %v561_v32 = vunpack.c.h.bf16 %v5579_v11 }
 0x3c8   : > { %v4139_v59 = vmax.f32 %v3939_v22, 0.0  ;;  %v4141_v14 = vmax.f32 %v4012_v13, 0.0  ;;  %v4723_v22 = vsel %vm7049_vm4, 1, %v5610_v0 }
 0x3c9   : > { %v4202_v28 = vpack.c.bf16 %v4138_v23, %v4122_v57  ;;  %v4204_v2 = vpack.c.bf16 %v4140_v47, %v4124_v26  ;;  %v7025_v43 = vshrl.u32 %v4542_v6, 7  ;;  %vm577_vm6 = vcmp.gt.f32.partialorder %v561_v32, 0.5 }
 0x3ca   : > { %v4203_v61 = vpack.c.bf16 %v4139_v59, %v4123_v15  ;;  %v4205_v58 = vpack.c.bf16 %v4141_v14, %v4125_v1  ;;  %v4722_v23 = vsel %vm575_vm5, 1, %v5610_v0  ;;  %v4724_v15 = vsel %vm577_vm6, 1, %v5610_v0 }
 0x3cb   : > { %v7028_v54 = vsub.s32 0, %v7025_v43  ;;  %vm4544_vm3 = vcmp.eq.s32.totalorder %v7025_v43, 3  ;;  %v7047_v8 = vsub.s32 4, %v7025_v43  ;;  %vm4881_vm11 = vcmp.lt.s32.totalorder %v7025_v43, 3 }
 0x3cc   : > { %4466 = vmatprep.subr.bf16.mxu0 %v4203_v61  ;;  %4507 = vmatprep.subr.bf16.mxu1 %v4205_v58 }
 0x3cd   : > { %4467 = vmatpush1.bf16.msra.mxu0 %v4202_v28  ;;  %4508 = vmatpush1.bf16.msra.mxu1 %v4204_v2  ;;  %v4548_v24 = vrot.slane %v6705_v19, %v7028_v54  ;;  %v4556_v38 = vrot.slane %v6712_v17, %v7028_v54  ;;  %v4552_v31 = vrot.slane %v6714_v44, %v7028_v54 }
 0x3ce   : > { %v4560_v7 = vrot.slane %v6716_v46, %v7028_v54  ;;  %v4740_v10 = vrot.slane %v4721_v62, %v7047_v8  ;;  %v4748_v26 = vrot.slane %v4723_v22, %v7047_v8  ;;  %v4744_v59 = vrot.slane %v4722_v23, %v7047_v8 }
 0x3cf   : > { %v4752_v28 = vrot.slane %v4724_v15, %v7047_v8  ;;  %v4572_v15 = vrot.slane %v6759_v25, %v7028_v54  ;;  %v4568_v47 = vrot.slane %v6761_v63, %v7028_v54 }
 0x3d0   : > { %5241 = vmatmul.mubr.msk.bf16.vlgmr.msra.gmra.mrb[220].mxu0 %vm2502_vm1, %v6905_v27  ;;  %5242 = vmatmul.mubr.msk.bf16.vlgmr.msra.gmra.mrb[220].mxu1 %vm2502_vm1, %v6905_v27  ;;  %vm7076_vm7 = vcmp.eq.s32.totalorder %v4740_v10, 1  ;;  %vm7081_vm8 = vcmp.eq.s32.totalorder %v4748_v26, 1  ;;  %vm7088_vm9 = vcmp.eq.s32.totalorder %v4744_v59, 1  ;;  %v5581_v10 = vld [vmem:[%s5994_s23 + $0xd8] sm:$0xff] }
 0x3d1   : > { %vm7096_vm10 = vcmp.eq.s32.totalorder %v4752_v28, 1 }
 0x42b   : > { %v4248_v27 = vpop.f32.mrb[208].mxu0  ;;  %v4289_v19 = vpop.f32.mrb[208].mxu1 }
 0x42c   : > { %v4249_v52 = vadd.f32 %v4248_v27, %v7031_v45  ;;  %v4250_v3 = vpop.f32.mrb[209].mxu0  ;;  %v4290_v53 = vadd.f32 %v4289_v19, %v7031_v45  ;;  %v4291_v17 = vpop.f32.mrb[209].mxu1 }
 0x42d   : > { %v4251_v42 = vadd.f32 %v4250_v3, %v7031_v45  ;;  %v4252_v34 = vpop.f32.mrb[210].mxu0  ;;  %v4292_v50 = vadd.f32 %v4291_v17, %v7031_v45  ;;  %v4293_v48 = vpop.f32.mrb[210].mxu1 }
 0x42e   : > { %v4609_v44 = vsel %vm4544_vm3, %v4548_v24, %v4249_v52  ;;  %v4253_v56 = vpop.f32.mrb[211].mxu0  ;;  %v4611_v49 = vsel %vm4544_vm3, %v4556_v38, %v4290_v53  ;;  %v4294_v40 = vpop.f32.mrb[211].mxu1 }
 0x42f   : > { %v5243_v36 = vmul.f32 -1.442695, %v4609_v44  ;;  %v4610_v21 = vsel %vm4544_vm3, %v4552_v31, %v4251_v42  ;;  %v5245_v4 = vmul.f32 -1.442695, %v4611_v49  ;;  %v4612_v13 = vsel %vm4544_vm3, %v4560_v7, %v4292_v50  ;;  %v5580_v7 = vld [vmem:[%s5994_s23 + $0xd0] sm:$0xff] }
 0x430   : > { %v5244_v57 = vmul.f32 -1.442695, %v4610_v21  ;;  %v5246_v46 = vmul.f32 -1.442695, %v4612_v13  ;;  %v4833_v14 = vsel %vm7076_vm7, %v4609_v44, -100000.0  ;;  %v4835_v61 = vsel %vm7081_vm8, %v4611_v49, -100000.0 }
 0x431   : > { %5474 = vpow2.f32 %v5243_v36  ;;  %v4849_v6 = vmul.f32 1.442695, %v4833_v14  ;;  %v4834_v11 = vsel %vm7088_vm9, %v4610_v21, -100000.0  ;;  %v4853_v24 = vmul.f32 1.442695, %v4835_v61 }
 0x432   : > { %5476 = vpow2.f32 %v5245_v4  ;;  %v4836_v27 = vsel %vm7096_vm10, %v4612_v13, -100000.0  ;;  %v4851_v38 = vmul.f32 1.442695, %v4834_v11  ;;  %v562_v4 = vunpack.c.l.bf16 %v5580_v7 }
 0x433   : > { %5478 = vpow2.f32 %v5244_v57  ;;  %v4855_v19 = vmul.f32 1.442695, %v4836_v27  ;;  %v564_v57 = vunpack.c.l.bf16 %v5581_v10  ;;  %v563_v26 = vunpack.c.h.bf16 %v5580_v7 }
 0x434   : > { %5480 = vpow2.f32 %v5246_v46  ;;  %vm7132_vm12 = vcmp.gt.f32.partialorder %v562_v4, 0.5  ;;  %v4564_v46 = vrot.slane %v6757_v16, %v7028_v54 }
 0x435   : > { %vm7143_vm13 = vcmp.gt.f32.partialorder %v564_v57, 0.5  ;;  %v4725_v63 = vsel %vm7132_vm12, 1, %v5610_v0  ;;  %vm579_vm14 = vcmp.gt.f32.partialorder %v563_v26, 0.5 }
 0x43b   : > { %v5475_v58 = vpop.eup %5474 }
 0x43c   : > { %v4673_v39 = vadd.f32 1.0, %v5475_v58  ;;  %v5477_v35 = vpop.eup %5476  ;;  %v565_v58 = vunpack.c.h.bf16 %v5581_v10 }
 0x43d   : > { %v4675_v60 = vadd.f32 1.0, %v5477_v35  ;;  %v5479_v37 = vpop.eup %5478 }
 0x43e   : > { %5482 = vrcp.f32 %v4673_v39  ;;  %v4674_v31 = vadd.f32 1.0, %v5479_v37  ;;  %v5481_v52 = vpop.eup %5480  ;;  %v4576_v37 = vrot.slane %v6763_v29, %v7028_v54  ;;  %vm581_vm15 = vcmp.gt.f32.partialorder %v565_v58, 0.5 }
 0x43f   : > { %5484 = vpow2.f32 %v4849_v6  ;;  %v4676_v3 = vadd.f32 1.0, %v5481_v52  ;;  %v4756_v52 = vrot.slane %v4725_v63, %v7047_v8  ;;  %v4728_v29 = vsel %vm581_vm15, 1, %v5610_v0 }
 0x440   : > { %5486 = vrcp.f32 %v4675_v60 }
 0x441   : > { %5488 = vpow2.f32 %v4853_v24  ;;  %vm7170_vm0 = vcmp.eq.s32.totalorder %v4756_v52, 1 }
 0x442   : > { %5490 = vrcp.f32 %v4674_v31  ;;  %v4727_v31 = vsel %vm7143_vm13, 1, %v5610_v0 }
 0x443   : > { %5492 = vpow2.f32 %v4851_v38 }
 0x444   : > { %5494 = vrcp.f32 %v4676_v3  ;;  %v4726_v3 = vsel %vm579_vm14, 1, %v5610_v0 }
 0x445   : > { %5496 = vpow2.f32 %v4855_v19 }
 0x448   : > { %v5483_v51 = vpop.eup %5482 }
 0x449   : > { %v5485_v53 = vpop.eup %5484  ;;  %v4817_v42 = vsel %vm7076_vm7, %v5483_v51, 0.0 }
 0x44a   : > { %v5487_v32 = vpop.eup %5486  ;;  %v4882_v17 = vsel %vm4881_vm11, %v4817_v42, %v5485_v53  ;;  %v4764_v53 = vrot.slane %v4727_v31, %v7047_v8 }
 0x44b   : > { %v5489_v34 = vpop.eup %5488  ;;  %4898 = vst [vmem:[%s7108_s13] sm:$0xff] %v4882_v17  ;;  %v4819_v44 = vsel %vm7081_vm8, %v5487_v32, 0.0  ;;  %v4760_v17 = vrot.slane %v4726_v3, %v7047_v8  ;;  %v4588_v3 = vrot.slane %v6791_v55, %v7028_v54 }
 0x44c   : > { %v5491_v62 = vpop.eup %5490  ;;  %v4884_v50 = vsel %vm4881_vm11, %v4819_v44, %v5489_v34  ;;  %vm7175_vm1 = vcmp.eq.s32.totalorder %v4764_v53, 1  ;;  %v4768_v44 = vrot.slane %v4728_v29, %v7047_v8 }
 0x44d   : > { %v5493_v48 = vpop.eup %5492  ;;  %4900 = vst [vmem:[%s7108_s13 + $0x10] sm:$0xff] %v4884_v50  ;;  %v4818_v56 = vsel %vm7088_vm9, %v5491_v62, 0.0  ;;  %vm7182_vm2 = vcmp.eq.s32.totalorder %v4760_v17, 1 }
 0x44e   : > { %v5495_v36 = vpop.eup %5494  ;;  %v4883_v49 = vsel %vm4881_vm11, %v4818_v56, %v5493_v48  ;;  %vm7188_vm4 = vcmp.eq.s32.totalorder %v4768_v44, 1 }
 0x44f   : > { %v5497_v21 = vpop.eup %5496  ;;  %4899 = vst [vmem:[%s7108_s13 + $0x8] sm:$0xff] %v4883_v49  ;;  %v4820_v40 = vsel %vm7096_vm10, %v5495_v36, 0.0 }
 0x450   : > { %v4885_v22 = vsel %vm4881_vm11, %v4820_v40, %v5497_v21 }
 0x451   : > { %4901 = vst [vmem:[%s7108_s13 + $0x18] sm:$0xff] %v4885_v22 }
 0x453   : > { %v4330_v13 = vpop.f32.mrb[212].mxu0  ;;  %v4371_v1 = vpop.f32.mrb[212].mxu1 }
 0x454   : > { %v4331_v59 = vadd.f32 %v4330_v13, %v7031_v45  ;;  %v4332_v28 = vpop.f32.mrb[213].mxu0  ;;  %v4372_v2 = vadd.f32 %v4371_v1, %v7031_v45  ;;  %v4373_v16 = vpop.f32.mrb[213].mxu1 }
 0x455   : > { %v4333_v61 = vadd.f32 %v4332_v28, %v7031_v45  ;;  %v4334_v6 = vpop.f32.mrb[214].mxu0  ;;  %v4374_v33 = vadd.f32 %v4373_v16, %v7031_v45  ;;  %v4375_v39 = vpop.f32.mrb[214].mxu1 }
 0x456   : > { %v4613_v25 = vsel %vm4544_vm3, %v4564_v46, %v4331_v59  ;;  %v4335_v11 = vpop.f32.mrb[215].mxu0  ;;  %v4615_v24 = vsel %vm4544_vm3, %v4572_v15, %v4372_v2  ;;  %v4376_v27 = vpop.f32.mrb[215].mxu1 }
 0x457   : > { %v5247_v35 = vmul.f32 -1.442695, %v4613_v25  ;;  %v4614_v60 = vsel %vm4544_vm3, %v4568_v47, %v4333_v61  ;;  %v5249_v38 = vmul.f32 -1.442695, %v4615_v24  ;;  %v4616_v51 = vsel %vm4544_vm3, %v4576_v37, %v4374_v33  ;;  %v5583_v27 = vld [vmem:[%s5994_s23 + $0xe8] sm:$0xff] }
 0x458   : > { %v5248_v19 = vmul.f32 -1.442695, %v4614_v60  ;;  %v5250_v42 = vmul.f32 -1.442695, %v4616_v51  ;;  %v4837_v62 = vsel %vm7170_vm0, %v4613_v25, -100000.0  ;;  %v4839_v48 = vsel %vm7175_vm1, %v4615_v24, -100000.0 }
 0x459   : > { %5498 = vpow2.f32 %v5247_v35  ;;  %v4857_v36 = vmul.f32 1.442695, %v4837_v62  ;;  %v4838_v40 = vsel %vm7182_vm2, %v4614_v60, -100000.0  ;;  %v4861_v4 = vmul.f32 1.442695, %v4839_v48  ;;  %v5582_v35 = vld [vmem:[%s5994_s23 + $0xe0] sm:$0xff] }
 0x45a   : > { %5500 = vpow2.f32 %v5249_v38  ;;  %v4840_v10 = vsel %vm7188_vm4, %v4616_v51, -100000.0  ;;  %v4859_v23 = vmul.f32 1.442695, %v4838_v40  ;;  %v566_v24 = vunpack.c.l.bf16 %v5582_v35 }
 0x45b   : > { %5502 = vpow2.f32 %v5248_v19  ;;  %v4863_v46 = vmul.f32 1.442695, %v4840_v10  ;;  %v568_v37 = vunpack.c.l.bf16 %v5583_v27  ;;  %v567_v52 = vunpack.c.h.bf16 %v5582_v35 }
 0x45c   : > { %5504 = vpow2.f32 %v5250_v42  ;;  %vm7218_vm5 = vcmp.gt.f32.partialorder %v566_v24, 0.5  ;;  %v4580_v19 = vrot.slane %v6789_v5, %v7028_v54  ;;  %v4584_v51 = vrot.slane %v6793_v9, %v7028_v54 }
 0x45d   : > { %vm7229_vm6 = vcmp.gt.f32.partialorder %v568_v37, 0.5  ;;  %v569_v44 = vunpack.c.h.bf16 %v5583_v27  ;;  %v4729_v9 = vsel %vm7218_vm5, 1, %v5610_v0  ;;  %vm583_vm7 = vcmp.gt.f32.partialorder %v567_v52, 0.5 }
 0x45e   : > { %v4772_v10 = vrot.slane %v4729_v9, %v7047_v8  ;;  %v5584_v9 = vld [vmem:[%s5994_s23 + $0xf0] sm:$0xff] }
 0x45f   : > { %vm585_vm8 = vcmp.gt.f32.partialorder %v569_v44, 0.5 }
 0x460   : > { %vm7256_vm9 = vcmp.eq.s32.totalorder %v4772_v10, 1 }
 0x463   : > { %v5499_v56 = vpop.eup %5498 }
 0x464   : > { %v4677_v21 = vadd.f32 1.0, %v5499_v56  ;;  %v5501_v7 = vpop.eup %5500 }
 0x465   : > { %v4679_v22 = vadd.f32 1.0, %v5501_v7  ;;  %v5503_v57 = vpop.eup %5502  ;;  %v4592_v7 = vrot.slane %v6795_v12, %v7028_v54  ;;  %v4732_v12 = vsel %vm585_vm8, 1, %v5610_v0 }
 0x466   : > { %5506 = vrcp.f32 %v4677_v21  ;;  %v4678_v13 = vadd.f32 1.0, %v5503_v57  ;;  %v5505_v26 = vpop.eup %5504 }
 0x467   : > { %5508 = vpow2.f32 %v4857_v36  ;;  %v4680_v15 = vadd.f32 1.0, %v5505_v26 }
 0x468   : > { %5510 = vrcp.f32 %v4679_v22  ;;  %v4731_v22 = vsel %vm7229_vm6, 1, %v5610_v0 }
 0x469   : > { %5512 = vpow2.f32 %v4861_v4  ;;  %v4780_v26 = vrot.slane %v4731_v22, %v7047_v8  ;;  %v4600_v22 = vrot.slane %v6825_v20, %v7028_v54 }
 0x46a   : > { %5514 = vrcp.f32 %v4678_v13 }
 0x46b   : > { %5516 = vpow2.f32 %v4859_v23  ;;  %v4730_v23 = vsel %vm583_vm7, 1, %v5610_v0  ;;  %vm7261_vm10 = vcmp.eq.s32.totalorder %v4780_v26, 1 }
 0x46c   : > { %5518 = vrcp.f32 %v4680_v15 }
 0x46d   : > { %5520 = vpow2.f32 %v4863_v46 }
 0x470   : > { %v5507_v47 = vpop.eup %5506 }
 0x471   : > { %v5509_v59 = vpop.eup %5508  ;;  %v4821_v1 = vsel %vm7170_vm0, %v5507_v47, 0.0  ;;  %v4776_v47 = vrot.slane %v4730_v23, %v7047_v8 }
 0x472   : > { %v5511_v28 = vpop.eup %5510  ;;  %v4886_v14 = vsel %vm4881_vm11, %v4821_v1, %v5509_v59  ;;  %v4784_v1 = vrot.slane %v4732_v12, %v7047_v8 }
 0x473   : > { %v5513_v2 = vpop.eup %5512  ;;  %4902 = vst [vmem:[%s7108_s13 + $0x20] sm:$0xff] %v4886_v14  ;;  %v4823_v61 = vsel %vm7175_vm1, %v5511_v28, 0.0  ;;  %vm7268_vm12 = vcmp.eq.s32.totalorder %v4776_v47, 1 }
 0x474   : > { %v5515_v58 = vpop.eup %5514  ;;  %v4888_v16 = vsel %vm4881_vm11, %v4823_v61, %v5513_v2  ;;  %vm7274_vm13 = vcmp.eq.s32.totalorder %v4784_v1, 1 }
 0x475   : > { %v5517_v6 = vpop.eup %5516  ;;  %4904 = vst [vmem:[%s7108_s13 + $0x30] sm:$0xff] %v4888_v16  ;;  %v4822_v25 = vsel %vm7182_vm2, %v5515_v58, 0.0 }
 0x476   : > { %v5519_v63 = vpop.eup %5518  ;;  %v4887_v33 = vsel %vm4881_vm11, %v4822_v25, %v5517_v6 }
 0x477   : > { %v5521_v39 = vpop.eup %5520  ;;  %4903 = vst [vmem:[%s7108_s13 + $0x28] sm:$0xff] %v4887_v33  ;;  %v4824_v11 = vsel %vm7188_vm4, %v5519_v63, 0.0 }
 0x478   : > { %v4889_v60 = vsel %vm4881_vm11, %v4824_v11, %v5521_v39 }
 0x479   : > { %4905 = vst [vmem:[%s7108_s13 + $0x38] sm:$0xff] %v4889_v60 }
 0x47b   : > { %v4412_v31 = vpop.f32.mrb[216].mxu0  ;;  %v4453_v42 = vpop.f32.mrb[216].mxu1 }
 0x47c   : > { %v4413_v53 = vadd.f32 %v4412_v31, %v7031_v45  ;;  %v4414_v29 = vpop.f32.mrb[217].mxu0  ;;  %v4454_v17 = vadd.f32 %v4453_v42, %v7031_v45  ;;  %v4455_v5 = vpop.f32.mrb[217].mxu1 }
 0x47d   : > { %v4415_v34 = vadd.f32 %v4414_v29, %v7031_v45  ;;  %v4416_v62 = vpop.f32.mrb[218].mxu0  ;;  %v4456_v50 = vadd.f32 %v4455_v5, %v7031_v45  ;;  %v4457_v48 = vpop.f32.mrb[218].mxu1 }
 0x47e   : > { %v4617_v55 = vsel %vm4544_vm3, %v4580_v19, %v4413_v53  ;;  %v4417_v56 = vpop.f32.mrb[219].mxu0  ;;  %v4619_v49 = vsel %vm4544_vm3, %v4588_v3, %v4454_v17  ;;  %v4458_v40 = vpop.f32.mrb[219].mxu1 }
 0x47f   : > { %v5251_v36 = vmul.f32 -1.442695, %v4617_v55  ;;  %v4618_v21 = vsel %vm4544_vm3, %v4584_v51, %v4415_v34  ;;  %v5253_v4 = vmul.f32 -1.442695, %v4619_v49  ;;  %v4620_v13 = vsel %vm4544_vm3, %v4592_v7, %v4456_v50  ;;  %v5585_v56 = vld [vmem:[%s5994_s23 + $0xf8] sm:$0xff] }
 0x480   : > { %v5252_v57 = vmul.f32 -1.442695, %v4618_v21  ;;  %v5254_v46 = vmul.f32 -1.442695, %v4620_v13  ;;  %v4841_v28 = vsel %vm7256_vm9, %v4617_v55, -100000.0  ;;  %v4843_v2 = vsel %vm7261_vm10, %v4619_v49, -100000.0 }
 0x481   : > { %5522 = vpow2.f32 %v5251_v36  ;;  %v4865_v58 = vmul.f32 1.442695, %v4841_v28  ;;  %v4842_v25 = vsel %vm7268_vm12, %v4618_v21, -100000.0  ;;  %v4869_v33 = vmul.f32 1.442695, %v4843_v2 }
 0x482   : > { %5524 = vpow2.f32 %v5253_v4  ;;  %v4844_v11 = vsel %vm7274_vm13, %v4620_v13, -100000.0  ;;  %v4867_v24 = vmul.f32 1.442695, %v4842_v25  ;;  %v570_v50 = vunpack.c.l.bf16 %v5584_v9 }
 0x483   : > { %5526 = vpow2.f32 %v5252_v57  ;;  %v4871_v37 = vmul.f32 1.442695, %v4844_v11  ;;  %v572_v36 = vunpack.c.l.bf16 %v5585_v56  ;;  %v571_v40 = vunpack.c.h.bf16 %v5584_v9 }
 0x484   : > { %5528 = vpow2.f32 %v5254_v46  ;;  %vm7304_vm14 = vcmp.gt.f32.partialorder %v570_v50, 0.5  ;;  %v4596_v7 = vrot.slane %v6821_v41, %v7028_v54  ;;  %v4604_v4 = vrot.slane %v6823_v18, %v7028_v54 }
 0x485   : > { %vm7315_vm15 = vcmp.gt.f32.partialorder %v572_v36, 0.5  ;;  %v573_v12 = vunpack.c.h.bf16 %v5585_v56  ;;  %v4733_v20 = vsel %vm7304_vm14, 1, %v5610_v0  ;;  %vm587_vm0 = vcmp.gt.f32.partialorder %v571_v40, 0.5 }
 0x487   : > { %vm589_vm1 = vcmp.gt.f32.partialorder %v573_v12, 0.5 }
 0x48b   : > { %v5523_v61 = vpop.eup %5522 }
 0x48c   : > { %v4681_v6 = vadd.f32 1.0, %v5523_v61  ;;  %v5525_v63 = vpop.eup %5524 }
 0x48d   : > { %v4683_v39 = vadd.f32 1.0, %v5525_v63  ;;  %v5527_v35 = vpop.eup %5526  ;;  %v4734_v63 = vsel %vm587_vm0, 1, %v5610_v0 }
 0x48e   : > { %5530 = vrcp.f32 %v4681_v6  ;;  %v4682_v60 = vadd.f32 1.0, %v5527_v35  ;;  %v5529_v27 = vpop.eup %5528  ;;  %v4735_v6 = vsel %vm7315_vm15, 1, %v5610_v0  ;;  %v4792_v35 = vrot.slane %v4734_v63, %v7047_v8 }
 0x48f   : > { %5532 = vpow2.f32 %v4865_v58  ;;  %v4684_v38 = vadd.f32 1.0, %v5529_v27  ;;  %v4608_v58 = vrot.slane %v6827_v30, %v7028_v54  ;;  %v4736_v30 = vsel %vm589_vm1, 1, %v5610_v0 }
 0x490   : > { %5534 = vrcp.f32 %v4683_v39  ;;  %v4796_v39 = vrot.slane %v4735_v6, %v7047_v8 }
 0x491   : > { %5536 = vpow2.f32 %v4869_v33 }
 0x492   : > { %5538 = vrcp.f32 %v4682_v60  ;;  %vm7347_vm4 = vcmp.eq.s32.totalorder %v4796_v39, 1  ;;  %v4800_v60 = vrot.slane %v4736_v30, %v7047_v8 }
 0x493   : > { %5540 = vpow2.f32 %v4867_v24 }
 0x494   : > { %5542 = vrcp.f32 %v4684_v38  ;;  %vm7360_vm5 = vcmp.eq.s32.totalorder %v4800_v60, 1 }
 0x495   : > { %5544 = vpow2.f32 %v4871_v37 }
 0x498   : > { %v5531_v31 = vpop.eup %5530 }
 0x499   : > { %v5533_v52 = vpop.eup %5532  ;;  %v4825_v19 = vsel %vm7256_vm9, %v5531_v31, 0.0 }
 0x49a   : > { %v5535_v3 = vpop.eup %5534  ;;  %v4890_v51 = vsel %vm4881_vm11, %v4825_v19, %v5533_v52 }
 0x49b   : > { %v5537_v53 = vpop.eup %5536  ;;  %4906 = vst [vmem:[%s7108_s13 + $0x40] sm:$0xff] %v4890_v51  ;;  %v4827_v42 = vsel %vm7261_vm10, %v5535_v3, 0.0 }
 0x49c   : > { %v5539_v29 = vpop.eup %5538  ;;  %v4892_v32 = vsel %vm4881_vm11, %v4827_v42, %v5537_v53 }
 0x49d   : > { %v5541_v17 = vpop.eup %5540  ;;  %4908 = vst [vmem:[%s7108_s13 + $0x50] sm:$0xff] %v4892_v32  ;;  %v4826_v34 = vsel %vm7268_vm12, %v5539_v29, 0.0 }
 0x49e   : > { %v5543_v44 = vpop.eup %5542  ;;  %v4891_v5 = vsel %vm4881_vm11, %v4826_v34, %v5541_v17 }
 0x49f   : > { %v5545_v62 = vpop.eup %5544  ;;  %4907 = vst [vmem:[%s7108_s13 + $0x48] sm:$0xff] %v4891_v5  ;;  %v4828_v55 = vsel %vm7274_vm13, %v5543_v44, 0.0 }
 0x4a0   : > { %v4893_v48 = vsel %vm4881_vm11, %v4828_v55, %v5545_v62 }
 0x4a1   : > { %4909 = vst [vmem:[%s7108_s13 + $0x58] sm:$0xff] %v4893_v48 }
 0x4a3   : > { %v4494_v21 = vpop.f32.mrb[220].mxu0  ;;  %v4535_v57 = vpop.f32.mrb[220].mxu1 }
 0x4a4   : > { %v4495_v10 = vadd.f32 %v4494_v21, %v7031_v45  ;;  %v4496_v23 = vpop.f32.mrb[221].mxu0  ;;  %v4536_v26 = vadd.f32 %v4535_v57, %v7031_v45  ;;  %v4537_v41 = vpop.f32.mrb[221].mxu1 }
 0x4a5   : > { %v4497_v46 = vadd.f32 %v4496_v23, %v7031_v45  ;;  %v4498_v15 = vpop.f32.mrb[222].mxu0  ;;  %v4538_v47 = vadd.f32 %v4537_v41, %v7031_v45  ;;  %v4539_v59 = vpop.f32.mrb[222].mxu1  ;;  %v4788_v45 = vrot.slane %v4733_v20, %v7047_v8 }
 0x4a6   : > { %v4621_v18 = vsel %vm4544_vm3, %v4596_v7, %v4495_v10  ;;  %v4499_v1 = vpop.f32.mrb[223].mxu0  ;;  %v4623_v14 = vsel %vm4544_vm3, %v4604_v4, %v4536_v26  ;;  %v4540_v61 = vpop.f32.mrb[223].mxu1 }
 0x4a7   : > { %v5255_v28 = vmul.f32 -1.442695, %v4621_v18  ;;  %v4622_v2 = vsel %vm4544_vm3, %v4600_v22, %v4497_v46  ;;  %v5257_v16 = vmul.f32 -1.442695, %v4623_v14  ;;  %v4624_v33 = vsel %vm4544_vm3, %v4608_v58, %v4538_v47 }
 0x4a8   : > { %v5256_v25 = vmul.f32 -1.442695, %v4622_v2  ;;  %v5258_v11 = vmul.f32 -1.442695, %v4624_v33  ;;  %vm7342_vm2 = vcmp.eq.s32.totalorder %v4788_v45, 1  ;;  %vm7354_vm3 = vcmp.eq.s32.totalorder %v4792_v35, 1 }
 0x4a9   : > { %5546 = vpow2.f32 %v5255_v28  ;;  %v4845_v27 = vsel %vm7342_vm2, %v4621_v18, -100000.0  ;;  %v4847_v0 = vsel %vm7347_vm4, %v4623_v14, -100000.0  ;;  %v4846_v8 = vsel %vm7354_vm3, %v4622_v2, -100000.0 }
 0x4aa   : > { %5548 = vpow2.f32 %v5257_v16  ;;  %v4873_v31 = vmul.f32 1.442695, %v4845_v27  ;;  %v4877_v51 = vmul.f32 1.442695, %v4847_v0  ;;  %v4848_v42 = vsel %vm7360_vm5, %v4624_v33, -100000.0 }
 0x4ab   : > { %5550 = vpow2.f32 %v5256_v25  ;;  %v4875_v32 = vmul.f32 1.442695, %v4846_v8  ;;  %v4879_v44 = vmul.f32 1.442695, %v4848_v42 }
 0x4ac   : > { %5552 = vpow2.f32 %v5258_v11 }
 0x4b3   : > { %v5547_v38 = vpop.eup %5546 }
 0x4b4   : > { %v4685_v19 = vadd.f32 1.0, %v5547_v38  ;;  %v5549_v3 = vpop.eup %5548 }
 0x4b5   : > { %v4687_v53 = vadd.f32 1.0, %v5549_v3  ;;  %v5551_v29 = vpop.eup %5550 }
 0x4b6   : > { %5554 = vrcp.f32 %v4685_v19  ;;  %v4686_v17 = vadd.f32 1.0, %v5551_v29  ;;  %v5553_v34 = vpop.eup %5552 }
 0x4b7   : > { %5556 = vpow2.f32 %v4873_v31  ;;  %v4688_v5 = vadd.f32 1.0, %v5553_v34 }
 0x4b8   : > { %5558 = vrcp.f32 %v4687_v53 }
 0x4b9   : > { %5560 = vpow2.f32 %v4877_v51 }
 0x4ba   : > { %5562 = vrcp.f32 %v4686_v17 }
 0x4bb   : > { %5564 = vpow2.f32 %v4875_v32 }
 0x4bc   : > { %5566 = vrcp.f32 %v4688_v5 }
 0x4bd   : > { %5568 = vpow2.f32 %v4879_v44 }
 0x4c0   : > { %v5555_v62 = vpop.eup %5554 }
 0x4c1   : > { %v5557_v55 = vpop.eup %5556  ;;  %v4829_v9 = vsel %vm7342_vm2, %v5555_v62, 0.0 }
 0x4c2   : > { %v5559_v50 = vpop.eup %5558  ;;  %v4894_v48 = vsel %vm4881_vm11, %v4829_v9, %v5557_v55 }
 0x4c3   : > { %v5561_v56 = vpop.eup %5560  ;;  %4910 = vst [vmem:[%s7108_s13 + $0x60] sm:$0xff] %v4894_v48  ;;  %v4831_v36 = vsel %vm7347_vm4, %v5559_v50, 0.0 }
 0x4c4   : > { %v5563_v49 = vpop.eup %5562  ;;  %v4896_v21 = vsel %vm4881_vm11, %v4831_v36, %v5561_v56 }
 0x4c5   : > { %v5565_v40 = vpop.eup %5564  ;;  %4912 = vst [vmem:[%s7108_s13 + $0x70] sm:$0xff] %v4896_v21  ;;  %v4830_v7 = vsel %vm7354_vm3, %v5563_v49, 0.0 }
 0x4c6   : > { %v5567_v4 = vpop.eup %5566  ;;  %v4895_v22 = vsel %vm4881_vm11, %v4830_v7, %v5565_v40 }
 0x4c7   : > { %v5569_v10 = vpop.eup %5568  ;;  %4911 = vst [vmem:[%s7108_s13 + $0x68] sm:$0xff] %v4895_v22  ;;  %v4832_v57 = vsel %vm7360_vm5, %v5567_v4, 0.0 }
 0x4c8   : > { %v4897_v23 = vsel %vm4881_vm11, %v4832_v57, %v5569_v10 }
 0x4c9   : > { %4913 = vst [vmem:[%s7108_s13 + $0x78] sm:$0xff] %v4897_v23 }
 0x4ca PF: > { %p15_p9 = scmp.ge.s32.totalorder %s5675_s9, 4   ;;  %s7456_s27 = smov %s5604_s28 }
 0x4cb   : > { %s7457_s28 = smov %s5684_s12  ;;  %s7458_s29 = smov %s5675_s9 }
 0x4cc   :  { %17 = sbr.rel (!%p15_p9) target bundleno = 2 (0x2), region = 141 }

</bundles_post_ra>
